<compile_context>
chip_gen: v7x
topology: tpu7x:2x2x1
jax: 0.10.0
libtpu: 0.0.40
codegen_flags: <defaults>
</compile_context>

<pallas_src>
import functools

import jax
import jax.numpy as jnp
from jax.experimental import pallas as pl
from jax.experimental.pallas import tpu as pltpu


# ----------------------------------------------------------------------------
# Fused Pallas kernel: [conv3x3 + folded-BN + ReLU] x 2, one batch image / step
# ----------------------------------------------------------------------------
def _decoder_fused_kernel(x_ref, w1_ref, s1_ref, b1_ref, w2_ref, s2_ref, b2_ref,
                          o_ref, ypad_ref, *, H, W, C1, C2):
    # x_ref   : (1, H+2, W+2, C1) f32  zero-halo padded (skip ++ upsampled) input
    # w1_ref  : (9*C1, C2) bf16        conv1 weights, im2col layout (dh, dw, cin)
    # s1_ref, b1_ref : (1, C2) f32     folded BN scale / (conv-bias + BN) bias
    # w2_ref  : (9*C2, C2) bf16        conv2 weights, im2col layout
    # s2_ref, b2_ref : (1, C2) f32
    # o_ref   : (1, C2, H*W) f32       lane-dense output (channels-first, flat HW)
    # ypad_ref: (H+2, W+2, C2) f32     VMEM scratch: intermediate with zero halo

    def im2col(src, c):
        # 3x3 'same' conv -> one (H*W, 9*c) patch matrix so the whole conv is a
        # single K=9*c MXU matmul instead of nine under-filled K=c matmuls.
        taps = [src[dh:dh + H, dw:dw + W, :].reshape(H * W, c)
                for dh in range(3) for dw in range(3)]
        return jnp.concatenate(taps, axis=-1)

    x = x_ref[0]                                                    # (H+2, W+2, C1)

    # ---- Conv block 1: 3x3 conv (single bf16 MXU matmul) + BN + ReLU --------
    p1 = im2col(x, C1).astype(jnp.bfloat16)                         # (H*W, 9*C1)
    acc1 = jnp.dot(p1, w1_ref[...], preferred_element_type=jnp.float32)
    y1 = jnp.maximum(acc1 * s1_ref[...] + b1_ref[...], 0.0)         # (H*W, C2) f32

    # Stage the intermediate activation in VMEM with a zero halo for the second
    # conv -- no HBM round trip between the two conv blocks.
    ypad_ref[...] = jnp.zeros_like(ypad_ref)
    ypad_ref[1:H + 1, 1:W + 1, :] = y1.reshape(H, W, C2)

    # ---- Conv block 2: 3x3 conv (single bf16 MXU matmul) + BN + ReLU --------
    p2 = im2col(ypad_ref[...], C2).astype(jnp.bfloat16)             # (H*W, 9*C2)
    acc2 = jnp.dot(p2, w2_ref[...], preferred_element_type=jnp.float32)
    y2 = jnp.maximum(acc2 * s2_ref[...] + b2_ref[...], 0.0)         # (H*W, C2) f32

    # Lane-dense store: put the long spatial axis (H*W) on the 128-lane axis
    # instead of the C2(=8)-wide channel axis (unmasked vst), and this layout is
    # already NCHW so no wrapper transpose is needed afterwards.
    # (Switching the output to bf16 is a one-line change of o_ref's dtype.)
    o_ref[0] = jnp.transpose(y2).astype(o_ref.dtype)                # (C2, H*W)


# ----------------------------------------------------------------------------
# Decoder forward (public API keeps PyTorch NCHW convention)
# ----------------------------------------------------------------------------
def decoder_forward(params, x1_nchw, x2_nchw=None):
    # Input prep (one small XLA fusion producing the single kernel input):
    # NCHW->NHWC, nearest-2x upsample, skip concat, 1-px zero halo.
    x1 = jnp.transpose(x1_nchw, (0, 2, 3, 1))
    x1_up = jnp.repeat(jnp.repeat(x1, 2, axis=1), 2, axis=2)        # mode='nearest'
    if x2_nchw is not None:
        x2 = jnp.transpose(x2_nchw, (0, 2, 3, 1))
        x = jnp.concatenate([x2, x1_up], axis=-1)                   # cat([x2, x1_up], dim=1)
    else:
        x = x1_up
    xpad = jnp.pad(x, ((0, 0), (1, 1), (1, 1), (0, 0))).astype(jnp.float32)

    N, Hp, Wp, C1 = xpad.shape
    H, W = Hp - 2, Wp - 2
    C2 = params["w1"].shape[-1]

    # im2col weight layout + bf16 MXU operands (f32 accumulate inside the kernel).
    w1i = params["w1"].reshape(9 * C1, C2).astype(jnp.bfloat16)
    w2i = params["w2"].reshape(9 * C2, C2).astype(jnp.bfloat16)

    kernel = functools.partial(_decoder_fused_kernel, H=H, W=W, C1=C1, C2=C2)
    out = pl.pallas_call(
        kernel,
        out_shape=jax.ShapeDtypeStruct((N, C2, H * W), jnp.float32),
        grid_spec=pltpu.PrefetchScalarGridSpec(
            num_scalar_prefetch=0,
            grid=(N,),
            in_specs=[
                pl.BlockSpec((1, H + 2, W + 2, C1), lambda n: (n, 0, 0, 0)),
                pl.BlockSpec((9 * C1, C2), lambda n: (0, 0)),
                pl.BlockSpec((1, C2), lambda n: (0, 0)),
                pl.BlockSpec((1, C2), lambda n: (0, 0)),
                pl.BlockSpec((9 * C2, C2), lambda n: (0, 0)),
                pl.BlockSpec((1, C2), lambda n: (0, 0)),
                pl.BlockSpec((1, C2), lambda n: (0, 0)),
            ],
            out_specs=pl.BlockSpec((1, C2, H * W), lambda n: (n, 0, 0)),
            scratch_shapes=[pltpu.VMEM((H + 2, W + 2, C2), jnp.float32)],
        ),
        compiler_params=pltpu.CompilerParams(
            dimension_semantics=("parallel",)),
    )(xpad, w1i, params["s1"], params["b1"], w2i, params["s2"], params["b2"])

    # (N, C2, H*W) -> (N, C2, H, W): already channels-first, reshape only.
    return out.reshape(N, C2, H, W)


# ----------------------------------------------------------------------------
# Parameter construction (deterministic, synthetic; eval-mode BN folded)
# ----------------------------------------------------------------------------
def make_decoder_params(key, in_channels, out_channels, skip_channel=True):
    c_in1 = in_channels * 2 if skip_channel else in_channels
    keys = jax.random.split(key, 12)          # fixed: no key reuse between blocks
    eps = 1e-5

    def conv_block(ks, cin, cout):
        kw, kb, kg, kbt, kmu, kvar = ks
        w = jax.random.normal(kw, (3, 3, cin, cout), jnp.float32) * 0.1   # HWIO
        b = jax.random.normal(kb, (cout,), jnp.float32) * 0.1
        gamma = 1.0 + 0.1 * jax.random.normal(kg, (cout,), jnp.float32)
        beta = 0.1 * jax.random.normal(kbt, (cout,), jnp.float32)
        mean = 0.05 * jax.random.normal(kmu, (cout,), jnp.float32)
        var = 1.0 + 0.1 * jax.random.uniform(kvar, (cout,), jnp.float32)
        scale = gamma / jnp.sqrt(var + eps)                  # folded BN scale
        bias = beta + (b - mean) * scale                     # folded conv-bias + BN bias
        return w, scale.reshape(1, cout), bias.reshape(1, cout)

    w1, s1, b1 = conv_block(keys[0:6], c_in1, out_channels)
    w2, s2, b2 = conv_block(keys[6:12], out_channels, out_channels)
    return dict(w1=w1, s1=s1, b1=b1, w2=w2, s2=s2, b2=b2)


# ----------------------------------------------------------------------------
# Pure-JAX reference (mirrors the kernel's bf16-operand / f32-accumulate math)
# ----------------------------------------------------------------------------
def _ref_conv_block(x_nhwc, w_hwio, scale, bias):
    y = jax.lax.conv_general_dilated(
        x_nhwc.astype(jnp.bfloat16), w_hwio.astype(jnp.bfloat16),
        window_strides=(1, 1), padding="SAME",
        dimension_numbers=("NHWC", "HWIO", "NHWC"),
        preferred_element_type=jnp.float32)
    y = y * scale.reshape(1, 1, 1, -1) + bias.reshape(1, 1, 1, -1)
    return jnp.maximum(y, 0.0)


def decoder_reference(params, x1_nchw, x2_nchw=None):
    x1 = jnp.transpose(x1_nchw, (0, 2, 3, 1))
    x1_up = jnp.repeat(jnp.repeat(x1, 2, axis=1), 2, axis=2)
    if x2_nchw is not None:
        x2 = jnp.transpose(x2_nchw, (0, 2, 3, 1))
        x = jnp.concatenate([x2, x1_up], axis=-1)
    else:
        x = x1_up
    x = _ref_conv_block(x, params["w1"], params["s1"], params["b1"])
    x = _ref_conv_block(x, params["w2"], params["s2"], params["b2"])
    return jnp.transpose(x, (0, 3, 1, 2))


if __name__ == "__main__":
    in_channels = 4
    out_channels = 8
    N, H1, W1 = 2, 8, 8          # x1 spatial; x2 / output spatial is 2*H1 x 2*W1

    key = jax.random.PRNGKey(0)
    k_p, k_x1, k_x2 = jax.random.split(key, 3)

    params = make_decoder_params(k_p, in_channels, out_channels, skip_channel=True)
    x1 = jax.random.normal(k_x1, (N, in_channels, H1, W1), jnp.float32)          # (2, 4, 8, 8)
    x2 = jax.random.normal(k_x2, (N, in_channels, 2 * H1, 2 * W1), jnp.float32)  # (2, 4, 16, 16)

    out = jax.block_until_ready(jax.jit(decoder_forward)(params, x1, x2))
    ref = jax.block_until_ready(decoder_reference(params, x1, x2))

    assert out.shape == (N, out_channels, 2 * H1, 2 * W1), out.shape
    max_err = float(jnp.max(jnp.abs(out - ref)))
    assert jnp.allclose(out, ref, atol=2e-3, rtol=2e-3), max_err

    print("KERNEL_OK")
</pallas_src>

<mosaic_0001>
module attributes {stable_mosaic.version = 11 : i64} {
  func.func @_decoder_fused_kernel(%arg0: i32, %arg1: memref<1x18x18x8xf32, #tpu.memory_space<vmem>>, %arg2: memref<72x8xbf16, #tpu.memory_space<vmem>>, %arg3: memref<1x8xf32, #tpu.memory_space<vmem>>, %arg4: memref<1x8xf32, #tpu.memory_space<vmem>>, %arg5: memref<72x8xbf16, #tpu.memory_space<vmem>>, %arg6: memref<1x8xf32, #tpu.memory_space<vmem>>, %arg7: memref<1x8xf32, #tpu.memory_space<vmem>>, %arg8: memref<1x8x256xf32, #tpu.memory_space<vmem>>, %arg9: memref<18x18x8xf32, #tpu.memory_space<vmem>>) attributes {dimension_semantics = [#tpu.dimension_semantics<parallel>], iteration_bounds = array<i64: 2>, scalar_prefetch = 0 : i64, scratch_operands = 1 : i64, tpu.core_type = #tpu.core_type<tc>, window_params = [{transform_indices = @transform_0, window_bounds = array<i64: 1, 18, 18, 8>}, {pipeline_mode = #tpu.pipeline_mode<synchronous>, transform_indices = @transform_1, window_bounds = array<i64: 72, 8>}, {pipeline_mode = #tpu.pipeline_mode<synchronous>, transform_indices = @transform_2, window_bounds = array<i64: 1, 8>}, {pipeline_mode = #tpu.pipeline_mode<synchronous>, transform_indices = @transform_3, window_bounds = array<i64: 1, 8>}, {pipeline_mode = #tpu.pipeline_mode<synchronous>, transform_indices = @transform_4, window_bounds = array<i64: 72, 8>}, {pipeline_mode = #tpu.pipeline_mode<synchronous>, transform_indices = @transform_5, window_bounds = array<i64: 1, 8>}, {pipeline_mode = #tpu.pipeline_mode<synchronous>, transform_indices = @transform_6, window_bounds = array<i64: 1, 8>}, {transform_indices = @transform_7, window_bounds = array<i64: 1, 8, 256>}]} {
    %c0 = arith.constant 0 : index
    %c0_0 = arith.constant 0 : index
    %c0_1 = arith.constant 0 : index
    %c0_2 = arith.constant 0 : index
    %0 = vector.load %arg1[%c0, %c0_0, %c0_1, %c0_2] : memref<1x18x18x8xf32, #tpu.memory_space<vmem>>, vector<1x18x18x8xf32>
    %1 = vector.shape_cast %0 : vector<1x18x18x8xf32> to vector<18x18x8xf32>
    %2 = vector.extract_strided_slice %1 {offsets = [0, 0, 0], sizes = [16, 16, 8], strides = [1, 1, 1]} : vector<18x18x8xf32> to vector<16x16x8xf32>
    %3 = vector.shape_cast %2 : vector<16x16x8xf32> to vector<256x8xf32>
    %4 = vector.extract_strided_slice %1 {offsets = [0, 1, 0], sizes = [16, 16, 8], strides = [1, 1, 1]} : vector<18x18x8xf32> to vector<16x16x8xf32>
    %5 = vector.shape_cast %4 : vector<16x16x8xf32> to vector<256x8xf32>
    %6 = vector.extract_strided_slice %1 {offsets = [0, 2, 0], sizes = [16, 16, 8], strides = [1, 1, 1]} : vector<18x18x8xf32> to vector<16x16x8xf32>
    %7 = vector.shape_cast %6 : vector<16x16x8xf32> to vector<256x8xf32>
    %8 = vector.extract_strided_slice %1 {offsets = [1, 0, 0], sizes = [16, 16, 8], strides = [1, 1, 1]} : vector<18x18x8xf32> to vector<16x16x8xf32>
    %9 = vector.shape_cast %8 : vector<16x16x8xf32> to vector<256x8xf32>
    %10 = vector.extract_strided_slice %1 {offsets = [1, 1, 0], sizes = [16, 16, 8], strides = [1, 1, 1]} : vector<18x18x8xf32> to vector<16x16x8xf32>
    %11 = vector.shape_cast %10 : vector<16x16x8xf32> to vector<256x8xf32>
    %12 = vector.extract_strided_slice %1 {offsets = [1, 2, 0], sizes = [16, 16, 8], strides = [1, 1, 1]} : vector<18x18x8xf32> to vector<16x16x8xf32>
    %13 = vector.shape_cast %12 : vector<16x16x8xf32> to vector<256x8xf32>
    %14 = vector.extract_strided_slice %1 {offsets = [2, 0, 0], sizes = [16, 16, 8], strides = [1, 1, 1]} : vector<18x18x8xf32> to vector<16x16x8xf32>
    %15 = vector.shape_cast %14 : vector<16x16x8xf32> to vector<256x8xf32>
    %16 = vector.extract_strided_slice %1 {offsets = [2, 1, 0], sizes = [16, 16, 8], strides = [1, 1, 1]} : vector<18x18x8xf32> to vector<16x16x8xf32>
    %17 = vector.shape_cast %16 : vector<16x16x8xf32> to vector<256x8xf32>
    %18 = vector.extract_strided_slice %1 {offsets = [2, 2, 0], sizes = [16, 16, 8], strides = [1, 1, 1]} : vector<18x18x8xf32> to vector<16x16x8xf32>
    %19 = vector.shape_cast %18 : vector<16x16x8xf32> to vector<256x8xf32>
    %20 = tpu.concatenate %3, %5, %7, %9, %11, %13, %15, %17, %19 in 1 : vector<256x8xf32>, vector<256x8xf32>, vector<256x8xf32>, vector<256x8xf32>, vector<256x8xf32>, vector<256x8xf32>, vector<256x8xf32>, vector<256x8xf32>, vector<256x8xf32> -> vector<256x72xf32>
    %21 = arith.truncf %20 : vector<256x72xf32> to vector<256x72xbf16>
    %c0_3 = arith.constant 0 : index
    %c0_4 = arith.constant 0 : index
    %22 = vector.load %arg2[%c0_3, %c0_4] : memref<72x8xbf16, #tpu.memory_space<vmem>>, vector<72x8xbf16>
    %cst = arith.constant dense<0.000000e+00> : vector<256x8xf32>
    %23 = tpu.matmul %21, %22, %cst {dimension_numbers = #tpu.dot_dimension_numbers<[1], [0], [0], [1], [0, 0, 1, 1], [], []>} : vector<256x72xbf16>, vector<72x8xbf16>, vector<256x8xf32> -> vector<256x8xf32>
    %c0_5 = arith.constant 0 : index
    %c0_6 = arith.constant 0 : index
    %24 = vector.load %arg3[%c0_5, %c0_6] : memref<1x8xf32, #tpu.memory_space<vmem>>, vector<1x8xf32>
    %25 = vector.broadcast %24 : vector<1x8xf32> to vector<256x8xf32>
    %26 = arith.mulf %23, %25 : vector<256x8xf32>
    %c0_7 = arith.constant 0 : index
    %c0_8 = arith.constant 0 : index
    %27 = vector.load %arg4[%c0_7, %c0_8] : memref<1x8xf32, #tpu.memory_space<vmem>>, vector<1x8xf32>
    %28 = vector.broadcast %27 : vector<1x8xf32> to vector<256x8xf32>
    %29 = arith.addf %26, %28 : vector<256x8xf32>
    %cst_9 = arith.constant 0.000000e+00 : f32
    %30 = vector.broadcast %cst_9 : f32 to vector<256x8xf32>
    %31 = arith.maximumf %29, %30 : vector<256x8xf32>
    %cst_10 = arith.constant 0.000000e+00 : f32
    %32 = vector.broadcast %cst_10 : f32 to vector<18x18x8xf32>
    %c0_11 = arith.constant 0 : index
    %c0_12 = arith.constant 0 : index
    %c0_13 = arith.constant 0 : index
    %33 = vector.load %arg9[%c0_11, %c0_12, %c0_13] : memref<18x18x8xf32, #tpu.memory_space<vmem>>, vector<18x18x8xf32>
    tpu.vector_store %arg9[%c0_11, %c0_12, %c0_13], %32 {strides = array<i32>} : memref<18x18x8xf32, #tpu.memory_space<vmem>>, vector<18x18x8xf32>,
    %34 = vector.shape_cast %31 : vector<256x8xf32> to vector<16x16x8xf32>
    %c1 = arith.constant 1 : index
    %c1_14 = arith.constant 1 : index
    %c0_15 = arith.constant 0 : index
    %35 = vector.load %arg9[%c1, %c1_14, %c0_15] : memref<18x18x8xf32, #tpu.memory_space<vmem>>, vector<16x16x8xf32>
    tpu.vector_store %arg9[%c1, %c1_14, %c0_15], %34 {strides = array<i32>} : memref<18x18x8xf32, #tpu.memory_space<vmem>>, vector<16x16x8xf32>,
    %c0_16 = arith.constant 0 : index
    %c0_17 = arith.constant 0 : index
    %c0_18 = arith.constant 0 : index
    %36 = vector.load %arg9[%c0_16, %c0_17, %c0_18] : memref<18x18x8xf32, #tpu.memory_space<vmem>>, vector<18x18x8xf32>
    %37 = vector.extract_strided_slice %36 {offsets = [0, 0, 0], sizes = [16, 16, 8], strides = [1, 1, 1]} : vector<18x18x8xf32> to vector<16x16x8xf32>
    %38 = vector.shape_cast %37 : vector<16x16x8xf32> to vector<256x8xf32>
    %39 = vector.extract_strided_slice %36 {offsets = [0, 1, 0], sizes = [16, 16, 8], strides = [1, 1, 1]} : vector<18x18x8xf32> to vector<16x16x8xf32>
    %40 = vector.shape_cast %39 : vector<16x16x8xf32> to vector<256x8xf32>
    %41 = vector.extract_strided_slice %36 {offsets = [0, 2, 0], sizes = [16, 16, 8], strides = [1, 1, 1]} : vector<18x18x8xf32> to vector<16x16x8xf32>
    %42 = vector.shape_cast %41 : vector<16x16x8xf32> to vector<256x8xf32>
    %43 = vector.extract_strided_slice %36 {offsets = [1, 0, 0], sizes = [16, 16, 8], strides = [1, 1, 1]} : vector<18x18x8xf32> to vector<16x16x8xf32>
    %44 = vector.shape_cast %43 : vector<16x16x8xf32> to vector<256x8xf32>
    %45 = vector.extract_strided_slice %36 {offsets = [1, 1, 0], sizes = [16, 16, 8], strides = [1, 1, 1]} : vector<18x18x8xf32> to vector<16x16x8xf32>
    %46 = vector.shape_cast %45 : vector<16x16x8xf32> to vector<256x8xf32>
    %47 = vector.extract_strided_slice %36 {offsets = [1, 2, 0], sizes = [16, 16, 8], strides = [1, 1, 1]} : vector<18x18x8xf32> to vector<16x16x8xf32>
    %48 = vector.shape_cast %47 : vector<16x16x8xf32> to vector<256x8xf32>
    %49 = vector.extract_strided_slice %36 {offsets = [2, 0, 0], sizes = [16, 16, 8], strides = [1, 1, 1]} : vector<18x18x8xf32> to vector<16x16x8xf32>
    %50 = vector.shape_cast %49 : vector<16x16x8xf32> to vector<256x8xf32>
    %51 = vector.extract_strided_slice %36 {offsets = [2, 1, 0], sizes = [16, 16, 8], strides = [1, 1, 1]} : vector<18x18x8xf32> to vector<16x16x8xf32>
    %52 = vector.shape_cast %51 : vector<16x16x8xf32> to vector<256x8xf32>
    %53 = vector.extract_strided_slice %36 {offsets = [2, 2, 0], sizes = [16, 16, 8], strides = [1, 1, 1]} : vector<18x18x8xf32> to vector<16x16x8xf32>
    %54 = vector.shape_cast %53 : vector<16x16x8xf32> to vector<256x8xf32>
    %55 = tpu.concatenate %38, %40, %42, %44, %46, %48, %50, %52, %54 in 1 : vector<256x8xf32>, vector<256x8xf32>, vector<256x8xf32>, vector<256x8xf32>, vector<256x8xf32>, vector<256x8xf32>, vector<256x8xf32>, vector<256x8xf32>, vector<256x8xf32> -> vector<256x72xf32>
    %56 = arith.truncf %55 : vector<256x72xf32> to vector<256x72xbf16>
    %c0_19 = arith.constant 0 : index
    %c0_20 = arith.constant 0 : index
    %57 = vector.load %arg5[%c0_19, %c0_20] : memref<72x8xbf16, #tpu.memory_space<vmem>>, vector<72x8xbf16>
    %cst_21 = arith.constant dense<0.000000e+00> : vector<256x8xf32>
    %58 = tpu.matmul %56, %57, %cst_21 {dimension_numbers = #tpu.dot_dimension_numbers<[1], [0], [0], [1], [0, 0, 1, 1], [], []>} : vector<256x72xbf16>, vector<72x8xbf16>, vector<256x8xf32> -> vector<256x8xf32>
    %c0_22 = arith.constant 0 : index
    %c0_23 = arith.constant 0 : index
    %59 = vector.load %arg6[%c0_22, %c0_23] : memref<1x8xf32, #tpu.memory_space<vmem>>, vector<1x8xf32>
    %60 = vector.broadcast %59 : vector<1x8xf32> to vector<256x8xf32>
    %61 = arith.mulf %58, %60 : vector<256x8xf32>
    %c0_24 = arith.constant 0 : index
    %c0_25 = arith.constant 0 : index
    %62 = vector.load %arg7[%c0_24, %c0_25] : memref<1x8xf32, #tpu.memory_space<vmem>>, vector<1x8xf32>
    %63 = vector.broadcast %62 : vector<1x8xf32> to vector<256x8xf32>
    %64 = arith.addf %61, %63 : vector<256x8xf32>
    %cst_26 = arith.constant 0.000000e+00 : f32
    %65 = vector.broadcast %cst_26 : f32 to vector<256x8xf32>
    %66 = arith.maximumf %64, %65 : vector<256x8xf32>
    %67 = tpu.transpose %66, [1, 0] : vector<256x8xf32> -> vector<8x256xf32>
    %c0_27 = arith.constant 0 : index
    %c0_28 = arith.constant 0 : index
    %c0_29 = arith.constant 0 : index
    %68 = vector.load %arg8[%c0_27, %c0_28, %c0_29] : memref<1x8x256xf32, #tpu.memory_space<vmem>>, vector<1x8x256xf32>
    %69 = vector.shape_cast %68 : vector<1x8x256xf32> to vector<8x256xf32>
    %70 = vector.shape_cast %67 : vector<8x256xf32> to vector<1x8x256xf32>
    tpu.vector_store %arg8[%c0_27, %c0_28, %c0_29], %70 {strides = array<i32>} : memref<1x8x256xf32, #tpu.memory_space<vmem>>, vector<1x8x256xf32>,
    return
  }
  func.func @transform_0(%arg0: i32) -> (i32, i32, i32, i32) {
    %c0_i32 = arith.constant 0 : i32
    %c0_i32_0 = arith.constant 0 : i32
    %c0_i32_1 = arith.constant 0 : i32
    %c0_i32_2 = arith.constant 0 : i32
    return %arg0, %c0_i32, %c0_i32_0, %c0_i32_1 : i32, i32, i32, i32
  }
  func.func @transform_1(%arg0: i32) -> (i32, i32) {
    %c0_i32 = arith.constant 0 : i32
    %c0_i32_0 = arith.constant 0 : i32
    %c0_i32_1 = arith.constant 0 : i32
    return %c0_i32, %c0_i32_0 : i32, i32
  }
  func.func @transform_2(%arg0: i32) -> (i32, i32) {
    %c0_i32 = arith.constant 0 : i32
    %c0_i32_0 = arith.constant 0 : i32
    %c0_i32_1 = arith.constant 0 : i32
    return %c0_i32, %c0_i32_0 : i32, i32
  }
  func.func @transform_3(%arg0: i32) -> (i32, i32) {
    %c0_i32 = arith.constant 0 : i32
    %c0_i32_0 = arith.constant 0 : i32
    %c0_i32_1 = arith.constant 0 : i32
    return %c0_i32, %c0_i32_0 : i32, i32
  }
  func.func @transform_4(%arg0: i32) -> (i32, i32) {
    %c0_i32 = arith.constant 0 : i32
    %c0_i32_0 = arith.constant 0 : i32
    %c0_i32_1 = arith.constant 0 : i32
    return %c0_i32, %c0_i32_0 : i32, i32
  }
  func.func @transform_5(%arg0: i32) -> (i32, i32) {
    %c0_i32 = arith.constant 0 : i32
    %c0_i32_0 = arith.constant 0 : i32
    %c0_i32_1 = arith.constant 0 : i32
    return %c0_i32, %c0_i32_0 : i32, i32
  }
  func.func @transform_6(%arg0: i32) -> (i32, i32) {
    %c0_i32 = arith.constant 0 : i32
    %c0_i32_0 = arith.constant 0 : i32
    %c0_i32_1 = arith.constant 0 : i32
    return %c0_i32, %c0_i32_0 : i32, i32
  }
  func.func @transform_7(%arg0: i32) -> (i32, i32, i32) {
    %c0_i32 = arith.constant 0 : i32
    %c0_i32_0 = arith.constant 0 : i32
    %c0_i32_1 = arith.constant 0 : i32
    return %arg0, %c0_i32, %c0_i32_0 : i32, i32, i32
  }
}

</mosaic_0001>

<bundles_post_ra>
// kernel: decoder_forward.1
= control target key start
LH: loop header
LB: loop body
LE: loop exit
PB: predicated region body
PF: predicated region fallthrough
CT: control target
= control target key end

     0   :  { %s5477_s24 = smov 0   ;;  %s8627_s0 = inlined_call_operand.vmem [shape: f32[2,18,18,8], index: 0, kind: input, shape index: {}]   ;;  %s8628_s1 = inlined_call_operand.vmem [shape: bf16[72,8], index: 1, kind: input, shape index: {}]   ;;  %s8629_s2 = inlined_call_operand.vmem [shape: f32[1,8], index: 2, kind: input, shape index: {}]   ;;  %s8630_s3 = inlined_call_operand.vmem [shape: f32[1,8], index: 3, kind: input, shape index: {}]   ;;  %s8631_s4 = inlined_call_operand.vmem [shape: bf16[72,8], index: 4, kind: input, shape index: {}]   ;;  %s8632_s5 = inlined_call_operand.vmem [shape: f32[1,8], index: 5, kind: input, shape index: {}]   ;;  %s8633_s6 = inlined_call_operand.vmem [shape: f32[1,8], index: 6, kind: input, shape index: {}]   ;;  %s8634_s7 = inlined_call_operand.vmem [shape: f32[2,8,256], index: 7, kind: output, shape index: {}]  }
   0x1 LB: > { %s3873_s25 = sadd.s32 4294967295, %s5426_s24   ;;  %p3877_p0 = scmp.ge.s32.totalorder %s5426_s24, 1  ;;  %s5426_s24 = sphi %s5477_s24, %s17_s24  }
   0x2   : > { %p237_p1 = scmp.lt.s32.totalorder %s5426_s24, 3 }
   0x4   : > { %p238_p2 = pnand %p3877_p0, %p237_p1 }
   0x6   : > { %241 = sbr.rel (%p238_p2) target bundleno = 1264 (0x4f0), region = 48 }
   0xd   : > { %p269_p3 = scmp.lt.s32.totalorder %s3873_s25, 1  ;;  %vm382_vm0 = vcmask 1046528   ;;  %s5428_s30 = smov 8   ;;  %vm463_vm1 = vcmask 1045504   ;;  %vm1703_vm2 = vcmask 1043456   ;;  %vm1338_vm3 = vcmask 64512  }
   0xe   : > { %s5429_s8 = smov 16   ;;  %s5430_s9 = smov 24   ;;  %vm1371_vm4 = vcmask 130048   ;;  %vm1404_vm5 = vcmask 195584   ;;  %vm1437_vm6 = vcmask 261120   ;;  %vm1470_vm7 = vcmask 326656  }
   0xf   : > { %s8932_s25 = smov (!%p269_p3, %s3873_s25), 1  ;;  %s5431_s10 = smov 32   ;;  %vm1503_vm8 = vcmask 392192   ;;  %vm1536_vm9 = vcmask 457728   ;;  %vm1569_vm10 = vcmask 523264   ;;  %vm1654_vm11 = vcmask 588800  }
  0x10   : > { %s4058_s26 = smul.u32 432, %s8932_s25  ;;  %s5432_s11 = smov 40   ;;  %vm1980_vm12 = vcmask 58368  }
  0x11   : > { %s5433_s12 = smov 48   ;;  %s5434_s17 = smov 56  }
  0x12   : > { %s5491_s29 = scalar_lea.vmem %s8627_s0, %s4058_s26  ;;  %s5435_s26 = smov 64  }
  0x13   : > { %v5494_v0 = vld [vmem:[%s5491_s29 + $0x30] sm:$0xff]  ;;  %v5497_v1 = vld [vmem:[%s5491_s29 + $0x38] sm:$0xff]  ;;  %v5500_v2 = vld [vmem:[%s5491_s29 + $0x40] sm:$0x3] }
  0x14   : > { %v393_v3 = vrot.slane %v5494_v0, 1  ;;  %v394_v4 = vrot.slane %v5497_v1, 1  ;;  %v396_v5 = vrot.slane %v5500_v2, 1  ;;  %v5506_v6 = vld [vmem:[%s5491_s29] sm:$0xff]  ;;  %v5509_v7 = vld [vmem:[%s5491_s29 + $0x8] sm:$0xff]  ;;  %v5520_v12 = vld [vmem:[%s5491_s29 + $0x50] sm:$0xff] }
  0x15   : > { %v5512_v8 = vld [vmem:[%s5491_s29 + $0x10] sm:$0x3]  ;;  %v383_v9 = vrot.slane %v5506_v6, 1  ;;  %v384_v10 = vrot.slane %v5509_v7, 1  ;;  %v5517_v11 = vld [vmem:[%s5491_s29 + $0x48] sm:$0xff]  ;;  %v5529_v17 = vld [vmem:[%s5491_s29 + $0x18] sm:$0xff] }
  0x16   : > { %v395_v13 = vsel %vm382_vm0, %v393_v3, %v394_v4  ;;  %v397_v14 = vsel %vm382_vm0, %v394_v4, %v396_v5  ;;  %v386_v15 = vrot.slane %v5512_v8, 1  ;;  %v5526_v16 = vld [vmem:[%s5491_s29 + $0x58] sm:$0x3]  ;;  %8738 = vst [vmem:[#allocation3_spill] sm:$0xff] %v5529_v17  ;;  %v5532_v18 = vld [vmem:[%s5491_s29 + $0x20] sm:$0xff]  ;;  %v398_v21 = vrot.slane %v5517_v11, 1 }
  0x17   : > { %v5534_v19 = vpack.i.bf16 %v397_v14, %v395_v13  ;;  %v385_v20 = vsel %vm382_vm0, %v383_v9, %v384_v10  ;;  %v399_v22 = vrot.slane %v5520_v12, 1  ;;  %v5540_v23 = vld [vmem:[%s5491_s29 + $0x28] sm:$0x3]  ;;  %v5543_v24 = vld [vmem:[%s5491_s29 + $0x78] sm:$0xff]  ;;  %v5546_v25 = vld [vmem:[%s5491_s29 + $0x80] sm:$0xff]  ;;  %v401_v27 = vrot.slane %v5526_v16, 1 }
  0x18   : > { %v387_v26 = vsel %vm382_vm0, %v384_v10, %v386_v15  ;;  %v388_v28 = vrot.slane %v5529_v17, 1  ;;  %v389_v29 = vrot.slane %v5532_v18, 1  ;;  %v5553_v30 = vld [vmem:[%s5491_s29 + $0x88] sm:$0x3]  ;;  %v5556_v31 = vld [vmem:[%s5491_s29 + $0x60] sm:$0xff]  ;;  %v391_v34 = vrot.slane %v5540_v23, 1 }
  0x19   : > { %8739 = vst [vmem:[#allocation4_spill] sm:$0xff] %v5534_v19  ;;  %4087 = vrot.lane.b32.xlu1 %v5534_v19, %s5428_s30  ;;  %v4076_v32 = vpack.i.bf16 %v387_v26, %v385_v20  ;;  %v400_v33 = vsel %vm382_vm0, %v398_v21, %v399_v22  ;;  %v408_v35 = vrot.slane %v5543_v24, 1  ;;  %v5564_v36 = vld [vmem:[%s5491_s29 + $0x68] sm:$0xff]  ;;  %v5567_v37 = vld [vmem:[%s5491_s29 + $0x70] sm:$0x3]  ;;  %v402_v38 = vsel %vm382_vm0, %v399_v22, %v401_v27  ;;  %v5592_v50 = vld [vmem:[%s5491_s29 + $0x98] sm:$0xff] }
  0x1a   : > { %v390_v39 = vsel %vm382_vm0, %v388_v28, %v389_v29  ;;  %v409_v40 = vrot.slane %v5546_v25, 1  ;;  %v411_v41 = vrot.slane %v5553_v30, 1  ;;  %v5574_v42 = vld [vmem:[%s5491_s29 + $0xa8] sm:$0xff]  ;;  %v5577_v43 = vld [vmem:[%s5491_s29 + $0xb0] sm:$0xff]  ;;  %v5580_v44 = vpack.i.bf16 %v402_v38, %v400_v33  ;;  %v5586_v48 = vld [vmem:[%s5491_s29 + $0xb8] sm:$0x3] }
  0x1b   : > { %4077 = vrot.lane.b32.xlu0 %v4076_v32, %s5428_s30  ;;  %v392_v45 = vsel %vm382_vm0, %v389_v29, %v391_v34  ;;  %v403_v46 = vrot.slane %v5556_v31, 1  ;;  %v404_v47 = vrot.slane %v5564_v36, 1  ;;  %v5589_v49 = vld [vmem:[%s5491_s29 + $0x90] sm:$0xff]  ;;  %v406_v54 = vrot.slane %v5567_v37, 1  ;;  %v5600_v55 = vld [vmem:[%s5491_s29 + $0xa0] sm:$0x3] }
  0x1c   : > { %8740 = vst [vmem:[#allocation5_spill] sm:$0xff] %v5580_v44  ;;  %v5594_v51 = vpack.i.bf16 %v392_v45, %v390_v39  ;;  %v410_v52 = vsel %vm382_vm0, %v408_v35, %v409_v40  ;;  %v412_v53 = vsel %vm382_vm0, %v409_v40, %v411_v41  ;;  %v5603_v56 = vld [vmem:[%s5491_s29 + $0xd8] sm:$0xff]  ;;  %v418_v59 = vrot.slane %v5574_v42, 1  ;;  %v5613_v61 = vld [vmem:[%s5491_s29 + $0xe0] sm:$0xff]  ;;  %v5616_v62 = vld [vmem:[%s5491_s29 + $0xe8] sm:$0x3] }
  0x1d   : > { %4092 = vrot.lane.b32.xlu1 %v5580_v44, %s5428_s30  ;;  %v5607_v57 = vpack.i.bf16 %v412_v53, %v410_v52  ;;  %v405_v58 = vsel %vm382_vm0, %v403_v46, %v404_v47  ;;  %v419_v60 = vrot.slane %v5577_v43, 1  ;;  %v407_v63 = vsel %vm382_vm0, %v404_v47, %v406_v54  ;;  %v5623_v9 = vld [vmem:[%s5491_s29 + $0xc0] sm:$0xff]  ;;  %v5626_v10 = vld [vmem:[%s5491_s29 + $0xc8] sm:$0xff]  ;;  %v5636_v21 = vld [vmem:[%s5491_s29 + $0xd0] sm:$0x3] }
  0x1e   : > { %8741 = vst [vmem:[#allocation6_spill] sm:$0xff] %v5594_v51  ;;  %v421_v3 = vrot.slane %v5586_v48, 1  ;;  %v413_v4 = vrot.slane %v5589_v49, 1  ;;  %v414_v5 = vrot.slane %v5592_v50, 1  ;;  %v5630_v13 = vpack.i.bf16 %v407_v63, %v405_v58  ;;  %v5643_v29 = vld [vmem:[%s5491_s29 + $0x108] sm:$0xff]  ;;  %v5646_v32 = vld [vmem:[%s5491_s29 + $0x110] sm:$0xff] }
  0x1f   : > { %8742 = vst [vmem:[#allocation7_spill] sm:$0xff] %v5607_v57  ;;  %4082 = vrot.lane.b32.xlu0 %v5594_v51, %s5428_s30  ;;  %v420_v14 = vsel %vm382_vm0, %v418_v59, %v419_v60  ;;  %v416_v15 = vrot.slane %v5600_v55, 1  ;;  %v428_v20 = vrot.slane %v5603_v56, 1  ;;  %v429_v27 = vrot.slane %v5613_v61, 1  ;;  %v5656_v39 = vld [vmem:[%s5491_s29 + $0x118] sm:$0x3] }
  0x20   : > { %8743 = vst [vmem:[#allocation8_spill] sm:$0xff] %v5630_v13  ;;  %v422_v22 = vsel %vm382_vm0, %v419_v60, %v421_v3  ;;  %v415_v26 = vsel %vm382_vm0, %v413_v4, %v414_v5  ;;  %v431_v28 = vrot.slane %v5616_v62, 1  ;;  %v423_v35 = vrot.slane %v5623_v9, 1  ;;  %v5659_v40 = vld [vmem:[%s5491_s29 + $0xf0] sm:$0xff]  ;;  %v5662_v41 = vld [vmem:[%s5491_s29 + $0xf8] sm:$0xff]  ;;  %v5681_v63 = vld [vmem:[%s5491_s29 + $0x140] sm:$0xff] }
  0x21   : > { %4102 = vrot.lane.b32.xlu1 %v5607_v57, %s5428_s30  ;;  %v5650_v33 = vpack.i.bf16 %v422_v22, %v420_v14  ;;  %v417_v34 = vsel %vm382_vm0, %v414_v5, %v416_v15  ;;  %v424_v38 = vrot.slane %v5626_v10, 1  ;;  %v430_v45 = vsel %vm382_vm0, %v428_v20, %v429_v27  ;;  %v5668_v52 = vld [vmem:[%s5491_s29 + $0x100] sm:$0x3]  ;;  %v5671_v53 = vld [vmem:[%s5491_s29 + $0x138] sm:$0xff]  ;;  %v5684_v3 = vld [vmem:[%s5491_s29 + $0x148] sm:$0x3] }
  0x22   : > { %v432_v46 = vsel %vm382_vm0, %v429_v27, %v431_v28  ;;  %v426_v47 = vrot.slane %v5636_v21, 1  ;;  %v5675_v54 = vpack.i.bf16 %v417_v34, %v415_v26  ;;  %v438_v59 = vrot.slane %v5643_v29, 1  ;;  %8746 = vst [vmem:[#allocation11_spill] sm:$0xff] %v5684_v3  ;;  %v5687_v4 = vld [vmem:[%s5491_s29 + $0x120] sm:$0xff]  ;;  %v5694_v22 = vld [vmem:[%s5491_s29 + $0x128] sm:$0xff] }
  0x23   : > { %8744 = vst [vmem:[#allocation9_spill] sm:$0xff] %v5650_v33  ;;  %4097 = vrot.lane.b32.xlu0 %v5630_v13, %s5428_s30  ;;  %v425_v58 = vsel %vm382_vm0, %v423_v35, %v424_v38  ;;  %v439_v60 = vrot.slane %v5646_v32, 1  ;;  %8747 = vst [vmem:[#allocation12_spill] sm:$0xff] %v5687_v4  ;;  %v441_v14 = vrot.slane %v5656_v39, 1  ;;  %v433_v15 = vrot.slane %v5659_v40, 1 }
  0x24   : > { %8745 = vst [vmem:[#allocation10_spill] sm:$0xff] %v5675_v54  ;;  %v427_v5 = vsel %vm382_vm0, %v424_v38, %v426_v47  ;;  %v434_v20 = vrot.slane %v5662_v41, 1  ;;  %8748 = vst [vmem:[#allocation13_spill] sm:$0xff] %v5694_v22  ;;  %v5697_v26 = vld [vmem:[%s5491_s29 + $0x130] sm:$0x3]  ;;  %v5701_v27 = vpack.i.bf16 %v432_v46, %v430_v45  ;;  %v436_v34 = vrot.slane %v5668_v52, 1 }
  0x25   : > { %8749 = vst [vmem:[#allocation14_spill] sm:$0xff] %v5697_v26  ;;  %4112 = vrot.lane.b32.xlu1 %v5650_v33, %s5428_s30  ;;  %v440_v28 = vsel %vm382_vm0, %v438_v59, %v439_v60  ;;  %v448_v35 = vrot.slane %v5671_v53, 1  ;;  %v5707_v38 = vld [vmem:[%s5491_s29 + $0x168] sm:$0xff]  ;;  %v5710_v47 = vld [vmem:[%s5491_s29 + $0x170] sm:$0xff]  ;;  %v442_v57 = vsel %vm382_vm0, %v439_v60, %v441_v14  ;;  %v449_v45 = vrot.slane %v5681_v63, 1 }
  0x26   : > { %8750 = vst [vmem:[#allocation15_spill] sm:$0xff] %v5701_v27  ;;  %v435_v33 = vsel %vm382_vm0, %v433_v15, %v434_v20  ;;  %v451_v46 = vrot.slane %v5684_v3, 1  ;;  %v5718_v59 = vpack.i.bf16 %v427_v5, %v425_v58  ;;  %v437_v44 = vsel %vm382_vm0, %v434_v20, %v436_v34  ;;  %v5724_v19 = vld [vmem:[%s5491_s29 + $0x178] sm:$0x3]  ;;  %v5728_v14 = vld [vmem:[%s5491_s29 + $0x150] sm:$0xff] }
  0x27   : > { %4107 = vrot.lane.b32.xlu0 %v5675_v54, %s5428_s30  ;;  %v443_v13 = vrot.slane %v5687_v4, 1  ;;  %v444_v51 = vrot.slane %v5694_v22, 1  ;;  %v446_v60 = vrot.slane %v5697_v26, 1  ;;  %v5731_v15 = vld [vmem:[%s5491_s29 + $0x158] sm:$0xff]  ;;  %v5734_v3 = vld [vmem:[%s5491_s29 + $0x160] sm:$0x3]  ;;  %v5738_v58 = vpack.i.bf16 %v442_v57, %v440_v28 }
  0x28   : > { %8751 = vst [vmem:[#allocation16_spill] sm:$0xff] %v5718_v59  ;;  %v5740_v5 = vpack.i.bf16 %v437_v44, %v435_v33  ;;  %v450_v20 = vsel %vm382_vm0, %v448_v35, %v449_v45  ;;  %v452_v34 = vsel %vm382_vm0, %v449_v45, %v451_v46  ;;  %v458_v26 = vrot.slane %v5707_v38, 1 }
  0x29   : > { %4122 = vrot.lane.b32.xlu1 %v5701_v27, %s5428_s30  ;;  %8752 = vst [vmem:[#allocation17_spill] sm:$0xff] %v5738_v58  ;;  %v445_v54 = vsel %vm382_vm0, %v443_v13, %v444_v51  ;;  %v459_v22 = vrot.slane %v5710_v47, 1  ;;  %v461_v4 = vrot.slane %v5724_v19, 1  ;;  %v447_v57 = vsel %vm382_vm0, %v444_v51, %v446_v60 }
  0x2a   : > { %v453_v44 = vrot.slane %v5728_v14, 1  ;;  %v454_v33 = vrot.slane %v5731_v15, 1  ;;  %v456_v28 = vrot.slane %v5734_v3, 1  ;;  %v469_v35 = vrot.slane %v5529_v17, 2 }
  0x2b   : > { %4117 = vrot.lane.b32.xlu0 %v5718_v59, %s5428_s30  ;;  %v470_v13 = vrot.slane %v5532_v18, 2  ;;  %v472_v45 = vrot.slane %v5540_v23, 2  ;;  %v477_v46 = vrot.slane %v5500_v2, 2  ;;  %v5760_v27 = vpack.i.bf16 %v452_v34, %v450_v20 }
  0x2c   : > { %v467_v51 = vrot.slane %v5512_v8, 2  ;;  %v5763_v60 = vpack.i.bf16 %v447_v57, %v445_v54  ;;  %v460_v59 = vsel %vm382_vm0, %v458_v26, %v459_v22  ;;  %v462_v17 = vsel %vm382_vm0, %v459_v22, %v461_v4 }
  0x2d   : > { %4132 = vrot.lane.b32.xlu1 %v5738_v58, %s5428_s30  ;;  %v455_v23 = vsel %vm382_vm0, %v453_v44, %v454_v33  ;;  %v457_v2 = vsel %vm382_vm0, %v454_v33, %v456_v28  ;;  %v464_v58 = vrot.slane %v5506_v6, 2  ;;  %v465_v20 = vrot.slane %v5509_v7, 2 }
  0x2e   : > { %v471_v34 = vsel %vm463_vm1, %v469_v35, %v470_v13  ;;  %v473_v8 = vsel %vm463_vm1, %v470_v13, %v472_v45  ;;  %v479_v54 = vrot.slane %v5517_v11, 2  ;;  %v480_v26 = vrot.slane %v5520_v12, 2 }
  0x2f   : > { %4127 = vrot.lane.b32.xlu0 %v5740_v5, %s5428_s30  ;;  %v5779_v4 = vpack.i.bf16 %v462_v17, %v460_v59  ;;  %v482_v22 = vrot.slane %v5526_v16, 2  ;;  %v474_v57 = vrot.slane %v5494_v0, 2  ;;  %v475_v6 = vrot.slane %v5497_v1, 2 }
  0x30   : > { %v5786_v7 = vpack.i.bf16 %v457_v2, %v455_v23  ;;  %v5788_v44 = vpack.i.bf16 %v473_v8, %v471_v34  ;;  %v466_v33 = vsel %vm463_vm1, %v464_v58, %v465_v20  ;;  %v468_v28 = vsel %vm463_vm1, %v465_v20, %v467_v51 }
  0x31   : > { %4142 = vrot.lane.b32.xlu1 %v5760_v27, %s5428_s30  ;;  %v481_v17 = vsel %vm463_vm1, %v479_v54, %v480_v26  ;;  %v489_v59 = vrot.slane %v5543_v24, 2  ;;  %v490_v16 = vrot.slane %v5546_v25, 2  ;;  %v483_v35 = vsel %vm463_vm1, %v480_v26, %v482_v22 }
  0x32   : > { %v476_v13 = vsel %vm463_vm1, %v474_v57, %v475_v6  ;;  %v478_v45 = vsel %vm463_vm1, %v475_v6, %v477_v46  ;;  %v492_v23 = vrot.slane %v5553_v30, 2  ;;  %v484_v58 = vrot.slane %v5556_v31, 2 }
  0x33   : > { %4137 = vrot.lane.b32.xlu0 %v5763_v60, %s5428_s30  ;;  %v485_v51 = vrot.slane %v5564_v36, 2  ;;  %v487_v2 = vrot.slane %v5567_v37, 2  ;;  %v4156_v20 = vpack.i.bf16 %v468_v28, %v466_v33  ;;  %v499_v34 = vrot.slane %v5574_v42, 2 }
  0x34   : > { %v500_v8 = vrot.slane %v5577_v43, 2  ;;  %v502_v54 = vrot.slane %v5586_v48, 2  ;;  %v5809_v26 = vpack.i.bf16 %v483_v35, %v481_v17  ;;  %v5811_v46 = vpack.i.bf16 %v478_v45, %v476_v13 }
  0x35   : > { %4152 = vrot.lane.b32.xlu1 %v5779_v4, %s5428_s30  ;;  %v491_v30 = vsel %vm463_vm1, %v489_v59, %v490_v16  ;;  %v493_v37 = vsel %vm463_vm1, %v490_v16, %v492_v23  ;;  %v494_v22 = vrot.slane %v5589_v49, 2  ;;  %v495_v57 = vrot.slane %v5592_v50, 2 }
  0x36   : > { %v486_v6 = vsel %vm463_vm1, %v484_v58, %v485_v51  ;;  %v488_v48 = vsel %vm463_vm1, %v485_v51, %v487_v2  ;;  %v497_v33 = vrot.slane %v5600_v55, 2  ;;  %v509_v28 = vrot.slane %v5603_v56, 2 }
  0x37   : > { %4147 = vrot.lane.b32.xlu0 %v5786_v7, %s5428_s30  ;;  %v501_v17 = vsel %vm463_vm1, %v499_v34, %v500_v8  ;;  %v503_v59 = vsel %vm463_vm1, %v500_v8, %v502_v54  ;;  %v510_v16 = vrot.slane %v5613_v61, 2  ;;  %v512_v35 = vrot.slane %v5616_v62, 2 }
  0x38   : > { %v5830_v13 = vpack.i.bf16 %v493_v37, %v491_v30  ;;  %v5832_v45 = vpack.i.bf16 %v488_v48, %v486_v6  ;;  %v496_v55 = vsel %vm463_vm1, %v494_v22, %v495_v57  ;;  %v5835_v23 = vpack.i.bf16 %v503_v59, %v501_v17 }
  0x39   : > { %4162 = vrot.lane.b32.xlu1 %v5788_v44, %s5429_s8  ;;  %v498_v58 = vsel %vm463_vm1, %v495_v57, %v497_v33  ;;  %v504_v51 = vrot.slane %v5623_v9, 2  ;;  %v505_v2 = vrot.slane %v5626_v10, 2  ;;  %v511_v62 = vsel %vm463_vm1, %v509_v28, %v510_v16 }
  0x3a   : > { %8753 = vst [vmem:[#allocation18_spill] sm:$0xff] %v5830_v13  ;;  %8754 = vst [vmem:[#allocation19_spill] sm:$0xff] %v5835_v23  ;;  %v507_v34 = vrot.slane %v5636_v21, 2  ;;  %v519_v8 = vrot.slane %v5643_v29, 2  ;;  %v520_v54 = vrot.slane %v5646_v32, 2  ;;  %v522_v30 = vrot.slane %v5656_v39, 2 }
  0x3b   : > { %4157 = vrot.lane.b32.xlu0 %v4156_v20, %s5429_s8  ;;  %v513_v20 = vsel %vm463_vm1, %v510_v16, %v512_v35  ;;  %v514_v37 = vrot.slane %v5659_v40, 2  ;;  %v515_v22 = vrot.slane %v5662_v41, 2  ;;  %v517_v57 = vrot.slane %v5668_v52, 2  ;;  %v8755_v21 = vld [vmem:[#allocation11_spill] sm:$0xff] }
  0x3c   : > { %v529_v6 = vrot.slane %v5671_v53, 2  ;;  %v530_v48 = vrot.slane %v5681_v63, 2  ;;  %v532_v33 = vrot.slane %v8755_v21, 2  ;;  %v5858_v28 = vpack.i.bf16 %v498_v58, %v496_v55 }
  0x3d   : > { %4172 = vrot.lane.b32.xlu1 %v5809_v26, %s5429_s8  ;;  %v5860_v39 = vpack.i.bf16 %v513_v20, %v511_v62  ;;  %v506_v17 = vsel %vm463_vm1, %v504_v51, %v505_v2  ;;  %v508_v59 = vsel %vm463_vm1, %v505_v2, %v507_v34  ;;  %v521_v16 = vsel %vm463_vm1, %v519_v8, %v520_v54  ;;  %v8757_v62 = vld [vmem:[#allocation12_spill] sm:$0xff]  ;;  %v8758_v20 = vld [vmem:[#allocation13_spill] sm:$0xff]  ;;  %v8759_v34 = vld [vmem:[#allocation14_spill] sm:$0xff] }
  0x3e   : > { %v523_v52 = vsel %vm463_vm1, %v520_v54, %v522_v30  ;;  %v516_v35 = vsel %vm463_vm1, %v514_v37, %v515_v22  ;;  %v518_v21 = vsel %vm463_vm1, %v515_v22, %v517_v57  ;;  %v531_v55 = vsel %vm463_vm1, %v529_v6, %v530_v48 }
  0x3f   : > { %4167 = vrot.lane.b32.xlu0 %v5811_v46, %s5429_s8  ;;  %8756 = vst [vmem:[#allocation11_spill] sm:$0xff] %v5860_v39  ;;  %v533_v58 = vsel %vm463_vm1, %v530_v48, %v532_v33  ;;  %v524_v51 = vrot.slane %v8757_v62, 2  ;;  %v525_v2 = vrot.slane %v8758_v20, 2  ;;  %v527_v8 = vrot.slane %v8759_v34, 2  ;;  %v330_v33 = vld [vmem:[%s5491_s29 + $0x190] sm:$0x3] }
  0x40   : > { %v539_v54 = vrot.slane %v5707_v38, 2  ;;  %v540_v30 = vrot.slane %v5710_v47, 2  ;;  %v5879_v37 = vpack.i.bf16 %v508_v59, %v506_v17  ;;  %v5881_v22 = vpack.i.bf16 %v523_v52, %v521_v16  ;;  %v328_v17 = vld [vmem:[%s5491_s29 + $0x180] sm:$0xff]  ;;  %v329_v52 = vld [vmem:[%s5491_s29 + $0x188] sm:$0xff] }
  0x41   : > { %4182 = vrot.lane.b32.xlu1 %v5830_v13, %s5429_s8  ;;  %v542_v57 = vrot.slane %v5724_v19, 2  ;;  %v5884_v6 = vpack.i.bf16 %v518_v21, %v516_v35  ;;  %v5886_v48 = vpack.i.bf16 %v533_v58, %v531_v55  ;;  %v526_v34 = vsel %vm463_vm1, %v524_v51, %v525_v2 }
  0x42   : > { %8760 = vst [vmem:[#allocation12_spill] sm:$0xff] %v5881_v22  ;;  %v541_v13 = vsel %vm463_vm1, %v539_v54, %v540_v30  ;;  %v534_v59 = vrot.slane %v5728_v14, 2  ;;  %v535_v16 = vrot.slane %v5731_v15, 2  ;;  %v547_v35 = vrot.slane %v328_v17, 1 }
  0x43   : > { %4177 = vrot.lane.b32.xlu0 %v5832_v45, %s5429_s8  ;;  %v543_v19 = vsel %vm463_vm1, %v540_v30, %v542_v57  ;;  %v537_v21 = vrot.slane %v5734_v3, 2  ;;  %v548_v55 = vrot.slane %v329_v52, 1  ;;  %v550_v58 = vrot.slane %v330_v33, 1 }
  0x44   : > { %v536_v30 = vsel %vm463_vm1, %v534_v59, %v535_v16  ;;  %v5916_v57 = vpack.i.bf16 %v543_v19, %v541_v13  ;;  %v5928_v59 = vpack.i.bf16 %v5497_v1, %v5494_v0  ;;  %v5947_v0 = vpack.i.bf16 %v5520_v12, %v5517_v11 }
  0x45   : > { %4192 = vrot.lane.b32.xlu1 %v5835_v23, %s5429_s8  ;;  %v528_v23 = vsel %vm463_vm1, %v525_v2, %v527_v8  ;;  %v549_v51 = vsel %vm382_vm0, %v547_v35, %v548_v55  ;;  %v551_v2 = vsel %vm382_vm0, %v548_v55, %v550_v58  ;;  %v538_v3 = vsel %vm463_vm1, %v535_v16, %v537_v21 }
  0x46   : > { %v5908_v8 = vpack.i.bf16 %v528_v23, %v526_v34  ;;  %v5910_v54 = vpack.i.bf16 %v551_v2, %v549_v51  ;;  %v553_v35 = vrot.slane %v329_v52, 2  ;;  %v5920_v55 = vpack.i.bf16 %v538_v3, %v536_v30  ;;  %v8772_v51 = vld [vmem:[#allocation18_spill] sm:$0xff]  ;;  %v8773_v30 = vld [vmem:[#allocation19_spill] sm:$0xff] }
  0x47   : > { %4187 = vrot.lane.b32.xlu0 %v5858_v28, %s5429_s8  ;;  %v5936_v16 = vpack.i.bf16 %v329_v52, %v328_v17  ;;  %v5953_v1 = vpack.i.bf16 %v5592_v50, %v5589_v49  ;;  %v5965_v11 = vpack.i.bf16 %v5626_v10, %v5623_v9  ;;  %v5971_v12 = vpack.i.bf16 %v5577_v43, %v5574_v42  ;;  %v8762_v50 = vld [vmem:[#allocation4_spill] sm:$0xff]  ;;  %v8765_v9 = vld [vmem:[#allocation5_spill] sm:$0xff]  ;;  %v8766_v10 = vld [vmem:[#allocation10_spill] sm:$0xff] }
  0x48   : > { %v6001_v42 = vpack.i.bf16 %v5731_v15, %v5728_v14  ;;  %v6007_v43 = vpack.i.bf16 %v5681_v63, %v5671_v53  ;;  %v6015_v49 = vpack.i.bf16 %v5710_v47, %v5707_v38  ;;  %v8771_v38 = vld [vmem:[#allocation17_spill] sm:$0xff] }
  0x49   : > { %4202 = vrot.lane.b32.xlu1 %v5860_v39, %s5429_s8  ;;  %v555_v39 = vrot.slane %v330_v33, 2  ;;  %v8761_v33 = vld [vmem:[#allocation3_spill] sm:$0xff] }
  0x4a   : > { %v4236_v19 = vpack.i.bf16 %v5532_v18, %v8761_v33  ;;  %v5959_v18 = vpack.i.bf16 %v5546_v25, %v5543_v24  ;;  %v5977_v24 = vpack.i.bf16 %v5662_v41, %v5659_v40  ;;  %v5983_v25 = vpack.i.bf16 %v5613_v61, %v5603_v56  ;;  %v8763_v56 = vld [vmem:[#allocation6_spill] sm:$0xff]  ;;  %v8764_v61 = vld [vmem:[#allocation8_spill] sm:$0xff]  ;;  %v8769_v40 = vld [vmem:[#allocation9_spill] sm:$0xff] }
  0x4b   : > { %4197 = vrot.lane.b32.xlu0 %v5879_v37, %s5429_s8  ;;  %v556_v34 = vsel %vm463_vm1, %v553_v35, %v555_v39  ;;  %v5942_v39 = vpack.i.bf16 %v5564_v36, %v5556_v31  ;;  %v5989_v31 = vpack.i.bf16 %v8758_v20, %v8757_v62  ;;  %v5995_v36 = vpack.i.bf16 %v5646_v32, %v5643_v29  ;;  %v8767_v29 = vld [vmem:[#allocation7_spill] sm:$0xff]  ;;  %v8768_v32 = vld [vmem:[#allocation16_spill] sm:$0xff] }
  0x4c   : > { %v8770_v41 = vld [vmem:[#allocation15_spill] sm:$0xff] }
  0x4d   : > { %4212 = vrot.lane.b32.xlu1 %v5881_v22, %s5429_s8  ;;  %v552_v22 = vrot.slane %v328_v17, 2 }
  0x4f   : > { %4207 = vrot.lane.b32.xlu0 %v5884_v6, %s5429_s8  ;;  %v554_v23 = vsel %vm463_vm1, %v552_v22, %v553_v35 }
  0x50   : > { %v5930_v13 = vpack.i.bf16 %v556_v34, %v554_v23  ;;  %v8776_v23 = vld [vmem:[#allocation11_spill] sm:$0xff] }
  0x51   : > { %4222 = vrot.lane.b32.xlu1 %v5886_v48, %s5429_s8 }
  0x53   : > { %4217 = vrot.lane.b32.xlu0 %v5908_v8, %s5429_s8 }
  0x55   : > { %4232 = vrot.lane.b32.xlu1 %v5916_v57, %s5429_s8 }
  0x57   : > { %4227 = vrot.lane.b32.xlu0 %v5920_v55, %s5429_s8 }
  0x59   : > { %4242 = vrot.lane.b32.xlu1 %v5928_v59, %s5430_s9 }
  0x5b   : > { %4237 = vrot.lane.b32.xlu0 %v4236_v19, %s5430_s9  ;;  %v8779_v19 = vld [vmem:[#allocation12_spill] sm:$0xff] }
  0x5d   : > { %4252 = vrot.lane.b32.xlu1 %v5942_v39, %s5430_s9 }
  0x5f   : > { %4247 = vrot.lane.b32.xlu0 %v5947_v0, %s5430_s9 }
  0x61   : > { %4262 = vrot.lane.b32.xlu1 %v5953_v1, %s5430_s9 }
  0x63   : > { %4257 = vrot.lane.b32.xlu0 %v5959_v18, %s5430_s9 }
  0x65   : > { %4272 = vrot.lane.b32.xlu1 %v5965_v11, %s5430_s9 }
  0x67   : > { %4267 = vrot.lane.b32.xlu0 %v5971_v12, %s5430_s9 }
  0x69   : > { %4282 = vrot.lane.b32.xlu1 %v5977_v24, %s5430_s9 }
  0x6b   : > { %4277 = vrot.lane.b32.xlu0 %v5983_v25, %s5430_s9 }
  0x6d   : > { %4292 = vrot.lane.b32.xlu1 %v5989_v31, %s5430_s9 }
  0x6f   : > { %4287 = vrot.lane.b32.xlu0 %v5995_v36, %s5430_s9 }
  0x71   : > { %4302 = vrot.lane.b32.xlu1 %v6001_v42, %s5430_s9 }
  0x73   : > { %4297 = vrot.lane.b32.xlu0 %v6007_v43, %s5430_s9 }
  0x75   : > { %4312 = vrot.lane.b32.xlu1 %v5936_v16, %s5430_s9 }
  0x77   : > { %4307 = vrot.lane.b32.xlu0 %v6015_v49, %s5430_s9 }
  0x79   : > { %4322 = vrot.lane.b32.xlu1 %v8762_v50, %s5431_s10 }
  0x7b   : > { %4317 = vrot.lane.b32.xlu0 %v8763_v56, %s5431_s10 }
  0x7d   : > { %4332 = vrot.lane.b32.xlu1 %v8764_v61, %s5431_s10 }
  0x7f   : > { %4327 = vrot.lane.b32.xlu0 %v8765_v9, %s5431_s10 }
  0x81   : > { %4342 = vrot.lane.b32.xlu1 %v8766_v10, %s5431_s10 }
  0x83   : > { %4337 = vrot.lane.b32.xlu0 %v8767_v29, %s5431_s10 }
  0x85   : > { %4352 = vrot.lane.b32.xlu1 %v8768_v32, %s5431_s10 }
  0x87   : > { %4347 = vrot.lane.b32.xlu0 %v8769_v40, %s5431_s10 }
  0x89   : > { %4362 = vrot.lane.b32.xlu1 %v5740_v5, %s5431_s10 }
  0x8b   : > { %4357 = vrot.lane.b32.xlu0 %v8770_v41, %s5431_s10  ;;  %v6041_v53 = vpop.permute.xlu1 %4087 }
  0x8d   : > { %v6043_v63 = vpop.permute.xlu0 %4077  ;;  %4372 = vrot.lane.b32.xlu1 %v5763_v60, %s5431_s10 }
  0x8f   : > { %4367 = vrot.lane.b32.xlu0 %v8771_v38, %s5431_s10  ;;  %v6049_v47 = vpop.permute.xlu1 %4092 }
  0x91   : > { %v6051_v14 = vpop.permute.xlu0 %4082  ;;  %4382 = vrot.lane.b32.xlu1 %v5786_v7, %s5431_s10 }
  0x93   : > { %4377 = vrot.lane.b32.xlu0 %v5760_v27, %s5431_s10  ;;  %v6057_v15 = vpop.permute.xlu1 %4102 }
  0x95   : > { %v6059_v62 = vpop.permute.xlu0 %4097  ;;  %4392 = vrot.lane.b32.xlu1 %v5910_v54, %s5431_s10 }
  0x97   : > { %4387 = vrot.lane.b32.xlu0 %v5779_v4, %s5431_s10  ;;  %v6065_v20 = vpop.permute.xlu1 %4112 }
  0x99   : > { %v6067_v22 = vpop.permute.xlu0 %4107  ;;  %4402 = vrot.lane.b32.xlu1 %v5811_v46, %s5432_s11 }
  0x9b   : > { %4397 = vrot.lane.b32.xlu0 %v5788_v44, %s5432_s11  ;;  %v6073_v17 = vpop.permute.xlu1 %4122 }
  0x9d   : > { %v6075_v52 = vpop.permute.xlu0 %4117  ;;  %4412 = vrot.lane.b32.xlu1 %v5832_v45, %s5432_s11 }
  0x9f   : > { %4407 = vrot.lane.b32.xlu0 %v5809_v26, %s5432_s11  ;;  %v6081_v21 = vpop.permute.xlu1 %4132 }
  0xa1   : > { %v6083_v58 = vpop.permute.xlu0 %4127  ;;  %4422 = vrot.lane.b32.xlu1 %v5858_v28, %s5432_s11 }
  0xa3   : > { %4417 = vrot.lane.b32.xlu0 %v8772_v51, %s5432_s11  ;;  %v6089_v44 = vpop.permute.xlu1 %4142 }
  0xa5   : > { %v6091_v2 = vpop.permute.xlu0 %4137  ;;  %4432 = vrot.lane.b32.xlu1 %v5879_v37, %s5432_s11 }
  0xa7   : > { %4427 = vrot.lane.b32.xlu0 %v8773_v30, %s5432_s11  ;;  %v6097_v3 = vpop.permute.xlu1 %4152 }
  0xa8   : > { %8774 = vst [vmem:[#allocation13_spill] sm:$0xff] %v6097_v3 }
  0xa9   : > { %v6099_v35 = vpop.permute.xlu0 %4147  ;;  %4442 = vrot.lane.b32.xlu1 %v5884_v6, %s5432_s11 }
  0xaa   : > { %8775 = vst [vmem:[#allocation14_spill] sm:$0xff] %v6099_v35 }
  0xab   : > { %4437 = vrot.lane.b32.xlu0 %v8776_v23, %s5432_s11  ;;  %v6105_v34 = vpop.permute.xlu1 %4162 }
  0xac   : > { %8777 = vst [vmem:[#allocation3_spill] sm:$0xff] %v6105_v34 }
  0xad   : > { %v6107_v33 = vpop.permute.xlu0 %4157  ;;  %4452 = vrot.lane.b32.xlu1 %v5908_v8, %s5432_s11 }
  0xae   : > { %8778 = vst [vmem:[#allocation4_spill] sm:$0xff] %v6107_v33 }
  0xaf   : > { %4447 = vrot.lane.b32.xlu0 %v8779_v19, %s5432_s11  ;;  %v6113_v56 = vpop.permute.xlu1 %4172 }
  0xb0   : > { %8780 = vst [vmem:[#allocation6_spill] sm:$0xff] %v6113_v56 }
  0xb1   : > { %v6115_v3 = vpop.permute.xlu0 %4167  ;;  %4462 = vrot.lane.b32.xlu1 %v5920_v55, %s5432_s11 }
  0xb3   : > { %4457 = vrot.lane.b32.xlu0 %v5886_v48, %s5432_s11  ;;  %v6121_v35 = vpop.permute.xlu1 %4182 }
  0xb4   : > { %8781 = vst [vmem:[#allocation8_spill] sm:$0xff] %v6121_v35 }
  0xb5   : > { %v6123_v34 = vpop.permute.xlu0 %4177  ;;  %4472 = vrot.lane.b32.xlu1 %v5930_v13, %s5432_s11 }
  0xb6   : > { %8782 = vst [vmem:[#allocation5_spill] sm:$0xff] %v6123_v34 }
  0xb7   : > { %4467 = vrot.lane.b32.xlu0 %v5916_v57, %s5432_s11  ;;  %v6129_v33 = vpop.permute.xlu1 %4192 }
  0xb8   : > { %8783 = vst [vmem:[#allocation10_spill] sm:$0xff] %v6129_v33 }
  0xb9   : > { %v6131_v56 = vpop.permute.xlu0 %4187  ;;  %4482 = vrot.lane.b32.xlu1 %v5947_v0, %s5433_s12 }
  0xba   : > { %8784 = vst [vmem:[#allocation7_spill] sm:$0xff] %v6131_v56 }
  0xbb   : > { %4477 = vrot.lane.b32.xlu0 %v5928_v59, %s5433_s12  ;;  %v6137_v35 = vpop.permute.xlu1 %4202 }
  0xbd   : > { %v6139_v34 = vpop.permute.xlu0 %4197  ;;  %4492 = vrot.lane.b32.xlu1 %v5959_v18, %s5433_s12 }
  0xbf   : > { %4487 = vrot.lane.b32.xlu0 %v5942_v39, %s5433_s12  ;;  %v6145_v33 = vpop.permute.xlu1 %4212 }
  0xc1   : > { %v6147_v56 = vpop.permute.xlu0 %4207  ;;  %4502 = vrot.lane.b32.xlu1 %v5971_v12, %s5433_s12 }
  0xc3   : > { %4497 = vrot.lane.b32.xlu0 %v5953_v1, %s5433_s12  ;;  %v6153_v59 = vpop.permute.xlu1 %4222 }
  0xc5   : > { %v6155_v0 = vpop.permute.xlu0 %4217  ;;  %4512 = vrot.lane.b32.xlu1 %v5983_v25, %s5433_s12  ;;  %v6176_v25 = vld [vmem:[%s5491_s29 + $0x198] sm:$0xff] }
  0xc7   : > { %4507 = vrot.lane.b32.xlu0 %v5965_v11, %s5433_s12  ;;  %v6161_v39 = vpop.permute.xlu1 %4232  ;;  %v6179_v11 = vld [vmem:[%s5491_s29 + $0x1a0] sm:$0xff] }
  0xc9   : > { %v6163_v18 = vpop.permute.xlu0 %4227  ;;  %4522 = vrot.lane.b32.xlu1 %v5995_v36, %s5433_s12 }
  0xca   : > { %8785 = vst [vmem:[#allocation16_spill] sm:$0xff] %v6163_v18 }
  0xcb   : > { %4517 = vrot.lane.b32.xlu0 %v5977_v24, %s5433_s12  ;;  %v6169_v1 = vpop.permute.xlu1 %4242  ;;  %v4551_v24 = vpack.i.bf16 %v6179_v11, %v6176_v25 }
  0xcd   : > { %v6171_v12 = vpop.permute.xlu0 %4237  ;;  %4532 = vrot.lane.b32.xlu1 %v6007_v43, %s5433_s12  ;;  %v5356_v43 = vld [vmem:[%s8628_s1] sm:$0xff]  }
  0xce   : > { %8786 = vst [vmem:[#allocation9_spill] sm:$0xff] %v6171_v12  ;;  %3972 = vmatprep.subr.bf16.mxu0 %v5356_v43 }
  0xcf   : > { %4527 = vrot.lane.b32.xlu0 %v5989_v31, %s5433_s12  ;;  %v6183_v18 = vpop.permute.xlu1 %4252  ;;  %3973 = vmatpush3.bf16.msra.mxu0 %v5356_v43 }
  0xd0   : > { %8787 = vst [vmem:[#allocation15_spill] sm:$0xff] %v6183_v18 }
  0xd1   : > { %v6185_v36 = vpop.permute.xlu0 %4247  ;;  %4542 = vrot.lane.b32.xlu1 %v6015_v49, %s5433_s12  ;;  %v5357_v49 = vld [vmem:[%s8628_s1 + $0x8] sm:$0xff]  }
  0xd2   : > { %8788 = vst [vmem:[#allocation17_spill] sm:$0xff] %v6185_v36  ;;  %3974 = vmatprep.subr.bf16.mxu0 %v5357_v49 }
  0xd3   : > { %4537 = vrot.lane.b32.xlu0 %v6001_v42, %s5433_s12  ;;  %v6196_v12 = vpop.permute.xlu1 %4262  ;;  %3975 = vmatpush3.bf16.msra.mxu0 %v5357_v49  ;;  %v5358_v42 = vld [vmem:[%s8628_s1 + $0x10] sm:$0xff]  }
  0xd4   : > { %3976 = vmatprep.subr.bf16.mxu0 %v5358_v42 }
  0xd5   : > { %v6198_v31 = vpop.permute.xlu0 %4257  ;;  %4552 = vrot.lane.b32.xlu1 %v4551_v24, %s5433_s12 }
  0xd7   : > { %4547 = vrot.lane.b32.xlu0 %v5936_v16, %s5433_s12  ;;  %v6206_v36 = vpop.permute.xlu1 %4272  ;;  %3977 = vmatpush3.bf16.msra.mxu0 %v5358_v42 }
  0xd8   : > { %8789 = vst [vmem:[#allocation18_spill] sm:$0xff] %v6206_v36  ;;  %v5397_v36 = vld [vmem:[%s5491_s29 + $0x150] sm:$0xff] }
  0xd9   : > { %v6208_v18 = vpop.permute.xlu0 %4267  ;;  %4562 = vrot.lane.b32.xlu1 %v8765_v9, %s5434_s17  ;;  %v5359_v9 = vld [vmem:[%s8628_s1 + $0x18] sm:$0xff]  }
  0xda   : > { %8790 = vst [vmem:[#allocation19_spill] sm:$0xff] %v6208_v18  ;;  %3978 = vmatprep.subr.bf16.mxu0 %v5359_v9 }
  0xdb   : > { %4557 = vrot.lane.b32.xlu0 %v8762_v50, %s5434_s17  ;;  %v6217_v24 = vpop.permute.xlu1 %4282  ;;  %3979 = vmatpush3.bf16.msra.mxu0 %v5359_v9 }
  0xdc   : > { %8791 = vst [vmem:[#allocation11_spill] sm:$0xff] %v6217_v24 }
  0xdd   : > { %v6219_v16 = vpop.permute.xlu0 %4277  ;;  %4572 = vrot.lane.b32.xlu1 %v8767_v29, %s5434_s17  ;;  %v5360_v29 = vld [vmem:[%s8628_s1 + $0x20] ss:$0 sps:$4 sm:$0xff]  }
  0xde   : > { %8792 = vst [vmem:[#allocation12_spill] sm:$0xff] %v6219_v16  ;;  %4056 = vmatprep.subr.msk.bf16.mxu0 %vm1703_vm2, %v5360_v29  ;;  %v5395_v16 = vld [vmem:[%s5491_s29 + $0x168] sm:$0xff] }
  0xdf   : > { %4567 = vrot.lane.b32.xlu0 %v8764_v61, %s5434_s17  ;;  %v6228_v43 = vpop.permute.xlu1 %4292 }
  0xe0   : > { %8793 = vst [vmem:[#allocation20_spill] sm:$0xff] %v6228_v43 }
  0xe1   : > { %v6230_v50 = vpop.permute.xlu0 %4287  ;;  %4582 = vrot.lane.b32.xlu1 %v8769_v40, %s5434_s17  ;;  %v1705_v40 = vsel %vm1703_vm2, %v5360_v29, 0 }
  0xe2   : > { %8794 = vst [vmem:[#allocation21_spill] sm:$0xff] %v6230_v50  ;;  %3981 = vmatpush3.bf16.msra.mxu0 %v1705_v40 }
  0xe3   : > { %4577 = vrot.lane.b32.xlu0 %v8766_v10, %s5434_s17  ;;  %v6239_v49 = vpop.permute.xlu1 %4302 }
  0xe4   : > { %8795 = vst [vmem:[#allocation22_spill] sm:$0xff] %v6239_v49  ;;  %v8835_v49 = vld [vmem:[#allocation5_spill] sm:$0xff] }
  0xe5   : > { %v6242_v61 = vpop.permute.xlu0 %4297  ;;  %4592 = vrot.lane.b32.xlu1 %v8770_v41, %s5434_s17  ;;  %v4179_v50 = vunpack.i.l.bf16 %v8835_v49 }
  0xe6   : > { %8796 = vst [vmem:[#allocation23_spill] sm:$0xff] %v6242_v61 }
  0xe7   : > { %4587 = vrot.lane.b32.xlu0 %v8768_v32, %s5434_s17  ;;  %v6249_v42 = vpop.permute.xlu1 %4312 }
  0xe8   : > { %8797 = vst [vmem:[#allocation24_spill] sm:$0xff] %v6249_v42 }
  0xe9   : > { %v6251_v9 = vpop.permute.xlu0 %4307  ;;  %4602 = vrot.lane.b32.xlu1 %v8771_v38, %s5434_s17 }
  0xea   : > { %8798 = vst [vmem:[#allocation25_spill] sm:$0xff] %v6251_v9 }
  0xeb   : > { %4597 = vrot.lane.b32.xlu0 %v5740_v5, %s5434_s17  ;;  %v6257_v10 = vpop.permute.xlu1 %4322 }
  0xec   : > { %8799 = vst [vmem:[#allocation26_spill] sm:$0xff] %v6257_v10  ;;  %v8834_v10 = vld [vmem:[#allocation8_spill] sm:$0xff] }
  0xed   : > { %v6259_v61 = vpop.permute.xlu0 %4317  ;;  %4612 = vrot.lane.b32.xlu1 %v5809_v26, %s5435_s26  ;;  %v4185_v9 = vunpack.i.h.bf16 %v8834_v10 }
  0xee   : > { %8800 = vst [vmem:[#allocation27_spill] sm:$0xff] %v6259_v61  ;;  %v4170_v61 = vunpack.i.h.bf16 %v6115_v3 }
  0xef   : > { %4607 = vrot.lane.b32.xlu0 %v5811_v46, %s5435_s26  ;;  %v6265_v32 = vpop.permute.xlu1 %4332 }
  0xf0   : > { %8801 = vst [vmem:[#allocation28_spill] sm:$0xff] %v6265_v32 }
  0xf1   : > { %v6267_v41 = vpop.permute.xlu0 %4327  ;;  %4622 = vrot.lane.b32.xlu1 %v8772_v51, %s5435_s26 }
  0xf2   : > { %8802 = vst [vmem:[#allocation29_spill] sm:$0xff] %v6267_v41 }
  0xf3   : > { %4617 = vrot.lane.b32.xlu0 %v5832_v45, %s5435_s26  ;;  %v6273_v5 = vpop.permute.xlu1 %4342 }
  0xf4   : > { %8803 = vst [vmem:[#allocation30_spill] sm:$0xff] %v6273_v5 }
  0xf5   : > { %v6275_v38 = vpop.permute.xlu0 %4337  ;;  %4632 = vrot.lane.b32.xlu1 %v8773_v30, %s5435_s26 }
  0xf6   : > { %8804 = vst [vmem:[#allocation31_spill] sm:$0xff] %v6275_v38  ;;  %v5390_v38 = vld [vmem:[%s5491_s29 + $0x140] sm:$0xff] }
  0xf7   : > { %4627 = vrot.lane.b32.xlu0 %v5858_v28, %s5435_s26  ;;  %v6281_v26 = vpop.permute.xlu1 %4352 }
  0xf8   : > { %8805 = vst [vmem:[#allocation32_spill] sm:$0xff] %v6281_v26  ;;  %v5387_v26 = vld [vmem:[%s5491_s29 + $0x108] sm:$0xff] }
  0xf9   : > { %v6283_v46 = vpop.permute.xlu0 %4347  ;;  %4642 = vrot.lane.b32.xlu1 %v8776_v23, %s5435_s26  ;;  %v333_v23 = vld [vmem:[%s5491_s29 + $0x1a8] sm:$0x3] }
  0xfa   : > { %8806 = vst [vmem:[#allocation33_spill] sm:$0xff] %v6283_v46  ;;  %v563_v40 = vrot.slane %v333_v23, 1  ;;  %v5381_v46 = vld [vmem:[%s5491_s29 + $0x90] sm:$0xff] }
  0xfb   : > { %4637 = vrot.lane.b32.xlu0 %v5879_v37, %s5435_s26  ;;  %v6289_v45 = vpop.permute.xlu1 %4362 }
  0xfc   : > { %8807 = vst [vmem:[#allocation34_spill] sm:$0xff] %v6289_v45 }
  0xfd   : > { %v6291_v51 = vpop.permute.xlu0 %4357  ;;  %4652 = vrot.lane.b32.xlu1 %v8779_v19, %s5435_s26  ;;  %v560_v19 = vrot.slane %v6176_v25, 1 }
  0xfe   : > { %8808 = vst [vmem:[#allocation35_spill] sm:$0xff] %v6291_v51 }
  0xff   : > { %4647 = vrot.lane.b32.xlu0 %v5884_v6, %s5435_s26  ;;  %v6297_v28 = vpop.permute.xlu1 %4372  ;;  %v561_v6 = vrot.slane %v6179_v11, 1 }
 0x100   : > { %8809 = vst [vmem:[#allocation36_spill] sm:$0xff] %v6297_v28  ;;  %v568_v28 = vrot.slane %v333_v23, 2 }
 0x101   : > { %v6299_v30 = vpop.permute.xlu0 %4367  ;;  %4662 = vrot.lane.b32.xlu1 %v5760_v27, %s5434_s17 }
 0x102   : > { %8810 = vst [vmem:[#allocation37_spill] sm:$0xff] %v6299_v30 }
 0x103   : > { %4657 = vrot.lane.b32.xlu0 %v5763_v60, %s5434_s17  ;;  %v6305_v37 = vpop.permute.xlu1 %4382  ;;  %v566_v60 = vrot.slane %v6179_v11, 2 }
 0x104   : > { %8811 = vst [vmem:[#allocation38_spill] sm:$0xff] %v6305_v37  ;;  %v564_v37 = vsel %vm382_vm0, %v561_v6, %v563_v40  ;;  %v4094_v40 = vunpack.i.l.bf16 %v6049_v47 }
 0x105   : > { %v6308_v29 = vpop.permute.xlu0 %4377  ;;  %4672 = vrot.lane.b32.xlu1 %v5886_v48, %s5435_s26  ;;  %v562_v48 = vsel %vm382_vm0, %v560_v19, %v561_v6 }
 0x106   : > { %8812 = vst [vmem:[#allocation39_spill] sm:$0xff] %v6308_v29  ;;  %v565_v29 = vrot.slane %v6176_v25, 2  ;;  %v4701_v11 = vpack.i.bf16 %v564_v37, %v562_v48  ;;  %v569_v25 = vsel %vm463_vm1, %v566_v60, %v568_v28  ;;  %v4089_v28 = vunpack.i.l.bf16 %v6041_v53 }
 0x107   : > { %4667 = vrot.lane.b32.xlu0 %v5908_v8, %s5435_s26  ;;  %v6316_v27 = vpop.permute.xlu1 %4392  ;;  %v4084_v48 = vunpack.i.l.bf16 %v6051_v14 }
 0x108   : > { %8813 = vst [vmem:[#allocation40_spill] sm:$0xff] %v6316_v27 }
 0x109   : > { %v6319_v30 = vpop.permute.xlu0 %4387  ;;  %4682 = vrot.lane.b32.xlu1 %v5779_v4, %s5434_s17  ;;  %v567_v4 = vsel %vm463_vm1, %v565_v29, %v566_v60  ;;  %v4079_v29 = vunpack.i.l.bf16 %v6043_v63  ;;  %v4085_v60 = vunpack.i.h.bf16 %v6051_v14 }
 0x10a   : > { %8814 = vst [vmem:[#allocation41_spill] sm:$0xff] %v6319_v30  ;;  %v5379_v30 = vld [vmem:[%s5491_s29 + $0xa8] sm:$0xff] }
 0x10b   : > { %4677 = vrot.lane.b32.xlu0 %v5786_v7, %s5434_s17  ;;  %v6328_v8 = vpop.permute.xlu1 %4402  ;;  %v4711_v7 = vpack.i.bf16 %v569_v25, %v567_v4  ;;  %v4100_v4 = vunpack.i.h.bf16 %v6059_v62  ;;  %v5366_v25 = vld [vmem:[%s5491_s29 + $0x38] sm:$0xff] }
 0x10c   : > { %8815 = vst [vmem:[#allocation42_spill] sm:$0xff] %v6328_v8  ;;  %v5378_v8 = vld [vmem:[%s5491_s29 + $0xb0] sm:$0xff] }
 0x10d   : > { %v6330_v27 = vpop.permute.xlu0 %4397  ;;  %4692 = vrot.lane.b32.xlu1 %v5916_v57, %s5435_s26  ;;  %v4090_v57 = vunpack.i.h.bf16 %v6041_v53  ;;  %v4105_v53 = vunpack.i.h.bf16 %v6057_v15 }
 0x10e   : > { %8816 = vst [vmem:[#allocation43_spill] sm:$0xff] %v6330_v27  ;;  %v4144_v27 = vunpack.i.l.bf16 %v6089_v44 }
 0x10f   : > { %4687 = vrot.lane.b32.xlu0 %v5920_v55, %s5435_s26  ;;  %v6338_v6 = vpop.permute.xlu1 %4412  ;;  %v4080_v55 = vunpack.i.h.bf16 %v6043_v63  ;;  %v6368_v14 = vsel %vm1338_vm3, %v5366_v25, %v4090_v57  ;;  %v5370_v57 = vld [vmem:[%s5491_s29 + $0x50] sm:$0xff] }
 0x110   : > { %8817 = vst [vmem:[#allocation44_spill] sm:$0xff] %v6338_v6  ;;  %v5374_v6 = vld [vmem:[%s5491_s29 + $0x80] sm:$0xff] }
 0x111   : > { %v6340_v23 = vpop.permute.xlu0 %4407  ;;  %4702 = vrot.lane.b32.xlu1 %v4701_v11, %s5434_s17  ;;  %v4104_v11 = vunpack.i.l.bf16 %v6057_v15 }
 0x112   : > { %8818 = vst [vmem:[#allocation45_spill] sm:$0xff] %v6340_v23  ;;  %v5371_v23 = vld [vmem:[%s5491_s29 + $0x48] sm:$0xff] }
 0x113   : > { %4697 = vrot.lane.b32.xlu0 %v5910_v54, %s5434_s17  ;;  %v6345_v19 = vpop.permute.xlu1 %4422  ;;  %v4095_v54 = vunpack.i.h.bf16 %v6049_v47  ;;  %v4099_v47 = vunpack.i.l.bf16 %v6059_v62 }
 0x114   : > { %8819 = vst [vmem:[#allocation46_spill] sm:$0xff] %v6345_v19 }
 0x115   : > { %v6350_v37 = vpop.permute.xlu0 %4417  ;;  %4712 = vrot.lane.b32.xlu1 %v4711_v7, %s5435_s26  ;;  %v5367_v7 = vld [vmem:[%s5491_s29 + $0x30] sm:$0xff]  ;;  %v6386_v25 = vsel %vm1338_vm3, %v5370_v57, %v4095_v54  ;;  %v5376_v57 = vld [vmem:[%s5491_s29 + $0x68] sm:$0xff] }
 0x116   : > { %8820 = vst [vmem:[#allocation47_spill] sm:$0xff] %v6350_v37  ;;  %v6372_v15 = vsel %vm1338_vm3, %v5367_v7, %v4089_v28  ;;  %v5368_v37 = vld [vmem:[%s5491_s29 + $0x8] sm:$0xff]  ;;  %v6390_v28 = vsel %vm1338_vm3, %v5371_v23, %v4094_v40  ;;  %v5372_v7 = vld [vmem:[%s5491_s29 + $0x20] sm:$0xff]  ;;  %v6410_v23 = vsel %vm1338_vm3, %v5376_v57, %v4100_v4  ;;  %v4124_v4 = vunpack.i.l.bf16 %v6073_v17 }
 0x117   : > { %4707 = vrot.lane.b32.xlu0 %v5930_v13, %s5435_s26  ;;  %v6363_v63 = vpop.permute.xlu1 %4432  ;;  %v6376_v19 = vsel %vm1338_vm3, %v5368_v37, %v4080_v55  ;;  %v6394_v55 = vsel %vm1338_vm3, %v5372_v7, %v4085_v60  ;;  %v5373_v37 = vld [vmem:[%s5491_s29 + $0x18] sm:$0xff]  ;;  %v5377_v60 = vld [vmem:[%s5491_s29 + $0x60] sm:$0xff] }
 0x118   : > { %8821 = vst [vmem:[#allocation48_spill] sm:$0xff] %v6363_v63  ;;  %v5369_v63 = vld [vmem:[%s5491_s29] sm:$0xff]  ;;  %v6416_v7 = vsel %vm1338_vm3, %v5377_v60, %v4099_v47  ;;  %v4119_v47 = vunpack.i.l.bf16 %v6075_v52  ;;  %v4135_v60 = vunpack.i.h.bf16 %v6081_v21 }
 0x119   : > { %v6378_v13 = vpop.permute.xlu0 %4427  ;;  %v6382_v62 = vsel %vm1338_vm3, %v5369_v63, %v4079_v29  ;;  %v6402_v29 = vsel %vm1338_vm3, %v5374_v6, %v4105_v53  ;;  %v5375_v63 = vld [vmem:[%s5491_s29 + $0x78] sm:$0xff]  ;;  %v4110_v6 = vunpack.i.h.bf16 %v6067_v22  ;;  %v4109_v53 = vunpack.i.l.bf16 %v6067_v22 }
 0x11a   : > { %8822 = vst [vmem:[#allocation49_spill] sm:$0xff] %v6378_v13  ;;  %v6398_v13 = vsel %vm1338_vm3, %v5373_v37, %v4084_v48  ;;  %v6406_v54 = vsel %vm1338_vm3, %v5375_v63, %v4104_v11  ;;  %v4115_v48 = vunpack.i.h.bf16 %v6065_v20  ;;  %v4114_v37 = vunpack.i.l.bf16 %v6065_v20 }
 0x11b   : > { %v6412_v40 = vpop.permute.xlu1 %4442  ;;  %v4125_v11 = vunpack.i.h.bf16 %v6073_v17  ;;  %v4120_v63 = vunpack.i.h.bf16 %v6075_v52  ;;  %v4134_v20 = vunpack.i.l.bf16 %v6081_v21  ;;  %v4129_v22 = vunpack.i.l.bf16 %v6083_v58 }
 0x11c   : > { %8823 = vst [vmem:[#allocation50_spill] sm:$0xff] %v6412_v40  ;;  %v4130_v40 = vunpack.i.h.bf16 %v6083_v58  ;;  %v4145_v17 = vunpack.i.h.bf16 %v6089_v44  ;;  %v6439_v21 = vsel %vm1338_vm3, %v5378_v8, %v4115_v48  ;;  %v6443_v51 = vsel %vm1338_vm3, %v5379_v30, %v4114_v37  ;;  %v5380_v58 = vld [vmem:[%s5491_s29 + $0x98] sm:$0xff]  ;;  %v5382_v8 = vld [vmem:[%s5491_s29 + $0xe0] sm:$0xff] }
 0x11d   : > { %v6425_v57 = vpop.permute.xlu0 %4437  ;;  %v6447_v45 = vsel %vm1338_vm3, %v5380_v58, %v4110_v6  ;;  %v4139_v44 = vunpack.i.l.bf16 %v6091_v2  ;;  %v6456_v48 = vsel %vm1338_vm3, %v5382_v8, %v4125_v11  ;;  %v5383_v30 = vld [vmem:[%s5491_s29 + $0xd8] sm:$0xff]  ;;  %v5384_v6 = vld [vmem:[%s5491_s29 + $0xc8] sm:$0xff]  ;;  %v5386_v11 = vld [vmem:[%s5491_s29 + $0x110] sm:$0xff] }
 0x11e   : > { %8824 = vst [vmem:[#allocation51_spill] sm:$0xff] %v6425_v57  ;;  %v4140_v57 = vunpack.i.h.bf16 %v6091_v2  ;;  %v6460_v37 = vsel %vm1338_vm3, %v5383_v30, %v4124_v4  ;;  %v6464_v58 = vsel %vm1338_vm3, %v5384_v6, %v4120_v63  ;;  %v6474_v8 = vsel %vm1338_vm3, %v5386_v11, %v4135_v60  ;;  %v5388_v30 = vld [vmem:[%s5491_s29 + $0xf8] sm:$0xff]  ;;  %v5389_v6 = vld [vmem:[%s5491_s29 + $0xf0] sm:$0xff]  ;;  %v5392_v11 = vld [vmem:[%s5491_s29 + $0x128] sm:$0xff] }
 0x11f   : > { %v6435_v52 = vpop.permute.xlu1 %4452  ;;  %v6478_v4 = vsel %vm1338_vm3, %v5387_v26, %v4134_v20  ;;  %v6482_v63 = vsel %vm1338_vm3, %v5388_v30, %v4130_v40  ;;  %v5393_v40 = vld [vmem:[%s5491_s29 + $0x120] sm:$0xff] }
 0x120   : > { %8825 = vst [vmem:[#allocation52_spill] sm:$0xff] %v6435_v52  ;;  %v6452_v52 = vsel %vm1338_vm3, %v5381_v46, %v4109_v53  ;;  %v5385_v46 = vld [vmem:[%s5491_s29 + $0xc0] sm:$0xff]  ;;  %v6498_v26 = vsel %vm1338_vm3, %v5392_v11, %v4140_v57  ;;  %v6504_v30 = vsel %vm1338_vm3, %v5393_v40, %v4139_v44  ;;  %v8831_v11 = vld [vmem:[#allocation4_spill] sm:$0xff]  ;;  %v8833_v40 = vld [vmem:[#allocation6_spill] sm:$0xff] }
 0x121   : > { %v6466_v2 = vpop.permute.xlu0 %4447  ;;  %v6470_v53 = vsel %vm1338_vm3, %v5385_v46, %v4119_v47  ;;  %v6490_v47 = vsel %vm1338_vm3, %v5390_v38, %v4145_v17  ;;  %v5391_v46 = vld [vmem:[%s5491_s29 + $0x138] sm:$0xff]  ;;  %v8829_v38 = vld [vmem:[#allocation14_spill] sm:$0xff]  ;;  %v4160_v44 = vunpack.i.h.bf16 %v8831_v11  ;;  %v4174_v32 = vunpack.i.l.bf16 %v8833_v40 }
 0x122   : > { %8826 = vst [vmem:[#allocation53_spill] sm:$0xff] %v6466_v2  ;;  %v6486_v2 = vsel %vm1338_vm3, %v5389_v6, %v4129_v22  ;;  %v6494_v60 = vsel %vm1338_vm3, %v5391_v46, %v4144_v27  ;;  %v8828_v22 = vld [vmem:[#allocation13_spill] sm:$0xff]  ;;  %v4150_v17 = vunpack.i.h.bf16 %v8829_v38  ;;  %v4149_v27 = vunpack.i.l.bf16 %v8829_v38  ;;  %v8830_v46 = vld [vmem:[#allocation3_spill] sm:$0xff] }
 0x123   : > { %v6500_v20 = vpop.permute.xlu1 %4462  ;;  %v4155_v6 = vunpack.i.h.bf16 %v8828_v22  ;;  %v4154_v5 = vunpack.i.l.bf16 %v8828_v22  ;;  %v4165_v41 = vunpack.i.h.bf16 %v8830_v46  ;;  %v4164_v57 = vunpack.i.l.bf16 %v8830_v46 }
 0x124   : > { %8827 = vst [vmem:[#allocation54_spill] sm:$0xff] %v6500_v20  ;;  %v4159_v20 = vunpack.i.l.bf16 %v8831_v11  ;;  %v4175_v22 = vunpack.i.h.bf16 %v8833_v40  ;;  %v4169_v38 = vunpack.i.l.bf16 %v6115_v3  ;;  %v4184_v46 = vunpack.i.l.bf16 %v8834_v10  ;;  %v5396_v40 = vld [vmem:[%s5491_s29 + $0x158] sm:$0xff] }
 0x125   : > { %v6513_v42 = vpop.permute.xlu0 %4457  ;;  %v6531_v24 = vsel %vm1338_vm3, %v5395_v16, %v4154_v5  ;;  %v6535_v18 = vsel %vm1338_vm3, %v5396_v40, %v4150_v17  ;;  %v4180_v3 = vunpack.i.h.bf16 %v8835_v49  ;;  %v6540_v10 = vsel %vm1338_vm3, %v5397_v36, %v4149_v27 }
 0x126   : > { %8832 = vst [vmem:[#allocation13_spill] sm:$0xff] %v6513_v42  ;;  %v5394_v42 = vld [vmem:[%s5491_s29 + $0x170] sm:$0xff]  ;;  %v6552_v16 = vsel %vm1371_vm4, %v6382_v62, %v4159_v20  ;;  %v6558_v49 = vsel %vm1371_vm4, %v6376_v19, %v4160_v44  ;;  %v6562_v36 = vsel %vm1371_vm4, %v6386_v25, %v4175_v22  ;;  %v6574_v62 = vsel %vm1371_vm4, %v6372_v15, %v4169_v38 }
 0x127   : > { %v6523_v43 = vpop.permute.xlu1 %4472  ;;  %v6527_v11 = vsel %vm1338_vm3, %v5394_v42, %v4155_v6  ;;  %v6548_v42 = vsel %vm1371_vm4, %v6394_v55, %v4165_v41  ;;  %v6570_v41 = vsel %vm1371_vm4, %v6368_v14, %v4170_v61  ;;  %v6578_v19 = vsel %vm1371_vm4, %v6402_v29, %v4185_v9  ;;  %v8838_v14 = vld [vmem:[#allocation10_spill] sm:$0xff]  ;;  %v8839_v9 = vld [vmem:[#allocation7_spill] sm:$0xff] }
 0x128   : > { %8836 = vst [vmem:[#allocation14_spill] sm:$0xff] %v6523_v43  ;;  %v6544_v43 = vsel %vm1371_vm4, %v6398_v13, %v4164_v57  ;;  %v6566_v13 = vsel %vm1371_vm4, %v6390_v28, %v4174_v32  ;;  %v6582_v25 = vsel %vm1371_vm4, %v6406_v54, %v4184_v46  ;;  %v6586_v32 = vsel %vm1371_vm4, %v6416_v7, %v4179_v50 }
 0x129   : > { %v6554_v5 = vpop.permute.xlu0 %4467  ;;  %v6592_v61 = vsel %vm1371_vm4, %v6410_v23, %v4180_v3  ;;  %v4195_v15 = vunpack.i.h.bf16 %v8838_v14  ;;  %v4194_v55 = vunpack.i.l.bf16 %v8838_v14  ;;  %v4189_v29 = vunpack.i.l.bf16 %v8839_v9 }
 0x12a   : > { %8837 = vst [vmem:[#allocation3_spill] sm:$0xff] %v6554_v5  ;;  %v4190_v20 = vunpack.i.h.bf16 %v8839_v9  ;;  %v4205_v54 = vunpack.i.h.bf16 %v6137_v35  ;;  %v4204_v6 = vunpack.i.l.bf16 %v6137_v35  ;;  %v4199_v50 = vunpack.i.l.bf16 %v6139_v34 }
 0x12b   : > { %v6588_v28 = vpop.permute.xlu1 %4482  ;;  %v4200_v17 = vunpack.i.h.bf16 %v6139_v34  ;;  %v4215_v23 = vunpack.i.h.bf16 %v6145_v33  ;;  %v4214_v27 = vunpack.i.l.bf16 %v6145_v33  ;;  %v4209_v57 = vunpack.i.l.bf16 %v6147_v56 }
 0x12c   : > { %v4210_v44 = vunpack.i.h.bf16 %v6147_v56  ;;  %v4225_v22 = vunpack.i.h.bf16 %v6153_v59  ;;  %v4224_v38 = vunpack.i.l.bf16 %v6153_v59  ;;  %v4219_v35 = vunpack.i.l.bf16 %v6155_v0 }
 0x12d   : > { %v6601_v7 = vpop.permute.xlu0 %4477  ;;  %v6615_v34 = vsel %vm1371_vm4, %v6439_v21, %v4195_v15  ;;  %v6619_v33 = vsel %vm1371_vm4, %v6443_v51, %v4194_v55  ;;  %v6623_v40 = vsel %vm1371_vm4, %v6452_v52, %v4189_v29  ;;  %v4220_v56 = vunpack.i.h.bf16 %v6155_v0 }
 0x12e   : > { %v6628_v59 = vsel %vm1371_vm4, %v6447_v45, %v4190_v20  ;;  %v6632_v3 = vsel %vm1371_vm4, %v6456_v48, %v4205_v54  ;;  %v6636_v21 = vsel %vm1371_vm4, %v6460_v37, %v4204_v6  ;;  %v6640_v51 = vsel %vm1371_vm4, %v6470_v53, %v4199_v50 }
 0x12f   : > { %v6611_v46 = vpop.permute.xlu1 %4492  ;;  %v6646_v0 = vsel %vm1371_vm4, %v6464_v58, %v4200_v17  ;;  %v6650_v45 = vsel %vm1371_vm4, %v6474_v8, %v4215_v23  ;;  %v6654_v48 = vsel %vm1371_vm4, %v6478_v4, %v4214_v27  ;;  %v6658_v37 = vsel %vm1371_vm4, %v6486_v2, %v4209_v57  ;;  %v8843_v23 = vld [vmem:[#allocation17_spill] sm:$0xff] }
 0x130   : > { %v6662_v53 = vsel %vm1371_vm4, %v6482_v63, %v4210_v44  ;;  %v6666_v58 = vsel %vm1371_vm4, %v6490_v47, %v4225_v22  ;;  %v6670_v8 = vsel %vm1371_vm4, %v6494_v60, %v4224_v38  ;;  %v6674_v4 = vsel %vm1371_vm4, %v6504_v30, %v4219_v35  ;;  %v8840_v47 = vld [vmem:[#allocation16_spill] sm:$0xff]  ;;  %v8841_v30 = vld [vmem:[#allocation9_spill] sm:$0xff] }
 0x131   : > { %v6642_v52 = vpop.permute.xlu0 %4487  ;;  %v6680_v2 = vsel %vm1371_vm4, %v6498_v26, %v4220_v56  ;;  %v4235_v63 = vunpack.i.h.bf16 %v6161_v39  ;;  %v4234_v15 = vunpack.i.l.bf16 %v6161_v39  ;;  %v4229_v55 = vunpack.i.l.bf16 %v8840_v47  ;;  %v8842_v26 = vld [vmem:[#allocation15_spill] sm:$0xff] }
 0x132   : > { %v4230_v9 = vunpack.i.h.bf16 %v8840_v47  ;;  %v4245_v60 = vunpack.i.h.bf16 %v6169_v1  ;;  %v4244_v29 = vunpack.i.l.bf16 %v6169_v1  ;;  %v4239_v20 = vunpack.i.l.bf16 %v8841_v30 }
 0x133   : > { %v6676_v14 = vpop.permute.xlu1 %4502  ;;  %v4240_v6 = vunpack.i.h.bf16 %v8841_v30  ;;  %v4255_v50 = vunpack.i.h.bf16 %v8842_v26  ;;  %v4254_v17 = vunpack.i.l.bf16 %v8842_v26  ;;  %v4249_v39 = vunpack.i.l.bf16 %v8843_v23 }
 0x134   : > { %v4250_v27 = vunpack.i.h.bf16 %v8843_v23  ;;  %v4265_v57 = vunpack.i.h.bf16 %v6196_v12  ;;  %v4264_v44 = vunpack.i.l.bf16 %v6196_v12  ;;  %v4259_v1 = vunpack.i.l.bf16 %v6198_v31 }
 0x135   : > { %v6689_v54 = vpop.permute.xlu0 %4497  ;;  %v6703_v38 = vsel %vm1371_vm4, %v6527_v11, %v4235_v63  ;;  %v6707_v35 = vsel %vm1371_vm4, %v6531_v24, %v4234_v15  ;;  %v6711_v56 = vsel %vm1371_vm4, %v6540_v10, %v4229_v55  ;;  %v4260_v47 = vunpack.i.h.bf16 %v6198_v31 }
 0x136   : > { %8844 = vst [vmem:[#allocation4_spill] sm:$0xff] %v6703_v38  ;;  %8845 = vst [vmem:[#allocation6_spill] sm:$0xff] %v6707_v35  ;;  %v6716_v12 = vsel %vm1371_vm4, %v6535_v18, %v4230_v9  ;;  %v6720_v30 = vsel %vm1404_vm5, %v6544_v43, %v4244_v29  ;;  %v6724_v11 = vsel %vm1404_vm5, %v6548_v42, %v4245_v60 }
 0x137   : > { %v6699_v22 = vpop.permute.xlu1 %4512  ;;  %v6728_v24 = vsel %vm1404_vm5, %v6552_v16, %v4239_v20  ;;  %v6734_v31 = vsel %vm1404_vm5, %v6558_v49, %v4240_v6  ;;  %v6738_v18 = vsel %vm1404_vm5, %v6566_v13, %v4254_v17  ;;  %v6742_v43 = vsel %vm1404_vm5, %v6562_v36, %v4255_v50  ;;  %v8850_v50 = vld [vmem:[#allocation20_spill] sm:$0xff] }
 0x138   : > { %v6746_v42 = vsel %vm1404_vm5, %v6574_v62, %v4249_v39  ;;  %v6750_v16 = vsel %vm1404_vm5, %v6570_v41, %v4250_v27  ;;  %v6754_v49 = vsel %vm1404_vm5, %v6582_v25, %v4264_v44  ;;  %v6758_v13 = vsel %vm1404_vm5, %v6578_v19, %v4265_v57  ;;  %v8846_v41 = vld [vmem:[#allocation18_spill] sm:$0xff]  ;;  %v8847_v25 = vld [vmem:[#allocation19_spill] sm:$0xff]  ;;  %v8851_v39 = vld [vmem:[#allocation21_spill] sm:$0xff] }
 0x139   : > { %v6730_v10 = vpop.permute.xlu0 %4507  ;;  %v6762_v36 = vsel %vm1404_vm5, %v6586_v32, %v4259_v1  ;;  %v6768_v62 = vsel %vm1404_vm5, %v6592_v61, %v4260_v47  ;;  %v4275_v15 = vunpack.i.h.bf16 %v8846_v41  ;;  %v4274_v55 = vunpack.i.l.bf16 %v8846_v41  ;;  %v8848_v19 = vld [vmem:[#allocation11_spill] sm:$0xff]  ;;  %v8849_v32 = vld [vmem:[#allocation12_spill] sm:$0xff]  ;;  %v8852_v44 = vld [vmem:[#allocation22_spill] sm:$0xff] }
 0x13a   : > { %v4269_v9 = vunpack.i.l.bf16 %v8847_v25  ;;  %v4270_v60 = vunpack.i.h.bf16 %v8847_v25  ;;  %v4285_v29 = vunpack.i.h.bf16 %v8848_v19  ;;  %v4284_v20 = vunpack.i.l.bf16 %v8848_v19  ;;  %v8853_v41 = vld [vmem:[#allocation23_spill] sm:$0xff] }
 0x13b   : > { %v6764_v63 = vpop.permute.xlu1 %4522  ;;  %v4279_v6 = vunpack.i.l.bf16 %v8849_v32  ;;  %v4280_v61 = vunpack.i.h.bf16 %v8849_v32  ;;  %v4295_v17 = vunpack.i.h.bf16 %v8850_v50  ;;  %v4294_v23 = vunpack.i.l.bf16 %v8850_v50 }
 0x13c   : > { %v4289_v27 = vunpack.i.l.bf16 %v8851_v39  ;;  %v4290_v57 = vunpack.i.h.bf16 %v8851_v39  ;;  %v4305_v1 = vunpack.i.h.bf16 %v8852_v44  ;;  %v4304_v47 = vunpack.i.l.bf16 %v8852_v44 }
 0x13d   : > { %v6777_v26 = vpop.permute.xlu0 %4517  ;;  %v4299_v25 = vunpack.i.l.bf16 %v8853_v41  ;;  %v6791_v38 = vsel %vm1404_vm5, %v6619_v33, %v4274_v55  ;;  %v6795_v32 = vsel %vm1404_vm5, %v6615_v34, %v4275_v15  ;;  %v6799_v50 = vsel %vm1404_vm5, %v6623_v40, %v4269_v9 }
 0x13e   : > { %v4300_v39 = vunpack.i.h.bf16 %v8853_v41  ;;  %v6804_v44 = vsel %vm1404_vm5, %v6628_v59, %v4270_v60  ;;  %v6808_v35 = vsel %vm1404_vm5, %v6636_v21, %v4284_v20  ;;  %v6812_v33 = vsel %vm1404_vm5, %v6632_v3, %v4285_v29 }
 0x13f   : > { %v6787_v19 = vpop.permute.xlu1 %4532  ;;  %v6816_v34 = vsel %vm1404_vm5, %v6640_v51, %v4279_v6  ;;  %v6822_v15 = vsel %vm1404_vm5, %v6646_v0, %v4280_v61  ;;  %v6826_v59 = vsel %vm1404_vm5, %v6654_v48, %v4294_v23  ;;  %v6830_v21 = vsel %vm1404_vm5, %v6650_v45, %v4295_v17 }
 0x140   : > { %8854 = vst [vmem:[#allocation8_spill] sm:$0xff] %v6787_v19  ;;  %v6834_v3 = vsel %vm1404_vm5, %v6658_v37, %v4289_v27  ;;  %v6838_v51 = vsel %vm1404_vm5, %v6662_v53, %v4290_v57  ;;  %v6842_v0 = vsel %vm1404_vm5, %v6670_v8, %v4304_v47  ;;  %v6846_v48 = vsel %vm1404_vm5, %v6666_v58, %v4305_v1  ;;  %v8857_v53 = vld [vmem:[#allocation25_spill] sm:$0xff]  ;;  %v8858_v8 = vld [vmem:[#allocation26_spill] sm:$0xff]  ;;  %v8859_v58 = vld [vmem:[#allocation27_spill] sm:$0xff] }
 0x141   : > { %v6818_v40 = vpop.permute.xlu0 %4527  ;;  %v6850_v45 = vsel %vm1404_vm5, %v6674_v4, %v4299_v25  ;;  %v6856_v37 = vsel %vm1404_vm5, %v6680_v2, %v4300_v39  ;;  %v4310_v9 = vunpack.i.h.bf16 %v8857_v53  ;;  %v4309_v60 = vunpack.i.l.bf16 %v8857_v53  ;;  %v8860_v4 = vld [vmem:[#allocation28_spill] sm:$0xff]  ;;  %v8863_v47 = vld [vmem:[#allocation29_spill] sm:$0xff]  ;;  %v8864_v39 = vld [vmem:[#allocation30_spill] sm:$0xff] }
 0x142   : > { %8855 = vst [vmem:[#allocation5_spill] sm:$0xff] %v6818_v40  ;;  %v4324_v29 = vunpack.i.l.bf16 %v8858_v8  ;;  %v4325_v20 = vunpack.i.h.bf16 %v8858_v8  ;;  %v4320_v6 = vunpack.i.h.bf16 %v8859_v58  ;;  %v4319_v61 = vunpack.i.l.bf16 %v8859_v58 }
 0x143   : > { %v6852_v55 = vpop.permute.xlu1 %4542  ;;  %v4334_v17 = vunpack.i.l.bf16 %v8860_v4  ;;  %v4335_v1 = vunpack.i.h.bf16 %v8860_v4  ;;  %v4329_v41 = vunpack.i.l.bf16 %v8863_v47  ;;  %v4330_v25 = vunpack.i.h.bf16 %v8863_v47 }
 0x144   : > { %8856 = vst [vmem:[#allocation10_spill] sm:$0xff] %v6852_v55  ;;  %v4345_v53 = vunpack.i.h.bf16 %v8864_v39  ;;  %v4344_v8 = vunpack.i.l.bf16 %v8864_v39  ;;  %v8865_v55 = vld [vmem:[#allocation31_spill] sm:$0xff]  ;;  %v6883_v57 = vsel %vm1404_vm5, %v6716_v12, %v4310_v9  ;;  %v6887_v4 = vsel %vm1437_vm6, %v6720_v30, %v4324_v29 }
 0x145   : > { %v6865_v23 = vpop.permute.xlu0 %4537  ;;  %v4339_v58 = vunpack.i.l.bf16 %v8865_v55  ;;  %v4340_v47 = vunpack.i.h.bf16 %v8865_v55  ;;  %v6892_v39 = vsel %vm1437_vm6, %v6724_v11, %v4325_v20  ;;  %v6896_v2 = vsel %vm1437_vm6, %v6728_v24, %v4319_v61  ;;  %v8868_v24 = vld [vmem:[#allocation32_spill] sm:$0xff] }
 0x146   : > { %8861 = vst [vmem:[#allocation7_spill] sm:$0xff] %v6865_v23  ;;  %v6879_v23 = vsel %vm1404_vm5, %v6711_v56, %v4309_v60  ;;  %v6900_v56 = vsel %vm1437_vm6, %v6734_v31, %v4320_v6  ;;  %v6904_v12 = vsel %vm1437_vm6, %v6738_v18, %v4334_v17  ;;  %v6910_v55 = vsel %vm1437_vm6, %v6742_v43, %v4335_v1 }
 0x147   : > { %v6875_v5 = vpop.permute.xlu1 %4552  ;;  %v6914_v11 = vsel %vm1437_vm6, %v6746_v42, %v4329_v41  ;;  %v4355_v9 = vunpack.i.h.bf16 %v8868_v24  ;;  %v4354_v60 = vunpack.i.l.bf16 %v8868_v24  ;;  %v6920_v31 = vsel %vm1437_vm6, %v6750_v16, %v4330_v25  ;;  %v8869_v16 = vld [vmem:[#allocation33_spill] sm:$0xff] }
 0x148   : > { %8866 = vst [vmem:[#allocation16_spill] sm:$0xff] %v6875_v5  ;;  %v6924_v18 = vsel %vm1437_vm6, %v6754_v49, %v4344_v8  ;;  %v6928_v43 = vsel %vm1437_vm6, %v6758_v13, %v4345_v53  ;;  %v6932_v42 = vsel %vm1437_vm6, %v6762_v36, %v4339_v58  ;;  %v6938_v20 = vsel %vm1437_vm6, %v6768_v62, %v4340_v47  ;;  %v8870_v49 = vld [vmem:[#allocation34_spill] sm:$0xff]  ;;  %v8871_v13 = vld [vmem:[#allocation35_spill] sm:$0xff]  ;;  %v8872_v36 = vld [vmem:[#allocation36_spill] sm:$0xff] }
 0x149   : > { %v6906_v30 = vpop.permute.xlu0 %4547  ;;  %v4350_v6 = vunpack.i.h.bf16 %v8869_v16  ;;  %v4349_v61 = vunpack.i.l.bf16 %v8869_v16  ;;  %v4364_v17 = vunpack.i.l.bf16 %v8870_v49  ;;  %v4365_v1 = vunpack.i.h.bf16 %v8870_v49  ;;  %v8873_v24 = vld [vmem:[#allocation37_spill] sm:$0xff] }
 0x14a   : > { %8867 = vst [vmem:[#allocation9_spill] sm:$0xff] %v6906_v30  ;;  %v4360_v41 = vunpack.i.h.bf16 %v8871_v13  ;;  %v4359_v25 = vunpack.i.l.bf16 %v8871_v13  ;;  %v4374_v53 = vunpack.i.l.bf16 %v8872_v36  ;;  %v6951_v62 = vsel %vm1437_vm6, %v6791_v38, %v4354_v60  ;;  %v8874_v13 = vld [vmem:[#allocation38_spill] sm:$0xff]  ;;  %v8875_v30 = vld [vmem:[#allocation39_spill] sm:$0xff] }
 0x14b   : > { %v6934_v29 = vpop.permute.xlu1 %4562  ;;  %v6955_v58 = vsel %vm1437_vm6, %v6795_v32, %v4355_v9  ;;  %v4375_v47 = vunpack.i.h.bf16 %v8872_v36  ;;  %v4369_v16 = vunpack.i.l.bf16 %v8873_v24  ;;  %v4370_v49 = vunpack.i.h.bf16 %v8873_v24 }
 0x14c   : > { %v4385_v5 = vunpack.i.h.bf16 %v8874_v13  ;;  %v4384_v27 = vunpack.i.l.bf16 %v8874_v13  ;;  %v4379_v19 = vunpack.i.l.bf16 %v8875_v30  ;;  %v6967_v38 = vsel %vm1437_vm6, %v6799_v50, %v4349_v61 }
 0x14d   : > { %v6947_v8 = vpop.permute.xlu0 %4557  ;;  %v6971_v32 = vsel %vm1437_vm6, %v6804_v44, %v4350_v6  ;;  %v6975_v9 = vsel %vm1437_vm6, %v6808_v35, %v4364_v17  ;;  %v4380_v60 = vunpack.i.h.bf16 %v8875_v30  ;;  %v6980_v36 = vsel %vm1437_vm6, %v6812_v33, %v4365_v1 }
 0x14e   : > { %v6984_v24 = vsel %vm1437_vm6, %v6816_v34, %v4359_v25  ;;  %v6988_v50 = vsel %vm1437_vm6, %v6822_v15, %v4360_v41  ;;  %v6992_v44 = vsel %vm1437_vm6, %v6826_v59, %v4374_v53  ;;  %v6998_v30 = vsel %vm1437_vm6, %v6830_v21, %v4375_v47  ;;  %v8876_v34 = vld [vmem:[#allocation41_spill] sm:$0xff]  ;;  %v8881_v25 = vld [vmem:[#allocation42_spill] sm:$0xff] }
 0x14f   : > { %v6963_v40 = vpop.permute.xlu1 %4572  ;;  %v7002_v33 = vsel %vm1437_vm6, %v6834_v3, %v4369_v16  ;;  %v4390_v6 = vunpack.i.h.bf16 %v8876_v34  ;;  %v4389_v61 = vunpack.i.l.bf16 %v8876_v34  ;;  %v7008_v15 = vsel %vm1437_vm6, %v6838_v51, %v4370_v49  ;;  %v8888_v51 = vld [vmem:[#allocation47_spill] sm:$0xff] }
 0x150   : > { %v7012_v59 = vsel %vm1437_vm6, %v6842_v0, %v4384_v27  ;;  %v7016_v21 = vsel %vm1437_vm6, %v6846_v48, %v4385_v5  ;;  %v7020_v3 = vsel %vm1437_vm6, %v6850_v45, %v4379_v19  ;;  %v7026_v1 = vsel %vm1437_vm6, %v6856_v37, %v4380_v60  ;;  %v8882_v48 = vld [vmem:[#allocation43_spill] sm:$0xff]  ;;  %v8883_v45 = vld [vmem:[#allocation44_spill] sm:$0xff]  ;;  %v8886_v60 = vld [vmem:[#allocation45_spill] sm:$0xff] }
 0x151   : > { %v6994_v35 = vpop.permute.xlu0 %4567  ;;  %8877 = vst [vmem:[#allocation15_spill] sm:$0xff] %v7012_v59  ;;  %8878 = vst [vmem:[#allocation17_spill] sm:$0xff] %v7016_v21  ;;  %v4405_v0 = vunpack.i.h.bf16 %v8881_v25  ;;  %v4404_v27 = vunpack.i.l.bf16 %v8881_v25  ;;  %v4400_v53 = vunpack.i.h.bf16 %v8882_v48  ;;  %v4399_v19 = vunpack.i.l.bf16 %v8882_v48  ;;  %v8887_v48 = vld [vmem:[#allocation46_spill] sm:$0xff] }
 0x152   : > { %8879 = vst [vmem:[#allocation18_spill] sm:$0xff] %v7026_v1  ;;  %v4414_v47 = vunpack.i.l.bf16 %v8883_v45  ;;  %v7039_v37 = vsel %vm1437_vm6, %v6879_v23, %v4389_v61  ;;  %v7043_v49 = vsel %vm1437_vm6, %v6883_v57, %v4390_v6  ;;  %v4415_v13 = vunpack.i.h.bf16 %v8883_v45  ;;  %v8889_v61 = vld [vmem:[#allocation48_spill] sm:$0xff] }
 0x153   : > { %v7022_v17 = vpop.permute.xlu1 %4582  ;;  %8884 = vst [vmem:[#allocation19_spill] sm:$0xff] %v7039_v37  ;;  %8885 = vst [vmem:[#allocation11_spill] sm:$0xff] %v7043_v49  ;;  %v4409_v34 = vunpack.i.l.bf16 %v8886_v60  ;;  %v4410_v25 = vunpack.i.h.bf16 %v8886_v60  ;;  %v4425_v41 = vunpack.i.h.bf16 %v8887_v48  ;;  %v4424_v5 = vunpack.i.l.bf16 %v8887_v48 }
 0x154   : > { %v4419_v21 = vunpack.i.l.bf16 %v8888_v51  ;;  %v1473_v23 = vsel %vm1470_vm7, %v6887_v4, %v4404_v27  ;;  %v1474_v57 = vsel %vm1470_vm7, %v6892_v39, %v4405_v0  ;;  %v4420_v6 = vunpack.i.h.bf16 %v8888_v51 }
 0x155   : > { %v7035_v16 = vpop.permute.xlu0 %4577  ;;  %v4434_v45 = vunpack.i.l.bf16 %v8889_v61  ;;  %v1471_v60 = vsel %vm1470_vm7, %v6896_v2, %v4399_v19  ;;  %v1472_v48 = vsel %vm1470_vm7, %v6900_v56, %v4400_v53  ;;  %v7065_v49 = vsel %vm1470_vm7, %v6904_v12, %v4414_v47 }
 0x156   : > { %v4435_v37 = vunpack.i.h.bf16 %v8889_v61  ;;  %v7072_v39 = vsel %vm1470_vm7, %v6910_v55, %v4415_v13  ;;  %v1475_v51 = vsel %vm1470_vm7, %v6914_v11, %v4409_v34  ;;  %v4485_v2 = vunpack.i.h.bf16 %v6588_v28 }
 0x157   : > { %v7051_v59 = vpop.permute.xlu1 %4592  ;;  %v4484_v0 = vunpack.i.l.bf16 %v6588_v28  ;;  %v1476_v56 = vsel %vm1470_vm7, %v6920_v31, %v4410_v25  ;;  %v7082_v12 = vsel %vm1470_vm7, %v6924_v18, %v4424_v5  ;;  %v7086_v27 = vsel %vm1470_vm7, %v6928_v43, %v4425_v41 }
 0x158   : > { %v7090_v55 = vsel %vm1470_vm7, %v6932_v42, %v4419_v21  ;;  %v7096_v28 = vsel %vm1470_vm7, %v6938_v20, %v4420_v6  ;;  %v7100_v31 = vsel %vm1470_vm7, %v6951_v62, %v4434_v45  ;;  %v4480_v18 = vunpack.i.h.bf16 %v6601_v7  ;;  %v8890_v42 = vld [vmem:[#allocation49_spill] sm:$0xff] }
 0x159   : > { %v7068_v4 = vpop.permute.xlu0 %4587  ;;  %v4479_v5 = vunpack.i.l.bf16 %v6601_v7  ;;  %v7106_v43 = vsel %vm1470_vm7, %v6955_v58, %v4435_v37  ;;  %v4565_v41 = vunpack.i.h.bf16 %v6934_v29  ;;  %v4564_v20 = vunpack.i.l.bf16 %v6934_v29 }
 0x15a   : > { %v1506_v62 = vsel %vm1503_vm8, %v1473_v23, %v4484_v0  ;;  %v1507_v19 = vsel %vm1503_vm8, %v1474_v57, %v4485_v2  ;;  %v4495_v47 = vunpack.i.h.bf16 %v6611_v46  ;;  %v4494_v7 = vunpack.i.l.bf16 %v6611_v46 }
 0x15b   : > { %v7092_v11 = vpop.permute.xlu1 %4602  ;;  %v4490_v13 = vunpack.i.h.bf16 %v6642_v52  ;;  %v4489_v58 = vunpack.i.l.bf16 %v6642_v52  ;;  %v4560_v37 = vunpack.i.h.bf16 %v6947_v8  ;;  %v4559_v34 = vunpack.i.l.bf16 %v6947_v8 }
 0x15c   : > { %v1504_v61 = vsel %vm1503_vm8, %v1471_v60, %v4479_v5  ;;  %v1505_v23 = vsel %vm1503_vm8, %v1472_v48, %v4480_v18  ;;  %v1539_v57 = vsel %vm1536_vm9, %v1506_v62, %v4564_v20  ;;  %v1540_v45 = vsel %vm1536_vm9, %v1507_v19, %v4565_v41 }
 0x15d   : > { %v7111_v53 = vpop.permute.xlu0 %4597  ;;  %v4570_v46 = vunpack.i.h.bf16 %v6994_v35  ;;  %v4569_v2 = vunpack.i.l.bf16 %v6994_v35  ;;  %v1509_v60 = vsel %vm1503_vm8, %v1476_v56, %v4490_v13  ;;  %v1537_v18 = vsel %vm1536_vm9, %v1504_v61, %v4559_v34 }
 0x15e   : > { %v1538_v5 = vsel %vm1536_vm9, %v1505_v23, %v4560_v37  ;;  %v4500_v41 = vunpack.i.h.bf16 %v6689_v54  ;;  %v4499_v19 = vunpack.i.l.bf16 %v6689_v54  ;;  %v4580_v61 = vunpack.i.h.bf16 %v7035_v16 }
 0x15f   : > { %v4613_v25 = vpop.permute.xlu1 %4612  ;;  %v1542_v34 = vsel %vm1536_vm9, %v1509_v60, %v4570_v46 }
 0x160   : > { %v4615_v29 = vunpack.i.h.bf16 %v4613_v25  ;;  %v4614_v6 = vunpack.i.l.bf16 %v4613_v25  ;;  %v1508_v25 = vsel %vm1503_vm8, %v1475_v51, %v4489_v58  ;;  %v4574_v51 = vunpack.i.l.bf16 %v6963_v40 }
 0x161   : > { %v4608_v52 = vpop.permute.xlu0 %4607  ;;  %v1541_v13 = vsel %vm1536_vm9, %v1508_v25, %v4569_v2  ;;  %v1511_v2 = vsel %vm1503_vm8, %v7072_v39, %v4495_v47 }
 0x162   : > { %v1572_v0 = vsel %vm1569_vm10, %v1539_v57, %v4614_v6  ;;  %v1573_v8 = vsel %vm1569_vm10, %v1540_v45, %v4615_v29  ;;  %v4610_v21 = vunpack.i.h.bf16 %v4608_v52  ;;  %v4609_v1 = vunpack.i.l.bf16 %v4608_v52 }
 0x163   : > { %v4623_v48 = vpop.permute.xlu1 %4622  ;;  %v1603_v62 = vpack.c.bf16 %v1573_v8, %v1572_v0  ;;  %v4575_v29 = vunpack.i.h.bf16 %v6963_v40  ;;  %v4429_v57 = vunpack.i.l.bf16 %v8890_v42  ;;  %v1510_v40 = vsel %vm1503_vm8, %v7065_v49, %v4494_v7 }
 0x164   : > { %v1570_v35 = vsel %vm1569_vm10, %v1537_v18, %v4609_v1  ;;  %v1571_v20 = vsel %vm1569_vm10, %v1538_v5, %v4610_v21  ;;  %v4579_v1 = vunpack.i.l.bf16 %v7035_v16  ;;  %v4625_v21 = vunpack.i.h.bf16 %v4623_v48 }
 0x165   : > { %v4618_v58 = vpop.permute.xlu0 %4617  ;;  %v1602_v56 = vpack.c.bf16 %v1571_v20, %v1570_v35  ;;  %v4624_v23 = vunpack.i.l.bf16 %v4623_v48  ;;  %v1512_v16 = vsel %vm1503_vm8, %v7090_v55, %v4499_v19  ;;  %v1513_v52 = vsel %vm1503_vm8, %v7096_v28, %v4500_v41  ;;  %v8891_v28 = vld [vmem:[#allocation50_spill] sm:$0xff] }
 0x166   : > { %v4620_v37 = vunpack.i.h.bf16 %v4618_v58  ;;  %v4619_v6 = vunpack.i.l.bf16 %v4618_v58  ;;  %v1543_v25 = vsel %vm1536_vm9, %v1510_v40, %v4574_v51  ;;  %v1544_v49 = vsel %vm1536_vm9, %v1511_v2, %v4575_v29 }
 0x167   : > { %3982 = vmatprep.mubr.msk.bf16.mxu0 %vm1654_vm11, %v1602_v56  ;;  %v4633_v54 = vpop.permute.xlu1 %4632  ;;  %v1545_v48 = vsel %vm1536_vm9, %v1512_v16, %v4579_v1  ;;  %v1546_v18 = vsel %vm1536_vm9, %v1513_v52, %v4580_v61  ;;  %v1576_v39 = vsel %vm1569_vm10, %v1543_v25, %v4624_v23  ;;  %v1577_v47 = vsel %vm1569_vm10, %v1544_v49, %v4625_v21 }
 0x168   : > { %v1574_v45 = vsel %vm1569_vm10, %v1541_v13, %v4619_v6  ;;  %v1575_v46 = vsel %vm1569_vm10, %v1542_v34, %v4620_v37  ;;  %3983 = vmatmul.mubr.msk.bf16.vlgmr.msra.gmra.mrb[0].mxu0 %vm1654_vm11, %v1603_v62  ;;  %v4445_v5 = vunpack.i.h.bf16 %v8891_v28  ;;  %v4444_v41 = vunpack.i.l.bf16 %v8891_v28 }
 0x169   : > { %v4628_v0 = vpop.permute.xlu0 %4627  ;;  %v1604_v8 = vpack.c.bf16 %v1575_v46, %v1574_v45  ;;  %v4505_v62 = vunpack.i.h.bf16 %v6676_v14  ;;  %v4504_v19 = vunpack.i.l.bf16 %v6676_v14  ;;  %v4510_v29 = vunpack.i.h.bf16 %v6730_v10 }
 0x16a   : > { %v4630_v7 = vunpack.i.h.bf16 %v4628_v0  ;;  %v4629_v60 = vunpack.i.l.bf16 %v4628_v0  ;;  %v4509_v51 = vunpack.i.l.bf16 %v6730_v10  ;;  %v4585_v56 = vunpack.i.h.bf16 %v7022_v17 }
 0x16b   : > { %3986 = vmatprep.mubr.msk.bf16.mxu0 %vm1654_vm11, %v1604_v8  ;;  %v7163_v55 = vpop.permute.xlu1 %4642  ;;  %v4584_v13 = vunpack.i.l.bf16 %v7022_v17  ;;  %v4590_v34 = vunpack.i.h.bf16 %v7068_v4  ;;  %v1605_v37 = vpack.c.bf16 %v1577_v47, %v1576_v39  ;;  %v4589_v6 = vunpack.i.l.bf16 %v7068_v4 }
 0x16c   : > { %v1578_v35 = vsel %vm1569_vm10, %v1545_v48, %v4629_v60  ;;  %v1579_v20 = vsel %vm1569_vm10, %v1546_v18, %v4630_v7  ;;  %v4635_v61 = vunpack.i.h.bf16 %v4633_v54  ;;  %v4634_v1 = vunpack.i.l.bf16 %v4633_v54 }
 0x16d   : > { %v4638_v58 = vpop.permute.xlu0 %4637  ;;  %v1606_v21 = vpack.c.bf16 %v1579_v20, %v1578_v35  ;;  %v1483_v14 = vsel %vm1470_vm7, %v6967_v38, %v4429_v57  ;;  %v8892_v23 = vunpack.i.h.bf16 %v8890_v42  ;;  %v7188_v4 = vsel %vm1470_vm7, %v6975_v9, %v4444_v41 }
 0x16e   : > { %v4640_v40 = vunpack.i.h.bf16 %v4638_v58  ;;  %v4639_v45 = vunpack.i.l.bf16 %v4638_v58  ;;  %v7192_v54 = vsel %vm1470_vm7, %v6980_v36, %v4445_v5  ;;  %v1514_v38 = vsel %vm1503_vm8, %v7082_v12, %v4504_v19  ;;  %v8894_v58 = vld [vmem:[#allocation52_spill] sm:$0xff] }
 0x16f   : > { %v1484_v10 = vsel %vm1470_vm7, %v6971_v32, %v8892_v23  ;;  %v7184_v17 = vpop.permute.xlu1 %4652  ;;  %v1515_v32 = vsel %vm1503_vm8, %v7086_v27, %v4505_v62  ;;  %v1516_v57 = vsel %vm1503_vm8, %v1483_v14, %v4509_v51  ;;  %v1547_v9 = vsel %vm1536_vm9, %v1514_v38, %v4584_v13  ;;  %v8893_v27 = vld [vmem:[#allocation51_spill] sm:$0xff] }
 0x170   : > { %3987 = vmatmul.mubr.msk.bf16.gmra.mrb[4].mxu0 %vm1654_vm11, %v1605_v37  ;;  %v1517_v46 = vsel %vm1503_vm8, %v1484_v10, %v4510_v29  ;;  %v1548_v2 = vsel %vm1536_vm9, %v1515_v32, %v4585_v56  ;;  %v1549_v36 = vsel %vm1536_vm9, %v1516_v57, %v4589_v6  ;;  %v1580_v12 = vsel %vm1569_vm10, %v1547_v9, %v4634_v1 }
 0x171   : > { %v4648_v42 = vpop.permute.xlu0 %4647  ;;  %3990 = vmatprep.mubr.msk.bf16.mxu0 %vm1654_vm11, %v1606_v21  ;;  %v1550_v16 = vsel %vm1536_vm9, %v1517_v46, %v4590_v34  ;;  %v1581_v52 = vsel %vm1569_vm10, %v1548_v2, %v4635_v61  ;;  %v4440_v0 = vunpack.i.h.bf16 %v8893_v27  ;;  %v4439_v8 = vunpack.i.l.bf16 %v8893_v27 }
 0x172   : > { %v1582_v25 = vsel %vm1569_vm10, %v1549_v36, %v4639_v45  ;;  %v1583_v49 = vsel %vm1569_vm10, %v1550_v16, %v4640_v40  ;;  %v4515_v7 = vunpack.i.h.bf16 %v6699_v22  ;;  %v4514_v60 = vunpack.i.l.bf16 %v6699_v22 }
 0x173   : > { %v4520_v48 = vunpack.i.h.bf16 %v6777_v26  ;;  %v4519_v18 = vunpack.i.l.bf16 %v6777_v26  ;;  %v4595_v47 = vunpack.i.h.bf16 %v7051_v59  ;;  %v4594_v28 = vunpack.i.l.bf16 %v7051_v59  ;;  %v7220_v41 = vpop.permute.xlu1 %4662 }
 0x174   : > { %v4600_v5 = vunpack.i.h.bf16 %v7111_v53  ;;  %v1607_v35 = vpack.c.bf16 %v1581_v52, %v1580_v12  ;;  %v4599_v20 = vunpack.i.l.bf16 %v7111_v53  ;;  %v4645_v62 = vunpack.i.h.bf16 %v7163_v55 }
 0x175   : > { %v7215_v39 = vpop.permute.xlu0 %4657  ;;  %v4644_v22 = vunpack.i.l.bf16 %v7163_v55  ;;  %v1608_v19 = vpack.c.bf16 %v1583_v49, %v1582_v25  ;;  %v1487_v26 = vsel %vm1470_vm7, %v6984_v24, %v4439_v8  ;;  %v1488_v29 = vsel %vm1470_vm7, %v6988_v50, %v4440_v0 }
 0x176   : > { %v4650_v51 = vunpack.i.h.bf16 %v4648_v42  ;;  %v4649_v59 = vunpack.i.l.bf16 %v4648_v42  ;;  %v4455_v56 = vunpack.i.h.bf16 %v8894_v58  ;;  %v4454_v13 = vunpack.i.l.bf16 %v8894_v58  ;;  %v8896_v42 = vld [vmem:[#allocation5_spill] sm:$0xff] }
 0x177   : > { %v1518_v53 = vsel %vm1503_vm8, %v7100_v31, %v4514_v60  ;;  %v1519_v55 = vsel %vm1503_vm8, %v7106_v43, %v4515_v7  ;;  %v1520_v24 = vsel %vm1503_vm8, %v1487_v26, %v4519_v18  ;;  %v1521_v50 = vsel %vm1503_vm8, %v1488_v29, %v4520_v48  ;;  %v8895_v43 = vld [vmem:[#allocation53_spill] sm:$0xff]  ;;  %v7249_v45 = vpop.permute.xlu1 %4672 }
 0x178   : > { %3991 = vmatmul.mubr.msk.bf16.gmra.mrb[8].mxu0 %vm1654_vm11, %v1607_v35  ;;  %v1551_v37 = vsel %vm1536_vm9, %v1518_v53, %v4594_v28  ;;  %v1552_v6 = vsel %vm1536_vm9, %v1519_v55, %v4595_v47  ;;  %v1553_v61 = vsel %vm1536_vm9, %v1520_v24, %v4599_v20  ;;  %v1554_v1 = vsel %vm1536_vm9, %v1521_v50, %v4600_v5  ;;  %v8897_v5 = vld [vmem:[#allocation13_spill] sm:$0xff] }
 0x179   : > { %v4668_v34 = vpop.permute.xlu0 %4667  ;;  %3994 = vmatprep.mubr.msk.bf16.mxu0 %vm1654_vm11, %v1608_v19  ;;  %v1584_v31 = vsel %vm1569_vm10, %v1551_v37, %v4644_v22  ;;  %v1585_v21 = vsel %vm1569_vm10, %v1552_v6, %v4645_v62  ;;  %v4450_v14 = vunpack.i.h.bf16 %v8895_v43  ;;  %v4449_v23 = vunpack.i.l.bf16 %v8895_v43  ;;  %v8898_v19 = vld [vmem:[#allocation8_spill] sm:$0xff] }
 0x17a   : > { %v1586_v10 = vsel %vm1569_vm10, %v1553_v61, %v4649_v59  ;;  %v1587_v40 = vsel %vm1569_vm10, %v1554_v1, %v4650_v51  ;;  %v4525_v38 = vunpack.i.h.bf16 %v6764_v63  ;;  %v4524_v32 = vunpack.i.l.bf16 %v6764_v63  ;;  %v8899_v51 = vld [vmem:[#allocation7_spill] sm:$0xff]  ;;  %v8900_v61 = vld [vmem:[#allocation54_spill] sm:$0xff] }
 0x17b   : > { %v4530_v57 = vunpack.i.h.bf16 %v8896_v42  ;;  %v4529_v46 = vunpack.i.l.bf16 %v8896_v42  ;;  %v4605_v2 = vunpack.i.h.bf16 %v7092_v11  ;;  %v4604_v36 = vunpack.i.l.bf16 %v7092_v11  ;;  %v7281_v47 = vpop.permute.xlu1 %4682 }
 0x17c   : > { %v4655_v16 = vunpack.i.h.bf16 %v7184_v17  ;;  %v1609_v12 = vpack.c.bf16 %v1585_v21, %v1584_v31  ;;  %v4654_v52 = vunpack.i.l.bf16 %v7184_v17  ;;  %v4660_v27 = vunpack.i.h.bf16 %v7215_v39 }
 0x17d   : > { %v7255_v9 = vpop.permute.xlu0 %4677  ;;  %v4659_v0 = vunpack.i.l.bf16 %v7215_v39  ;;  %v1610_v63 = vpack.c.bf16 %v1587_v40, %v1586_v10  ;;  %v1493_v8 = vsel %vm1470_vm7, %v6992_v44, %v4454_v13  ;;  %v1494_v25 = vsel %vm1470_vm7, %v6998_v30, %v4455_v56 }
 0x17e   : > { %v4670_v49 = vunpack.i.h.bf16 %v4668_v34  ;;  %v4669_v7 = vunpack.i.l.bf16 %v4668_v34  ;;  %v1491_v11 = vsel %vm1470_vm7, %v7002_v33, %v4449_v23  ;;  %v1492_v17 = vsel %vm1470_vm7, %v7008_v15, %v4450_v14  ;;  %v8901_v23 = vld [vmem:[#allocation18_spill] sm:$0xff] }
 0x17f   : > { %v1522_v60 = vsel %vm1503_vm8, %v7188_v4, %v4524_v32  ;;  %v1523_v48 = vsel %vm1503_vm8, %v7192_v54, %v4525_v38  ;;  %v1524_v30 = vsel %vm1503_vm8, %v1491_v11, %v4529_v46  ;;  %v1525_v18 = vsel %vm1503_vm8, %v1492_v17, %v4530_v57  ;;  %v4693_v21 = vpop.permute.xlu1 %4692 }
 0x180   : > { %3995 = vmatmul.mubr.msk.bf16.gmra.mrb[12].mxu0 %vm1654_vm11, %v1609_v12  ;;  %v1555_v39 = vsel %vm1536_vm9, %v1522_v60, %v4604_v36  ;;  %v1556_v33 = vsel %vm1536_vm9, %v1523_v48, %v4605_v2  ;;  %v1557_v28 = vsel %vm1536_vm9, %v1524_v30, %v4659_v0  ;;  %v1558_v54 = vsel %vm1536_vm9, %v1525_v18, %v4660_v27  ;;  %v8902_v36 = vld [vmem:[#allocation3_spill] sm:$0xff]  ;;  %v8903_v0 = vld [vmem:[#allocation10_spill] sm:$0xff] }
 0x181   : > { %v4688_v44 = vpop.permute.xlu0 %4687  ;;  %3998 = vmatprep.mubr.msk.bf16.mxu0 %vm1654_vm11, %v1610_v63  ;;  %v1588_v15 = vsel %vm1569_vm10, %v1555_v39, %v4654_v52  ;;  %v1589_v4 = vsel %vm1569_vm10, %v1556_v33, %v4655_v16  ;;  %v4460_v35 = vunpack.i.h.bf16 %v8897_v5  ;;  %v4459_v20 = vunpack.i.l.bf16 %v8897_v5 }
 0x182   : > { %v1590_v62 = vsel %vm1569_vm10, %v1557_v28, %v4669_v7  ;;  %v1591_v22 = vsel %vm1569_vm10, %v1558_v54, %v4670_v49  ;;  %v4535_v26 = vunpack.i.h.bf16 %v8898_v19  ;;  %v4534_v29 = vunpack.i.l.bf16 %v8898_v19  ;;  %v8906_v54 = vld [vmem:[#allocation17_spill] sm:$0xff] }
 0x183   : > { %v4540_v59 = vunpack.i.h.bf16 %v8899_v51  ;;  %v4539_v58 = vunpack.i.l.bf16 %v8899_v51  ;;  %v4665_v56 = vunpack.i.h.bf16 %v7220_v41  ;;  %v4664_v13 = vunpack.i.l.bf16 %v7220_v41 }
 0x184   : > { %v4675_v53 = vunpack.i.h.bf16 %v7249_v45  ;;  %v1611_v55 = vpack.c.bf16 %v1589_v4, %v1588_v15  ;;  %v4674_v34 = vunpack.i.l.bf16 %v7249_v45  ;;  %v4680_v24 = vunpack.i.h.bf16 %v7255_v9  ;;  %v8905_v4 = vld [vmem:[#allocation15_spill] sm:$0xff] }
 0x185   : > { %v4679_v50 = vunpack.i.l.bf16 %v7255_v9  ;;  %v4698_v37 = vpop.permute.xlu0 %4697  ;;  %v1612_v6 = vpack.c.bf16 %v1591_v22, %v1590_v62  ;;  %v4465_v1 = vunpack.i.h.bf16 %v8900_v61  ;;  %v4464_v31 = vunpack.i.l.bf16 %v8900_v61  ;;  %v8907_v62 = vld [vmem:[#allocation19_spill] sm:$0xff] }
 0x186   : > { %v4690_v43 = vunpack.i.h.bf16 %v4688_v44  ;;  %v4689_v14 = vunpack.i.l.bf16 %v4688_v44  ;;  %v1495_v41 = vsel %vm1470_vm7, %v7020_v3, %v4459_v20  ;;  %v1496_v10 = vsel %vm1470_vm7, %v8901_v23, %v4460_v35  ;;  %v4703_v44 = vpop.permute.xlu1 %4702  ;;  %v8908_v22 = vld [vmem:[#allocation11_spill] sm:$0xff]  ;;  %v8914_v23 = vld [vmem:[#allocation4_spill] sm:$0xff] }
 0x187   : > { %v1526_v40 = vsel %vm1503_vm8, %v1493_v8, %v4534_v29  ;;  %v1527_v45 = vsel %vm1503_vm8, %v1494_v25, %v4535_v26  ;;  %v1528_v38 = vsel %vm1503_vm8, %v1495_v41, %v4539_v58  ;;  %v1529_v32 = vsel %vm1503_vm8, %v1496_v10, %v4540_v59  ;;  %v8904_v25 = vld [vmem:[#allocation9_spill] sm:$0xff] }
 0x188   : > { %3999 = vmatmul.mubr.msk.bf16.gmra.mrb[16].mxu0 %vm1654_vm11, %v1611_v55  ;;  %v1559_v42 = vsel %vm1536_vm9, %v1526_v40, %v4664_v13  ;;  %v1560_v57 = vsel %vm1536_vm9, %v1527_v45, %v4665_v56  ;;  %v1561_v9 = vsel %vm1536_vm9, %v1528_v38, %v4679_v50  ;;  %v1562_v2 = vsel %vm1536_vm9, %v1529_v32, %v4680_v24  ;;  %v8909_v24 = vld [vmem:[#allocation14_spill] sm:$0xff]  ;;  %v8915_v40 = vld [vmem:[#allocation16_spill] sm:$0xff] }
 0x189   : > { %4002 = vmatprep.mubr.msk.bf16.mxu0 %vm1654_vm11, %v1612_v6  ;;  %v1592_v46 = vsel %vm1569_vm10, %v1559_v42, %v4674_v34  ;;  %v1593_v3 = vsel %vm1569_vm10, %v1560_v57, %v4675_v53  ;;  %v4470_v16 = vunpack.i.h.bf16 %v8902_v36  ;;  %v4469_v12 = vunpack.i.l.bf16 %v8902_v36  ;;  %v4708_v11 = vpop.permute.xlu0 %4707  ;;  %v8916_v32 = vld [vmem:[#allocation40_spill] sm:$0xff] }
 0x18a   : > { %v1594_v52 = vsel %vm1569_vm10, %v1561_v9, %v4689_v14  ;;  %v1595_v27 = vsel %vm1569_vm10, %v1562_v2, %v4690_v43  ;;  %v4545_v63 = vunpack.i.h.bf16 %v8903_v0  ;;  %v4544_v8 = vunpack.i.l.bf16 %v8903_v0  ;;  %v4713_v6 = vpop.permute.xlu1 %4712  ;;  %v8912_v43 = vld [vmem:[#allocation6_spill] sm:$0xff] }
 0x18b   : > { %v4550_v49 = vunpack.i.h.bf16 %v8904_v25  ;;  %v4549_v7 = vunpack.i.l.bf16 %v8904_v25  ;;  %v4685_v17 = vunpack.i.h.bf16 %v7281_v47  ;;  %v4684_v60 = vunpack.i.l.bf16 %v7281_v47 }
 0x18c   : > { %v4695_v48 = vunpack.i.h.bf16 %v4693_v21  ;;  %v1613_v30 = vpack.c.bf16 %v1593_v3, %v1592_v46  ;;  %v4694_v18 = vunpack.i.l.bf16 %v4693_v21  ;;  %v4700_v39 = vunpack.i.h.bf16 %v4698_v37 }
 0x18d   : > { %v4699_v33 = vunpack.i.l.bf16 %v4698_v37  ;;  %v1614_v15 = vpack.c.bf16 %v1595_v27, %v1594_v52  ;;  %v1497_v28 = vsel %vm1470_vm7, %v8905_v4, %v4464_v31  ;;  %v1498_v5 = vsel %vm1470_vm7, %v8906_v54, %v4465_v1  ;;  %v8910_v31 = vld [vmem:[#allocation24_spill] sm:$0xff] }
 0x18e   : > { %v4710_v35 = vunpack.i.h.bf16 %v4708_v11  ;;  %v4709_v20 = vunpack.i.l.bf16 %v4708_v11  ;;  %v1499_v47 = vsel %vm1470_vm7, %v8907_v62, %v4469_v12  ;;  %v1500_v19 = vsel %vm1470_vm7, %v8908_v22, %v4470_v16  ;;  %v7443_v22 = vld [vmem:[%s8629_s2] ss:$0 sm:$0xff] }
 0x18f   : > { %v1530_v26 = vsel %vm1503_vm8, %v1497_v28, %v4544_v8  ;;  %v1531_v29 = vsel %vm1503_vm8, %v1498_v5, %v4545_v63  ;;  %v1532_v51 = vsel %vm1503_vm8, %v1499_v47, %v4549_v7  ;;  %v1533_v59 = vsel %vm1503_vm8, %v1500_v19, %v4550_v49 }
 0x190   : > { %4003 = vmatmul.mubr.msk.bf16.gmra.mrb[20].mxu0 %vm1654_vm11, %v1613_v30  ;;  %v1563_v58 = vsel %vm1536_vm9, %v1530_v26, %v4684_v60  ;;  %v1564_v56 = vsel %vm1536_vm9, %v1531_v29, %v4685_v17  ;;  %v1565_v55 = vsel %vm1536_vm9, %v1532_v51, %v4699_v33  ;;  %v1566_v34 = vsel %vm1536_vm9, %v1533_v59, %v4700_v39  ;;  %v7448_v26 = vld [vmem:[%s8630_s3] ss:$0 sm:$0xff] }
 0x191   : > { %4006 = vmatprep.mubr.msk.bf16.mxu0 %vm1654_vm11, %v1614_v15  ;;  %v1596_v13 = vsel %vm1569_vm10, %v1563_v58, %v4694_v18  ;;  %v1597_v53 = vsel %vm1569_vm10, %v1564_v56, %v4695_v48  ;;  %v4475_v50 = vunpack.i.h.bf16 %v8909_v24  ;;  %v4474_v37 = vunpack.i.l.bf16 %v8909_v24 }
 0x192   : > { %v1598_v61 = vsel %vm1569_vm10, %v1565_v55, %v4709_v20  ;;  %v1599_v1 = vsel %vm1569_vm10, %v1566_v34, %v4710_v35  ;;  %v8911_v21 = vunpack.i.l.bf16 %v8910_v31  ;;  %v8913_v41 = vunpack.i.h.bf16 %v8910_v31 }
 0x193   : > { %v4555_v45 = vunpack.i.h.bf16 %v8915_v40  ;;  %v4554_v38 = vunpack.i.l.bf16 %v8915_v40  ;;  %v8917_v42 = vunpack.i.l.bf16 %v8916_v32  ;;  %v4705_v46 = vunpack.i.h.bf16 %v4703_v44 }
 0x194   : > { %v1435_v14 = vsel %vm1404_vm5, %v8912_v43, %v8911_v21  ;;  %v1436_v10 = vsel %vm1404_vm5, %v8914_v23, %v8913_v41  ;;  %v4704_v3 = vunpack.i.l.bf16 %v4703_v44  ;;  %v1615_v9 = vpack.c.bf16 %v1597_v53, %v1596_v13 }
 0x195   : > { %v1468_v57 = vsel %vm1437_vm6, %v1435_v14, %v8917_v42  ;;  %v8918_v2 = vunpack.i.h.bf16 %v8916_v32  ;;  %v4715_v16 = vunpack.i.h.bf16 %v4713_v6  ;;  %v4714_v12 = vunpack.i.l.bf16 %v4713_v6 }
 0x196   : > { %v1616_v52 = vpack.c.bf16 %v1599_v1, %v1598_v61  ;;  %v1501_v27 = vsel %vm1470_vm7, %v1468_v57, %v4474_v37  ;;  %v5436_v60 = vmov 0.0  }
 0x197   : > { %v1469_v36 = vsel %vm1437_vm6, %v1436_v10, %v8918_v2  ;;  %v1534_v63 = vsel %vm1503_vm8, %v1501_v27, %v4554_v38  ;;  %1985 = vst.msk [vmem:[#allocation2 + $0x30] sm:$0xff] %vm1338_vm3, %v5436_v60  ;;  %1986 = vst.msk [vmem:[#allocation2 + $0x38] sm:$0xff] %vm1338_vm3, %v5436_v60 }
 0x198   : > { %v1502_v0 = vsel %vm1470_vm7, %v1469_v36, %v4475_v50  ;;  %4007 = vmatmul.mubr.msk.bf16.gmra.mrb[24].mxu0 %vm1654_vm11, %v1615_v9  ;;  %v1567_v25 = vsel %vm1536_vm9, %v1534_v63, %v4704_v3  ;;  %1978 = vst.msk [vmem:[#allocation2] sm:$0xff] %vm1338_vm3, %v5436_v60  ;;  %1979 = vst.msk [vmem:[#allocation2 + $0x8] sm:$0xff] %vm1338_vm3, %v5436_v60 }
 0x199   : > { %v1535_v8 = vsel %vm1503_vm8, %v1502_v0, %v4555_v45  ;;  %4010 = vmatprep.mubr.msk.bf16.mxu0 %vm1654_vm11, %v1616_v52  ;;  %v1600_v7 = vsel %vm1569_vm10, %v1567_v25, %v4714_v12  ;;  %1982 = vst.msk [vmem:[#allocation2 + $0x18] sm:$0xff] %vm1338_vm3, %v5436_v60  ;;  %1983 = vst.msk [vmem:[#allocation2 + $0x20] sm:$0xff] %vm1338_vm3, %v5436_v60 }
 0x19a   : > { %v1568_v49 = vsel %vm1536_vm9, %v1535_v8, %v4705_v46  ;;  %1988 = vst.msk [vmem:[#allocation2 + $0x48] sm:$0xff] %vm1338_vm3, %v5436_v60  ;;  %1989 = vst.msk [vmem:[#allocation2 + $0x50] sm:$0xff] %vm1338_vm3, %v5436_v60 }
 0x19b   : > { %v1601_v11 = vsel %vm1569_vm10, %v1568_v49, %v4715_v16  ;;  %1991 = vst.msk [vmem:[#allocation2 + $0x60] sm:$0xff] %vm1338_vm3, %v5436_v60  ;;  %1992 = vst.msk [vmem:[#allocation2 + $0x68] sm:$0xff] %vm1338_vm3, %v5436_v60 }
 0x19c   : > { %v1617_v17 = vpack.c.bf16 %v1601_v11, %v1600_v7  ;;  %1994 = vst.msk [vmem:[#allocation2 + $0x78] sm:$0xff] %vm1338_vm3, %v5436_v60  ;;  %1995 = vst.msk [vmem:[#allocation2 + $0x80] sm:$0xff] %vm1338_vm3, %v5436_v60 }
 0x19d   : > { %1997 = vst.msk [vmem:[#allocation2 + $0x90] sm:$0xff] %vm1338_vm3, %v5436_v60  ;;  %1998 = vst.msk [vmem:[#allocation2 + $0x98] sm:$0xff] %vm1338_vm3, %v5436_v60 }
 0x19e   : > { %2000 = vst.msk [vmem:[#allocation2 + $0xa8] sm:$0xff] %vm1338_vm3, %v5436_v60  ;;  %2001 = vst.msk [vmem:[#allocation2 + $0xb0] sm:$0xff] %vm1338_vm3, %v5436_v60 }
 0x19f   : > { %2003 = vst.msk [vmem:[#allocation2 + $0xc0] sm:$0xff] %vm1338_vm3, %v5436_v60  ;;  %2004 = vst.msk [vmem:[#allocation2 + $0xc8] sm:$0xff] %vm1338_vm3, %v5436_v60  ;;  %v2066_v48 = vld [vmem:[#allocation2] sm:$0xff]  ;;  %v2067_v44 = vld [vmem:[#allocation2 + $0x8] sm:$0xff] }
 0x1a0   : > { %4011 = vmatmul.mubr.msk.bf16.gmra.mrb[28].mxu0 %vm1654_vm11, %v1617_v17  ;;  %2006 = vst.msk [vmem:[#allocation2 + $0xd8] sm:$0xff] %vm1338_vm3, %v5436_v60  ;;  %2007 = vst.msk [vmem:[#allocation2 + $0xe0] sm:$0xff] %vm1338_vm3, %v5436_v60  ;;  %v2168_v18 = vrot.slane %v2066_v48, 1  ;;  %v2169_v39 = vrot.slane %v2067_v44, 1  ;;  %v2248_v54 = vrot.slane %v2066_v48, 2  ;;  %v2249_v5 = vrot.slane %v2067_v44, 2 }
 0x1a1   : > { %2009 = vst.msk [vmem:[#allocation2 + $0xf0] sm:$0xff] %vm1338_vm3, %v5436_v60  ;;  %2010 = vst.msk [vmem:[#allocation2 + $0xf8] sm:$0xff] %vm1338_vm3, %v5436_v60 }
 0x1a2   : > { %2012 = vst.msk [vmem:[#allocation2 + $0x108] sm:$0xff] %vm1338_vm3, %v5436_v60  ;;  %2013 = vst.msk [vmem:[#allocation2 + $0x110] sm:$0xff] %vm1338_vm3, %v5436_v60  ;;  %v2170_v15 = vsel %vm382_vm0, %v2168_v18, %v2169_v39  ;;  %v2250_v20 = vsel %vm463_vm1, %v2248_v54, %v2249_v5 }
 0x1a3   : > { %2015 = vst.msk [vmem:[#allocation2 + $0x120] sm:$0xff] %vm1338_vm3, %v5436_v60  ;;  %2016 = vst.msk [vmem:[#allocation2 + $0x128] sm:$0xff] %vm1338_vm3, %v5436_v60 }
 0x1a4   : > { %2018 = vst.msk [vmem:[#allocation2 + $0x138] sm:$0xff] %vm1338_vm3, %v5436_v60  ;;  %2019 = vst.msk [vmem:[#allocation2 + $0x140] sm:$0xff] %vm1338_vm3, %v5436_v60 }
 0x1a5   : > { %2021 = vst.msk [vmem:[#allocation2 + $0x150] sm:$0xff] %vm1338_vm3, %v5436_v60  ;;  %2022 = vst.msk [vmem:[#allocation2 + $0x158] sm:$0xff] %vm1338_vm3, %v5436_v60 }
 0x1a6   : > { %2024 = vst.msk [vmem:[#allocation2 + $0x168] sm:$0xff] %vm1338_vm3, %v5436_v60  ;;  %2025 = vst.msk [vmem:[#allocation2 + $0x170] sm:$0xff] %vm1338_vm3, %v5436_v60 }
 0x1a7   : > { %2027 = vst.msk [vmem:[#allocation2 + $0x180] sm:$0xff] %vm1338_vm3, %v5436_v60  ;;  %2028 = vst.msk [vmem:[#allocation2 + $0x188] sm:$0xff] %vm1338_vm3, %v5436_v60 }
 0x1a8   : > { %2030 = vst.msk [vmem:[#allocation2 + $0x198] sm:$0xff] %vm1338_vm3, %v5436_v60  ;;  %2031 = vst.msk [vmem:[#allocation2 + $0x1a0] sm:$0xff] %vm1338_vm3, %v5436_v60 }
 0x1a9   : > { %1987 = vst.msk [vmem:[#allocation2 + $0x40] sm:$0x3] %vm1980_vm12, %v5436_v60  ;;  %1981 = vst.msk [vmem:[#allocation2 + $0x10] sm:$0x3] %vm1980_vm12, %v5436_v60 }
 0x1aa   : > { %1984 = vst.msk [vmem:[#allocation2 + $0x28] sm:$0x3] %vm1980_vm12, %v5436_v60  ;;  %1990 = vst.msk [vmem:[#allocation2 + $0x58] sm:$0x3] %vm1980_vm12, %v5436_v60 }
 0x1ab   : > { %1993 = vst.msk [vmem:[#allocation2 + $0x70] sm:$0x3] %vm1980_vm12, %v5436_v60  ;;  %1996 = vst.msk [vmem:[#allocation2 + $0x88] sm:$0x3] %vm1980_vm12, %v5436_v60 }
 0x1ac   : > { %1999 = vst.msk [vmem:[#allocation2 + $0xa0] sm:$0x3] %vm1980_vm12, %v5436_v60  ;;  %2002 = vst.msk [vmem:[#allocation2 + $0xb8] sm:$0x3] %vm1980_vm12, %v5436_v60 }
 0x1ad   : > { %2005 = vst.msk [vmem:[#allocation2 + $0xd0] sm:$0x3] %vm1980_vm12, %v5436_v60  ;;  %2008 = vst.msk [vmem:[#allocation2 + $0xe8] sm:$0x3] %vm1980_vm12, %v5436_v60 }
 0x1ae   : > { %2011 = vst.msk [vmem:[#allocation2 + $0x100] sm:$0x3] %vm1980_vm12, %v5436_v60  ;;  %2014 = vst.msk [vmem:[#allocation2 + $0x118] sm:$0x3] %vm1980_vm12, %v5436_v60 }
 0x1af   : > { %2017 = vst.msk [vmem:[#allocation2 + $0x130] sm:$0x3] %vm1980_vm12, %v5436_v60  ;;  %2020 = vst.msk [vmem:[#allocation2 + $0x148] sm:$0x3] %vm1980_vm12, %v5436_v60 }
 0x1b0   : > { %2023 = vst.msk [vmem:[#allocation2 + $0x160] sm:$0x3] %vm1980_vm12, %v5436_v60  ;;  %2026 = vst.msk [vmem:[#allocation2 + $0x178] sm:$0x3] %vm1980_vm12, %v5436_v60  ;;  %v2068_v30 = vld [vmem:[#allocation2 + $0x10] sm:$0x3] }
 0x1b1   : > { %2029 = vst.msk [vmem:[#allocation2 + $0x190] sm:$0x3] %vm1980_vm12, %v5436_v60  ;;  %2032 = vst.msk [vmem:[#allocation2 + $0x1a8] sm:$0x3] %vm1980_vm12, %v5436_v60  ;;  %v2171_v33 = vrot.slane %v2068_v30, 1  ;;  %v2251_v35 = vrot.slane %v2068_v30, 2 }
 0x1b3   : > { %v2172_v4 = vsel %vm382_vm0, %v2169_v39, %v2171_v33  ;;  %v2252_v62 = vsel %vm463_vm1, %v2249_v5, %v2251_v35 }
 0x1b4   : > { %v4716_v28 = vpack.i.bf16 %v2172_v4, %v2170_v15  ;;  %v4721_v47 = vpack.i.bf16 %v2252_v62, %v2250_v20 }
 0x1b6   : > { %4717 = vrot.lane.b32.xlu0 %v4716_v28, %s5428_s30 }
 0x1ba   : > { %4722 = vrot.lane.b32.xlu0 %v4721_v47, %s5429_s8 }
 0x23b   : > { %v3984_v19 = vpop.f32.mrb[0].mxu0 }
 0x23c   : > { %v1877_v29 = vmul.f32 %v3984_v19, %v7443_v22  ;;  %v1741_v51 = vpop.f32.mrb[1].mxu0 }
 0x23d   : > { %v1875_v59 = vmul.f32 %v7443_v22, %v1741_v51  ;;  %v3985_v58 = vpop.f32.mrb[2].mxu0 }
 0x23e   : > { %v1916_v56 = vadd.f32 %v7448_v26, %v1877_v29  ;;  %v1878_v13 = vmul.f32 %v3985_v58, %v7443_v22  ;;  %v1744_v53 = vpop.f32.mrb[3].mxu0 }
 0x23f   : > { %v1914_v55 = vadd.f32 %v7448_v26, %v1875_v59  ;;  %v1876_v34 = vmul.f32 %v7443_v22, %v1744_v53 }
 0x240   : > { %v1948_v24 = vmax.f32 %v1916_v56, 0.0  ;;  %v1917_v50 = vadd.f32 %v7448_v26, %v1878_v13 }
 0x241   : > { %v1946_v37 = vmax.f32 %v1914_v55, 0.0  ;;  %v1915_v6 = vadd.f32 %v7448_v26, %v1876_v34 }
 0x242   : > { %2036 = vst.msk [vmem:[#allocation2 + $0x31] sm:$0xff] %vm1338_vm3, %v1948_v24  ;;  %v1949_v61 = vmax.f32 %v1917_v50, 0.0 }
 0x243   : > { %2034 = vst.msk [vmem:[#allocation2 + $0x19] sm:$0xff] %vm1338_vm3, %v1946_v37  ;;  %v1947_v1 = vmax.f32 %v1915_v6, 0.0  ;;  %v3988_v31 = vpop.f32.mrb[4].mxu0 }
 0x244   : > { %2037 = vst.msk [vmem:[#allocation2 + $0x39] sm:$0xff] %vm1338_vm3, %v1949_v61  ;;  %v1881_v21 = vmul.f32 %v3988_v31, %v7443_v22  ;;  %v1757_v43 = vpop.f32.mrb[5].mxu0 }
 0x245   : > { %2035 = vst.msk [vmem:[#allocation2 + $0x21] sm:$0xff] %vm1338_vm3, %v1947_v1  ;;  %v1879_v14 = vmul.f32 %v7443_v22, %v1757_v43  ;;  %v3989_v41 = vpop.f32.mrb[6].mxu0 }
 0x246   : > { %v1920_v23 = vadd.f32 %v7448_v26, %v1881_v21  ;;  %v1882_v10 = vmul.f32 %v3989_v41, %v7443_v22  ;;  %v1760_v40 = vpop.f32.mrb[7].mxu0 }
 0x247   : > { %v1918_v45 = vadd.f32 %v7448_v26, %v1879_v14  ;;  %v1880_v38 = vmul.f32 %v7443_v22, %v1760_v40 }
 0x248   : > { %v1952_v32 = vmax.f32 %v1920_v23, 0.0  ;;  %v1921_v42 = vadd.f32 %v7448_v26, %v1882_v10 }
 0x249   : > { %v1950_v57 = vmax.f32 %v1918_v45, 0.0  ;;  %v1919_v46 = vadd.f32 %v7448_v26, %v1880_v38  ;;  %v2072_v3 = vld [vmem:[#allocation2 + $0x30] sm:$0xff] }
 0x24a   : > { %2040 = vst.msk [vmem:[#allocation2 + $0x61] sm:$0xff] %vm1338_vm3, %v1952_v32  ;;  %v1953_v9 = vmax.f32 %v1921_v42, 0.0  ;;  %v2178_v52 = vrot.slane %v2072_v3, 1  ;;  %v2069_v4 = vld [vmem:[#allocation2 + $0x18] sm:$0xff]  ;;  %v2258_v28 = vrot.slane %v2072_v3, 2 }
 0x24b   : > { %2038 = vst.msk [vmem:[#allocation2 + $0x49] sm:$0xff] %vm1338_vm3, %v1950_v57  ;;  %v1951_v2 = vmax.f32 %v1919_v46, 0.0  ;;  %v3992_v36 = vpop.f32.mrb[8].mxu0  ;;  %v2073_v16 = vld [vmem:[#allocation2 + $0x38] sm:$0xff]  ;;  %v2074_v12 = vld [vmem:[#allocation2 + $0x40] sm:$0x3] }
 0x24c   : > { %2041 = vst.msk [vmem:[#allocation2 + $0x69] sm:$0xff] %vm1338_vm3, %v1953_v9  ;;  %v1885_v27 = vmul.f32 %v3992_v36, %v7443_v22  ;;  %v1773_v0 = vpop.f32.mrb[9].mxu0  ;;  %v4731_v63 = vpack.i.bf16 %v2073_v16, %v2072_v3  ;;  %v2179_v8 = vrot.slane %v2073_v16, 1  ;;  %v2181_v7 = vrot.slane %v2074_v12, 1  ;;  %v2070_v11 = vld [vmem:[#allocation2 + $0x20] sm:$0xff] }
 0x24d   : > { %2039 = vst.msk [vmem:[#allocation2 + $0x51] sm:$0xff] %vm1338_vm3, %v1951_v2  ;;  %v1883_v25 = vmul.f32 %v7443_v22, %v1773_v0  ;;  %v3993_v49 = vpop.f32.mrb[10].mxu0  ;;  %v2259_v17 = vrot.slane %v2073_v16, 2  ;;  %v2261_v18 = vrot.slane %v2074_v12, 2  ;;  %v2071_v54 = vld [vmem:[#allocation2 + $0x28] sm:$0x3]  ;;  %v4736_v62 = vpack.i.bf16 %v2070_v11, %v2069_v4 }
 0x24e   : > { %v1924_v60 = vadd.f32 %v7448_v26, %v1885_v27  ;;  %v1886_v48 = vmul.f32 %v3993_v49, %v7443_v22  ;;  %4732 = vrot.lane.b32.xlu0 %v4731_v63, %s5433_s12  ;;  %4727 = vrot.lane.b32.xlu1 %v4731_v63, %s5430_s9  ;;  %v1776_v44 = vpop.f32.mrb[11].mxu0  ;;  %v2180_v30 = vsel %vm382_vm0, %v2178_v52, %v2179_v8  ;;  %v2174_v58 = vrot.slane %v2070_v11, 1 }
 0x24f   : > { %v1922_v39 = vadd.f32 %v7448_v26, %v1883_v25  ;;  %v1884_v33 = vmul.f32 %v7443_v22, %v1776_v44  ;;  %v2182_v15 = vsel %vm382_vm0, %v2179_v8, %v2181_v7  ;;  %v2260_v29 = vsel %vm463_vm1, %v2258_v28, %v2259_v17  ;;  %v5361_v28 = vld [vmem:[%s8631_s4] sm:$0xff]  }
 0x250   : > { %v1956_v5 = vmax.f32 %v1924_v60, 0.0  ;;  %v1925_v35 = vadd.f32 %v7448_v26, %v1886_v48  ;;  %v4751_v20 = vpack.i.bf16 %v2182_v15, %v2180_v30  ;;  %v2262_v51 = vsel %vm463_vm1, %v2259_v17, %v2261_v18  ;;  %4014 = vmatprep.subr.bf16.mxu1 %v5361_v28 }
 0x251   : > { %v1954_v47 = vmax.f32 %v1922_v39, 0.0  ;;  %v1923_v19 = vadd.f32 %v7448_v26, %v1884_v33  ;;  %v2176_v56 = vrot.slane %v2071_v54, 1  ;;  %v2173_v55 = vrot.slane %v2069_v4, 1  ;;  %4015 = vmatpush3.bf16.msra.mxu1 %v5361_v28 }
 0x252   : > { %2044 = vst.msk [vmem:[#allocation2 + $0x91] sm:$0xff] %vm1338_vm3, %v1956_v5  ;;  %v1957_v59 = vmax.f32 %v1925_v35, 0.0  ;;  %4752 = vrot.lane.b32.xlu1 %v4751_v20, %s5431_s10  ;;  %4737 = vrot.lane.b32.xlu0 %v4736_v62, %s5430_s9  ;;  %v4756_v50 = vpack.i.bf16 %v2262_v51, %v2260_v29  ;;  %v2254_v37 = vrot.slane %v2070_v11, 2  ;;  %v2256_v21 = vrot.slane %v2071_v54, 2  ;;  %v2078_v11 = vld [vmem:[#allocation2 + $0x60] sm:$0xff]  ;;  %v7542_v5 = vld [vmem:[#allocation2 + $0x48] sm:$0xff] }
 0x253   : > { %2042 = vst.msk [vmem:[#allocation2 + $0x79] sm:$0xff] %vm1338_vm3, %v1954_v47  ;;  %v1955_v13 = vmax.f32 %v1923_v19, 0.0  ;;  %v3996_v53 = vpop.f32.mrb[12].mxu0  ;;  %v2175_v1 = vsel %vm382_vm0, %v2173_v55, %v2174_v58  ;;  %v2177_v31 = vsel %vm382_vm0, %v2174_v58, %v2176_v56  ;;  %v2253_v40 = vrot.slane %v2069_v4, 2  ;;  %v7516_v27 = vld [vmem:[#allocation2 + $0x68] sm:$0xff] }
 0x254   : > { %2045 = vst.msk [vmem:[#allocation2 + $0x99] sm:$0xff] %vm1338_vm3, %v1957_v59  ;;  %v1889_v34 = vmul.f32 %v3996_v53, %v7443_v22  ;;  %v1789_v24 = vpop.f32.mrb[13].mxu0  ;;  %v4771_v32 = vpack.i.bf16 %v2177_v31, %v2175_v1  ;;  %v2257_v3 = vsel %vm463_vm1, %v2254_v37, %v2256_v21  ;;  %v2080_v8 = vld [vmem:[#allocation2 + $0x70] sm:$0x3]  ;;  %v7528_v48 = vpack.i.bf16 %v7516_v27, %v2078_v11  ;;  %v5362_v31 = vld [vmem:[%s8631_s4 + $0x8] sm:$0xff]  }
 0x255   : > { %2043 = vst.msk [vmem:[#allocation2 + $0x81] sm:$0xff] %vm1338_vm3, %v1955_v13  ;;  %v1887_v6 = vmul.f32 %v7443_v22, %v1789_v24  ;;  %v3997_v61 = vpop.f32.mrb[14].mxu0  ;;  %v2255_v46 = vsel %vm463_vm1, %v2253_v40, %v2254_v37  ;;  %v7531_v18 = vld [vmem:[#allocation2 + $0x50] sm:$0xff]  ;;  %v2189_v39 = vrot.slane %v7516_v27, 1  ;;  %v2191_v33 = vrot.slane %v2080_v8, 1  ;;  %4016 = vmatprep.subr.bf16.mxu1 %v5362_v31 }
 0x256   : > { %v1928_v43 = vadd.f32 %v7448_v26, %v1889_v34  ;;  %v1890_v14 = vmul.f32 %v3997_v61, %v7443_v22  ;;  %4757 = vrot.lane.b32.xlu1 %v4756_v50, %s5432_s11  ;;  %4742 = vrot.lane.b32.xlu0 %v4751_v20, %s5428_s30  ;;  %v1792_v41 = vpop.f32.mrb[15].mxu0  ;;  %v7514_v52 = vpack.i.bf16 %v2257_v3, %v2255_v46  ;;  %v2188_v35 = vrot.slane %v2078_v11, 1  ;;  %v2077_v37 = vld [vmem:[#allocation2 + $0x58] sm:$0x3] }
 0x257   : > { %v1926_v23 = vadd.f32 %v7448_v26, %v1887_v6  ;;  %v1888_v10 = vmul.f32 %v7443_v22, %v1792_v41  ;;  %v7547_v47 = vpack.i.bf16 %v7531_v18, %v7542_v5  ;;  %v2192_v59 = vsel %vm382_vm0, %v2189_v39, %v2191_v33  ;;  %4017 = vmatpush3.bf16.msra.mxu1 %v5362_v31 }
 0x258   : > { %v1960_v45 = vmax.f32 %v1928_v43, 0.0  ;;  %v1929_v38 = vadd.f32 %v7448_v26, %v1890_v14  ;;  %v2190_v51 = vsel %vm382_vm0, %v2188_v35, %v2189_v39  ;;  %v2269_v58 = vrot.slane %v7516_v27, 2 }
 0x259   : > { %v1958_v42 = vmax.f32 %v1926_v23, 0.0  ;;  %v1927_v57 = vadd.f32 %v7448_v26, %v1888_v10  ;;  %v2271_v53 = vrot.slane %v2080_v8, 2  ;;  %v7563_v1 = vpack.i.bf16 %v2192_v59, %v2190_v51 }
 0x25a   : > { %2048 = vst.msk [vmem:[#allocation2 + $0xc1] sm:$0xff] %vm1338_vm3, %v1960_v45  ;;  %v1961_v9 = vmax.f32 %v1929_v38, 0.0  ;;  %4747 = vrot.lane.b32.xlu0 %v4756_v50, %s5429_s8  ;;  %4772 = vrot.lane.b32.xlu1 %v4771_v32, %s5428_s30  ;;  %v2184_v41 = vrot.slane %v7531_v18, 1  ;;  %v2186_v45 = vrot.slane %v2077_v37, 1  ;;  %v2264_v27 = vrot.slane %v7531_v18, 2 }
 0x25b   : > { %2046 = vst.msk [vmem:[#allocation2 + $0xa9] sm:$0xff] %vm1338_vm3, %v1958_v42  ;;  %v1959_v2 = vmax.f32 %v1927_v57, 0.0  ;;  %v4000_v36 = vpop.f32.mrb[16].mxu0  ;;  %v2272_v40 = vsel %vm463_vm1, %v2269_v58, %v2271_v53 }
 0x25c   : > { %2049 = vst.msk [vmem:[#allocation2 + $0xc9] sm:$0xff] %vm1338_vm3, %v1961_v9  ;;  %v1893_v16 = vmul.f32 %v4000_v36, %v7443_v22  ;;  %v1805_v12 = vpop.f32.mrb[17].mxu0  ;;  %v5363_v36 = vld [vmem:[%s8631_s4 + $0x10] sm:$0xff]  }
 0x25d   : > { %2047 = vst.msk [vmem:[#allocation2 + $0xb1] sm:$0xff] %vm1338_vm3, %v1959_v2  ;;  %v1891_v0 = vmul.f32 %v7443_v22, %v1805_v12  ;;  %v4001_v63 = vpop.f32.mrb[18].mxu0  ;;  %4018 = vmatprep.subr.bf16.mxu1 %v5363_v36 }
 0x25e   : > { %v1932_v25 = vadd.f32 %v7448_v26, %v1893_v16  ;;  %v1894_v49 = vmul.f32 %v4001_v63, %v7443_v22  ;;  %4762 = vrot.lane.b32.xlu0 %v4751_v20, %s5434_s17  ;;  %4777 = vrot.lane.b32.xlu1 %v7514_v52, %s5429_s8  ;;  %v1808_v7 = vpop.f32.mrb[19].mxu0 }
 0x25f   : > { %v1930_v17 = vadd.f32 %v7448_v26, %v1891_v0  ;;  %v1892_v60 = vmul.f32 %v7443_v22, %v1808_v7  ;;  %v2266_v0 = vrot.slane %v2077_v37, 2  ;;  %4019 = vmatpush3.bf16.msra.mxu1 %v5363_v36 }
 0x260   : > { %v1964_v44 = vmax.f32 %v1932_v25, 0.0  ;;  %v1933_v30 = vadd.f32 %v7448_v26, %v1894_v49 }
 0x261   : > { %v1962_v15 = vmax.f32 %v1930_v17, 0.0  ;;  %v1931_v4 = vadd.f32 %v7448_v26, %v1892_v60  ;;  %v5364_v17 = vld [vmem:[%s8631_s4 + $0x18] sm:$0xff]   ;;  %v2267_v33 = vsel %vm463_vm1, %v2264_v27, %v2266_v0 }
 0x262   : > { %2052 = vst.msk [vmem:[#allocation2 + $0xf1] sm:$0xff] %vm1338_vm3, %v1964_v44  ;;  %v1965_v54 = vmax.f32 %v1933_v30, 0.0  ;;  %4767 = vrot.lane.b32.xlu0 %v4756_v50, %s5435_s26  ;;  %4792 = vrot.lane.b32.xlu1 %v7528_v48, %s5430_s9  ;;  %v2268_v50 = vrot.slane %v2078_v11, 2  ;;  %v2263_v11 = vrot.slane %v7542_v5, 2 }
 0x263   : > { %2050 = vst.msk [vmem:[#allocation2 + $0xd9] sm:$0xff] %vm1338_vm3, %v1962_v15  ;;  %v1963_v20 = vmax.f32 %v1931_v4, 0.0  ;;  %v4004_v62 = vpop.f32.mrb[20].mxu0  ;;  %4020 = vmatprep.subr.bf16.mxu1 %v5364_v17 }
 0x264   : > { %2053 = vst.msk [vmem:[#allocation2 + $0xf9] sm:$0xff] %vm1338_vm3, %v1965_v54  ;;  %v1897_v19 = vmul.f32 %v4004_v62, %v7443_v22  ;;  %v1821_v29 = vpop.f32.mrb[21].mxu0  ;;  %v2270_v14 = vsel %vm463_vm1, %v2268_v50, %v2269_v58  ;;  %v2265_v39 = vsel %vm463_vm1, %v2263_v11, %v2264_v27  ;;  %4021 = vmatpush3.bf16.msra.mxu1 %v5364_v17  ;;  %v2086_v50 = vld [vmem:[#allocation2 + $0xa0] sm:$0x3] }
 0x265   : > { %2051 = vst.msk [vmem:[#allocation2 + $0xe1] sm:$0xff] %vm1338_vm3, %v1963_v20  ;;  %v1895_v56 = vmul.f32 %v7443_v22, %v1821_v29  ;;  %v4005_v13 = vpop.f32.mrb[22].mxu0  ;;  %v7582_v9 = vpack.i.bf16 %v2272_v40, %v2270_v14  ;;  %v4846_v35 = vpack.i.bf16 %v2267_v33, %v2265_v39  ;;  %v7618_v20 = vld [vmem:[%s8631_s4 + $0x20] ss:$0 sps:$4 sm:$0xff]   ;;  %v2201_v31 = vrot.slane %v2086_v50, 1 }
 0x266   : > { %v1936_v55 = vadd.f32 %v7448_v26, %v1897_v19  ;;  %v1898_v34 = vmul.f32 %v4005_v13, %v7443_v22  ;;  %4782 = vrot.lane.b32.xlu0 %v4771_v32, %s5431_s10  ;;  %4807 = vrot.lane.b32.xlu1 %v7547_v47, %s5433_s12  ;;  %v1824_v24 = vpop.f32.mrb[23].mxu0  ;;  %v2183_v32 = vrot.slane %v7542_v5, 1  ;;  %v2083_v40 = vld [vmem:[#allocation2 + $0x88] sm:$0x3] }
 0x267   : > { %v1934_v6 = vadd.f32 %v7448_v26, %v1895_v56  ;;  %v1896_v61 = vmul.f32 %v7443_v22, %v1824_v24  ;;  %4057 = vmatprep.subr.msk.bf16.mxu1 %vm1703_vm2, %v7618_v20  ;;  %v7640_v24 = vld [vmem:[#allocation2 + $0x98] sm:$0xff] }
 0x268   : > { %v1968_v21 = vmax.f32 %v1936_v55, 0.0  ;;  %v1937_v43 = vadd.f32 %v7448_v26, %v1898_v34  ;;  %v2185_v2 = vsel %vm382_vm0, %v2183_v32, %v2184_v41 }
 0x269   : > { %v1966_v23 = vmax.f32 %v1934_v6, 0.0  ;;  %v1935_v10 = vadd.f32 %v7448_v26, %v1896_v61  ;;  %v2082_v6 = vld [vmem:[#allocation2 + $0x80] sm:$0xff]  ;;  %v2199_v61 = vrot.slane %v7640_v24, 1 }
 0x26a   : > { %2056 = vst.msk [vmem:[#allocation2 + $0x121] sm:$0xff] %vm1338_vm3, %v1968_v21  ;;  %v1969_v38 = vmax.f32 %v1937_v43, 0.0  ;;  %4787 = vrot.lane.b32.xlu0 %v7514_v52, %s5432_s11  ;;  %4822 = vrot.lane.b32.xlu1 %v7563_v1, %s5431_s10  ;;  %v2187_v52 = vsel %vm382_vm0, %v2184_v41, %v2186_v45  ;;  %v2081_v21 = vld [vmem:[#allocation2 + $0x78] sm:$0xff] }
 0x26b   : > { %2054 = vst.msk [vmem:[#allocation2 + $0x109] sm:$0xff] %vm1338_vm3, %v1966_v23  ;;  %v1967_v42 = vmax.f32 %v1935_v10, 0.0  ;;  %v4008_v57 = vpop.f32.mrb[24].mxu0  ;;  %v4841_v30 = vpack.i.bf16 %v2187_v52, %v2185_v2  ;;  %v2202_v41 = vsel %vm382_vm0, %v2199_v61, %v2201_v31  ;;  %v2279_v23 = vrot.slane %v7640_v24, 2 }
 0x26c   : > { %2057 = vst.msk [vmem:[#allocation2 + $0x129] sm:$0xff] %vm1338_vm3, %v1969_v38  ;;  %v1901_v46 = vmul.f32 %v4008_v57, %v7443_v22  ;;  %v1837_v3 = vpop.f32.mrb[25].mxu0  ;;  %v2281_v10 = vrot.slane %v2086_v50, 2  ;;  %v2194_v57 = vrot.slane %v2082_v6, 1  ;;  %v2193_v2 = vrot.slane %v2081_v21, 1 }
 0x26d   : > { %2055 = vst.msk [vmem:[#allocation2 + $0x111] sm:$0xff] %vm1338_vm3, %v1967_v42  ;;  %v1899_v16 = vmul.f32 %v7443_v22, %v1837_v3  ;;  %v4009_v12 = vpop.f32.mrb[26].mxu0  ;;  %v7664_v3 = vld [vmem:[#allocation2 + $0xc8] sm:$0xff]  ;;  %v2273_v11 = vrot.slane %v2081_v21, 2 }
 0x26e   : > { %v1940_v63 = vadd.f32 %v7448_v26, %v1901_v46  ;;  %v1902_v8 = vmul.f32 %v4009_v12, %v7443_v22  ;;  %4797 = vrot.lane.b32.xlu0 %v7528_v48, %s5433_s12  ;;  %4827 = vrot.lane.b32.xlu1 %v7582_v9, %s5432_s11  ;;  %v1840_v25 = vpop.f32.mrb[27].mxu0  ;;  %v2282_v42 = vsel %vm463_vm1, %v2279_v23, %v2281_v10  ;;  %v2196_v46 = vrot.slane %v2083_v40, 1 }
 0x26f   : > { %v1938_v49 = vadd.f32 %v7448_v26, %v1899_v16  ;;  %v1900_v7 = vmul.f32 %v7443_v22, %v1840_v25  ;;  %v7671_v16 = vld [vmem:[#allocation2 + $0xc0] sm:$0xff]  ;;  %v2195_v12 = vsel %vm382_vm0, %v2193_v2, %v2194_v57  ;;  %v2209_v27 = vrot.slane %v7664_v3, 1 }
 0x270   : > { %v1972_v60 = vmax.f32 %v1940_v63, 0.0  ;;  %v1941_v44 = vadd.f32 %v7448_v26, %v1902_v8  ;;  %v2197_v52 = vsel %vm382_vm0, %v2194_v57, %v2196_v46  ;;  %v2274_v63 = vrot.slane %v2082_v6, 2 }
 0x271   : > { %v1970_v48 = vmax.f32 %v1938_v49, 0.0  ;;  %v1939_v18 = vadd.f32 %v7448_v26, %v1900_v7  ;;  %v2276_v8 = vrot.slane %v2083_v40, 2  ;;  %v2289_v25 = vrot.slane %v7664_v3, 2 }
 0x272   : > { %2060 = vst.msk [vmem:[#allocation2 + $0x151] sm:$0xff] %vm1338_vm3, %v1972_v60  ;;  %v1973_v15 = vmax.f32 %v1941_v44, 0.0  ;;  %4802 = vrot.lane.b32.xlu0 %v7547_v47, %s5430_s9  ;;  %4842 = vrot.lane.b32.xlu1 %v4841_v30, %s5428_s30  ;;  %v2208_v7 = vrot.slane %v7671_v16, 1  ;;  %v2288_v17 = vrot.slane %v7671_v16, 2  ;;  %v7684_v44 = vpack.i.bf16 %v2197_v52, %v2195_v12 }
 0x273   : > { %2058 = vst.msk [vmem:[#allocation2 + $0x139] sm:$0xff] %vm1338_vm3, %v1970_v48  ;;  %v1971_v4 = vmax.f32 %v1939_v18, 0.0  ;;  %v4012_v28 = vpop.f32.mrb[28].mxu0  ;;  %v7682_v60 = vld [vmem:[#allocation2 + $0x128] sm:$0xff]  ;;  %v2104_v18 = vld [vmem:[#allocation2 + $0x130] sm:$0x3]  ;;  %v2275_v39 = vsel %vm463_vm1, %v2273_v11, %v2274_v63  ;;  %v2277_v33 = vsel %vm463_vm1, %v2274_v63, %v2276_v8 }
 0x274   : > { %2061 = vst.msk [vmem:[#allocation2 + $0x159] sm:$0xff] %vm1338_vm3, %v1973_v15  ;;  %v1905_v54 = vmul.f32 %v4012_v28, %v7443_v22  ;;  %v1853_v5 = vpop.f32.mrb[29].mxu0  ;;  %v2290_v15 = vsel %vm463_vm1, %v2288_v17, %v2289_v25  ;;  %v7692_v28 = vld [vmem:[#allocation2 + $0x120] sm:$0xff] }
 0x275   : > { %2059 = vst.msk [vmem:[#allocation2 + $0x141] sm:$0xff] %vm1338_vm3, %v1971_v4  ;;  %v1903_v62 = vmul.f32 %v7443_v22, %v1853_v5  ;;  %v4013_v47 = vpop.f32.mrb[30].mxu0  ;;  %v2231_v5 = vrot.slane %v2104_v18, 1 }
 0x276   : > { %v1944_v19 = vadd.f32 %v7448_v26, %v1905_v54  ;;  %v1906_v29 = vmul.f32 %v4013_v47, %v7443_v22  ;;  %4812 = vrot.lane.b32.xlu0 %v7563_v1, %s5428_s30  ;;  %4847 = vrot.lane.b32.xlu1 %v4846_v35, %s5429_s8  ;;  %v1856_v51 = vpop.f32.mrb[31].mxu0  ;;  %v2229_v54 = vrot.slane %v7682_v60, 1  ;;  %v7701_v47 = vpack.i.bf16 %v2277_v33, %v2275_v39 }
 0x277   : > { %v1942_v59 = vadd.f32 %v7448_v26, %v1903_v62  ;;  %v1904_v58 = vmul.f32 %v7443_v22, %v1856_v51 }
 0x278   : > { %v1976_v56 = vmax.f32 %v1944_v19, 0.0  ;;  %v1945_v13 = vadd.f32 %v7448_v26, %v1906_v29  ;;  %v2228_v19 = vrot.slane %v7692_v28, 1  ;;  %v2311_v29 = vrot.slane %v2104_v18, 2  ;;  %v7759_v18 = vld [vmem:[#allocation2 + $0xb0] sm:$0xff] }
 0x279   : > { %v1974_v53 = vmax.f32 %v1942_v59, 0.0  ;;  %v1943_v55 = vadd.f32 %v7448_v26, %v1904_v58  ;;  %v7645_v26 = vld [vmem:[#allocation2 + $0x90] sm:$0xff]  ;;  %v2232_v50 = vsel %vm382_vm0, %v2229_v54, %v2231_v5 }
 0x27a   : > { %2064 = vst.msk [vmem:[#allocation2 + $0x181] sm:$0xff] %vm1338_vm3, %v1976_v56  ;;  %v1977_v34 = vmax.f32 %v1945_v13, 0.0  ;;  %4817 = vrot.lane.b32.xlu0 %v7582_v9, %s5429_s8  ;;  %4857 = vrot.lane.b32.xlu1 %v4841_v30, %s5434_s17  ;;  %v4871_v37 = vpack.i.bf16 %v7640_v24, %v7645_v26  ;;  %v2198_v43 = vrot.slane %v7645_v26, 1  ;;  %v2278_v45 = vrot.slane %v7645_v26, 2  ;;  %v7709_v13 = vld [vmem:[#allocation2 + $0x150] sm:$0xff] }
 0x27b   : > { %2062 = vst.msk [vmem:[#allocation2 + $0x169] sm:$0xff] %vm1338_vm3, %v1974_v53  ;;  %v1975_v22 = vmax.f32 %v1943_v55, 0.0  ;;  %v7704_v51 = vld [vmem:[#allocation2 + $0x158] sm:$0xff]  ;;  %v2110_v59 = vld [vmem:[#allocation2 + $0x160] sm:$0x3]  ;;  %v2308_v56 = vrot.slane %v7692_v28, 2  ;;  %v2230_v55 = vsel %vm382_vm0, %v2228_v19, %v2229_v54 }
 0x27c   : > { %2065 = vst.msk [vmem:[#allocation2 + $0x189] sm:$0xff] %vm1338_vm3, %v1977_v34  ;;  %v2200_v14 = vsel %vm382_vm0, %v2198_v43, %v2199_v61  ;;  %v2280_v32 = vsel %vm463_vm1, %v2278_v45, %v2279_v23  ;;  %v3479_v53 = vsel %vm1703_vm2, %v7618_v20, 0  ;;  %v2241_v61 = vrot.slane %v2110_v59, 1  ;;  %v7771_v54 = vld [vmem:[#allocation2 + $0xa8] sm:$0xff] }
 0x27d   : > { %2063 = vst.msk [vmem:[#allocation2 + $0x171] sm:$0xff] %vm1338_vm3, %v1975_v22  ;;  %v7660_v38 = vpack.i.bf16 %v2202_v41, %v2200_v14  ;;  %v7669_v36 = vpack.i.bf16 %v2282_v42, %v2280_v32  ;;  %4023 = vmatpush3.bf16.msra.mxu1 %v3479_v53  ;;  %v2238_v31 = vrot.slane %v7709_v13, 1  ;;  %v2321_v43 = vrot.slane %v2110_v59, 2 }
 0x27e   : > { %4832 = vrot.lane.b32.xlu0 %v7563_v1, %s5434_s17  ;;  %4862 = vrot.lane.b32.xlu1 %v4846_v35, %s5435_s26  ;;  %v4886_v1 = vpack.i.bf16 %v2082_v6, %v2081_v21  ;;  %v2239_v6 = vrot.slane %v7704_v51, 1  ;;  %v2319_v21 = vrot.slane %v7704_v51, 2  ;;  %v2318_v40 = vrot.slane %v7709_v13, 2 }
 0x27f   : > { %v7741_v52 = vpack.i.bf16 %v2232_v50, %v2230_v55  ;;  %v2204_v55 = vrot.slane %v7759_v18, 1  ;;  %v2203_v50 = vrot.slane %v7771_v54, 1 }
 0x280   : > { %v2240_v45 = vsel %vm382_vm0, %v2238_v31, %v2239_v6  ;;  %v2242_v32 = vsel %vm382_vm0, %v2239_v6, %v2241_v61  ;;  %v2322_v2 = vsel %vm463_vm1, %v2319_v21, %v2321_v43 }
 0x281   : > { %v2114_v12 = vld [vmem:[#allocation2 + $0x180] sm:$0xff] }
 0x282   : > { %4837 = vrot.lane.b32.xlu0 %v7582_v9, %s5435_s26  ;;  %4872 = vrot.lane.b32.xlu1 %v4871_v37, %s5430_s9  ;;  %v2092_v9 = vld [vmem:[#allocation2 + $0xd0] sm:$0x3]  ;;  %v2336_v5 = vrot.slane %v2114_v12, 2 }
 0x283   : > { %v2211_v0 = vrot.slane %v2092_v9, 1  ;;  %v2291_v49 = vrot.slane %v2092_v9, 2  ;;  %v2115_v42 = vld [vmem:[#allocation2 + $0x188] sm:$0xff]  ;;  %v2320_v9 = vsel %vm463_vm1, %v2318_v40, %v2319_v21  ;;  %v2094_v40 = vld [vmem:[#allocation2 + $0xe0] sm:$0xff] }
 0x284   : > { %v7718_v34 = vld [vmem:[#allocation2 + $0x170] sm:$0xff]  ;;  %v2113_v22 = vld [vmem:[#allocation2 + $0x178] sm:$0x3]  ;;  %v2332_v11 = vrot.slane %v2115_v42, 1  ;;  %v7755_v17 = vpack.i.bf16 %v2322_v2, %v2320_v9 }
 0x285   : > { %v2212_v48 = vsel %vm382_vm0, %v2209_v27, %v2211_v0  ;;  %v2292_v4 = vsel %vm463_vm1, %v2289_v25, %v2291_v49  ;;  %v2244_v14 = vrot.slane %v7718_v34, 1  ;;  %v2246_v41 = vrot.slane %v2113_v22, 1  ;;  %v2093_v9 = vld [vmem:[#allocation2 + $0xd8] sm:$0xff] }
 0x286   : > { %4852 = vrot.lane.b32.xlu0 %v4841_v30, %s5431_s10  ;;  %4887 = vrot.lane.b32.xlu1 %v4886_v1, %s5433_s12  ;;  %v2210_v30 = vsel %vm382_vm0, %v2208_v7, %v2209_v27  ;;  %v7706_v58 = vpack.i.bf16 %v2292_v4, %v2290_v15  ;;  %v2324_v23 = vrot.slane %v7718_v34, 2  ;;  %v2326_v10 = vrot.slane %v2113_v22, 2  ;;  %v2116_v7 = vld [vmem:[#allocation2 + $0x190] sm:$0x3] }
 0x287   : > { %v7699_v62 = vpack.i.bf16 %v2212_v48, %v2210_v30  ;;  %v2247_v63 = vsel %vm382_vm0, %v2244_v14, %v2246_v41  ;;  %v7753_v49 = vpack.i.bf16 %v2242_v32, %v2240_v45  ;;  %v2331_v30 = vrot.slane %v2114_v12, 1  ;;  %v2095_v45 = vld [vmem:[#allocation2 + $0xe8] sm:$0x3]  ;;  %v7816_v32 = vld [vmem:[#allocation2 + $0xf0] sm:$0xff] }
 0x288   : > { %v2327_v25 = vsel %vm463_vm1, %v2324_v23, %v2326_v10  ;;  %v4951_v48 = vpack.i.bf16 %v7664_v3, %v7671_v16  ;;  %v2334_v4 = vrot.slane %v2116_v7, 1  ;;  %v2337_v3 = vrot.slane %v2115_v42, 2  ;;  %v2098_v10 = vld [vmem:[#allocation2 + $0x100] sm:$0x3]  ;;  %8922 = vst [vmem:[#allocation22_spill] sm:$0xff] %v7816_v32 }
 0x289   : > { %v2333_v15 = vsel %vm382_vm0, %v2331_v30, %v2332_v11  ;;  %v2339_v16 = vrot.slane %v2116_v7, 2  ;;  %v2213_v7 = vrot.slane %v2093_v9, 1 }
 0x28a   : > { %4867 = vrot.lane.b32.xlu0 %v4846_v35, %s5432_s11  ;;  %4902 = vrot.lane.b32.xlu1 %v7660_v38, %s5431_s10  ;;  %v2309_v35 = vrot.slane %v7682_v60, 2  ;;  %v2335_v19 = vsel %vm382_vm0, %v2332_v11, %v2334_v4  ;;  %v2338_v59 = vsel %vm463_vm1, %v2336_v5, %v2337_v3  ;;  %v2301_v5 = vrot.slane %v2098_v10, 2 }
 0x28c   : > { %v2312_v20 = vsel %vm463_vm1, %v2309_v35, %v2311_v29  ;;  %v7776_v29 = vpack.i.bf16 %v2335_v19, %v2333_v15  ;;  %v2296_v19 = vrot.slane %v2095_v45, 2 }
 0x28e   : > { %4877 = vrot.lane.b32.xlu0 %v4871_v37, %s5433_s12  ;;  %4907 = vrot.lane.b32.xlu1 %v7669_v36, %s5432_s11  ;;  %v2310_v37 = vsel %vm463_vm1, %v2308_v56, %v2309_v35  ;;  %v4966_v35 = vpack.i.bf16 %v7759_v18, %v7771_v54  ;;  %8919 = vst [vmem:[#allocation12_spill] sm:$0xff] %v7776_v29 }
 0x28f   : > { %v7743_v27 = vpack.i.bf16 %v2312_v20, %v2310_v37  ;;  %v2340_v56 = vsel %vm463_vm1, %v2337_v3, %v2339_v16  ;;  %v2205_v37 = vsel %vm382_vm0, %v2203_v50, %v2204_v55  ;;  %v2283_v20 = vrot.slane %v7771_v54, 2 }
 0x290   : > { %v7780_v53 = vpack.i.bf16 %v2340_v56, %v2338_v59  ;;  %v2298_v59 = vrot.slane %v7816_v32, 2  ;;  %v2293_v56 = vrot.slane %v2093_v9, 2 }
 0x292   : > { %4882 = vrot.lane.b32.xlu0 %v4886_v1, %s5430_s9  ;;  %4922 = vrot.lane.b32.xlu1 %v7684_v44, %s5428_s30  ;;  %v7726_v1 = vld [vmem:[#allocation2 + $0x168] sm:$0xff]  ;;  %8920 = vst [vmem:[#allocation20_spill] sm:$0xff] %v7780_v53 }
 0x293   : > { %v2243_v57 = vrot.slane %v7726_v1, 1  ;;  %v2323_v46 = vrot.slane %v7726_v1, 2 }
 0x295   : > { %v2245_v0 = vsel %vm382_vm0, %v2243_v57, %v2244_v14  ;;  %v2325_v8 = vsel %vm463_vm1, %v2323_v46, %v2324_v23  ;;  %v7802_v14 = vpop.permute.xlu0 %4717  ;;  %v7812_v23 = vld [vmem:[#allocation2 + $0xf8] sm:$0xff] }
 0x296   : > { %4892 = vrot.lane.b32.xlu0 %v7660_v38, %s5428_s30  ;;  %4927 = vrot.lane.b32.xlu1 %v7701_v47, %s5429_s8  ;;  %v7761_v39 = vpack.i.bf16 %v2247_v63, %v2245_v0  ;;  %v7763_v33 = vpack.i.bf16 %v2327_v25, %v2325_v8  ;;  %8921 = vst [vmem:[#allocation21_spill] sm:$0xff] %v7812_v23  ;;  %v2219_v2 = vrot.slane %v7812_v23, 1  ;;  %v2214_v0 = vrot.slane %v2094_v40, 1 }
 0x297   : > { %v7824_v46 = vpack.i.bf16 %v7812_v23, %v7816_v32  ;;  %v2216_v63 = vrot.slane %v2095_v45, 1  ;;  %v2218_v8 = vrot.slane %v7816_v32, 1  ;;  %v5031_v25 = vpack.i.bf16 %v2094_v40, %v2093_v9 }
 0x298   : > { %v2299_v4 = vrot.slane %v7812_v23, 2  ;;  %v2215_v3 = vsel %vm382_vm0, %v2213_v7, %v2214_v0 }
 0x299   : > { %v7810_v41 = vpop.permute.xlu0 %4722  ;;  %v2217_v16 = vsel %vm382_vm0, %v2214_v0, %v2216_v63  ;;  %v7883_v63 = vpack.i.bf16 %v7682_v60, %v7692_v28  ;;  %v4720_v60 = vunpack.i.h.bf16 %v7802_v14  ;;  %v4719_v28 = vunpack.i.l.bf16 %v7802_v14  ;;  %v5398_v14 = vld [vmem:[#allocation2 + $0x8] sm:$0xff] }
 0x29a   : > { %4897 = vrot.lane.b32.xlu0 %v7669_v36, %s5429_s8  ;;  %4932 = vrot.lane.b32.xlu1 %v7684_v44, %s5434_s17  ;;  %v7849_v50 = vpack.i.bf16 %v2217_v16, %v2215_v3 }
 0x29e   : > { %4912 = vrot.lane.b32.xlu0 %v7660_v38, %s5434_s17  ;;  %4937 = vrot.lane.b32.xlu1 %v7701_v47, %s5435_s26  ;;  %v7765_v38 = vpack.i.bf16 %v2115_v42, %v2114_v12  ;;  %v2221_v12 = vrot.slane %v2098_v10, 1 }
 0x2a0   : > { %v2222_v15 = vsel %vm382_vm0, %v2219_v2, %v2221_v12 }
 0x2a2   : > { %4917 = vrot.lane.b32.xlu0 %v7669_v36, %s5435_s26  ;;  %4952 = vrot.lane.b32.xlu1 %v4951_v48, %s5430_s9  ;;  %v2089_v36 = vld [vmem:[#allocation2 + $0xb8] sm:$0x3] }
 0x2a3   : > { %v2206_v22 = vrot.slane %v2089_v36, 1  ;;  %v2286_v61 = vrot.slane %v2089_v36, 2 }
 0x2a5   : > { %v2207_v6 = vsel %vm382_vm0, %v2204_v55, %v2206_v22 }
 0x2a6   : > { %4942 = vrot.lane.b32.xlu0 %v7684_v44, %s5431_s10  ;;  %4967 = vrot.lane.b32.xlu1 %v4966_v35, %s5433_s12  ;;  %v2284_v44 = vrot.slane %v7759_v18, 2 }
 0x2a8   : > { %v2285_v31 = vsel %vm463_vm1, %v2283_v20, %v2284_v44  ;;  %v2287_v21 = vsel %vm463_vm1, %v2284_v44, %v2286_v61  ;;  %v7859_v20 = vld [vmem:[#allocation2 + $0x110] sm:$0xff] }
 0x2a9   : > { %v4996_v43 = vpack.i.bf16 %v2287_v21, %v2285_v31  ;;  %8923 = vst [vmem:[#allocation23_spill] sm:$0xff] %v7859_v20  ;;  %v2224_v45 = vrot.slane %v7859_v20, 1 }
 0x2aa   : > { %4947 = vrot.lane.b32.xlu0 %v7701_v47, %s5432_s11  ;;  %4982 = vrot.lane.b32.xlu1 %v7699_v62, %s5431_s10  ;;  %v4991_v47 = vpack.i.bf16 %v2207_v6, %v2205_v37  ;;  %v2300_v37 = vsel %vm463_vm1, %v2298_v59, %v2299_v4  ;;  %v2302_v6 = vsel %vm463_vm1, %v2299_v4, %v2301_v5  ;;  %v7907_v59 = vld [vmem:[#allocation2 + $0x140] sm:$0xff] }
 0x2ae   : > { %4957 = vrot.lane.b32.xlu0 %v4951_v48, %s5433_s12  ;;  %4987 = vrot.lane.b32.xlu1 %v7706_v58, %s5432_s11  ;;  %v2220_v48 = vsel %vm382_vm0, %v2218_v8, %v2219_v2 }
 0x2af   : > { %v7847_v22 = vpack.i.bf16 %v2222_v15, %v2220_v48  ;;  %v2304_v48 = vrot.slane %v7859_v20, 2 }
 0x2b2   : > { %4962 = vrot.lane.b32.xlu0 %v4966_v35, %s5430_s9  ;;  %4992 = vrot.lane.b32.xlu1 %v4991_v47, %s5428_s30  ;;  %v2294_v35 = vrot.slane %v2094_v40, 2  ;;  %v7869_v40 = vld [vmem:[#allocation2 + $0x108] sm:$0xff] }
 0x2b3   : > { %8924 = vst [vmem:[#allocation25_spill] sm:$0xff] %v7869_v40  ;;  %v2223_v2 = vrot.slane %v7869_v40, 1  ;;  %v7887_v8 = vpack.i.bf16 %v7859_v20, %v7869_v40  ;;  %v2303_v4 = vrot.slane %v7869_v40, 2  ;;  %v2314_v40 = vrot.slane %v7907_v59, 2 }
 0x2b4   : > { %v2295_v44 = vsel %vm463_vm1, %v2293_v56, %v2294_v35  ;;  %v2297_v61 = vsel %vm463_vm1, %v2294_v35, %v2296_v19  ;;  %v2107_v56 = vld [vmem:[#allocation2 + $0x148] sm:$0x3] }
 0x2b5   : > { %v7867_v10 = vpack.i.bf16 %v2297_v61, %v2295_v44  ;;  %v2305_v35 = vsel %vm463_vm1, %v2303_v4, %v2304_v48  ;;  %v5399_v44 = vld [vmem:[#allocation2] sm:$0xff]  ;;  %v2316_v20 = vrot.slane %v2107_v56, 2 }
 0x2b6   : > { %4972 = vrot.lane.b32.xlu0 %v7699_v62, %s5428_s30  ;;  %4997 = vrot.lane.b32.xlu1 %v4996_v43, %s5429_s8  ;;  %v3122_v61 = vsel %vm1338_vm3, %v5399_v44, %v4719_v28 }
 0x2ba   : > { %4977 = vrot.lane.b32.xlu0 %v7706_v58, %s5429_s8  ;;  %5002 = vrot.lane.b32.xlu1 %v4991_v47, %s5434_s17 }
 0x2be   : > { %5012 = vrot.lane.b32.xlu0 %v4991_v47, %s5431_s10  ;;  %5007 = vrot.lane.b32.xlu1 %v4996_v43, %s5435_s26  ;;  %v2101_v47 = vld [vmem:[#allocation2 + $0x118] sm:$0x3] }
 0x2bf   : > { %v2226_v9 = vrot.slane %v2101_v47, 1  ;;  %v2306_v15 = vrot.slane %v2101_v47, 2  ;;  %v4725_v47 = vunpack.i.h.bf16 %v7810_v41 }
 0x2c0   : > { %v7818_v42 = vpop.permute.xlu0 %4732  ;;  %v7820_v57 = vpop.permute.xlu1 %4727 }
 0x2c1   : > { %v2227_v7 = vsel %vm382_vm0, %v2224_v45, %v2226_v9  ;;  %v2307_v19 = vsel %vm463_vm1, %v2304_v48, %v2306_v15  ;;  %v2236_v48 = vrot.slane %v2107_v56, 1  ;;  %v4735_v32 = vunpack.i.h.bf16 %v7818_v42 }
 0x2c2   : > { %5017 = vrot.lane.b32.xlu0 %v4996_v43, %s5432_s11  ;;  %5022 = vrot.lane.b32.xlu1 %v7824_v46, %s5430_s9  ;;  %v7865_v43 = vpack.i.bf16 %v2302_v6, %v2300_v37  ;;  %v4724_v37 = vunpack.i.l.bf16 %v7810_v41  ;;  %v3123_v6 = vsel %vm1338_vm3, %v5398_v14, %v4720_v60  ;;  %v4734_v23 = vunpack.i.l.bf16 %v7818_v42 }
 0x2c4   : > { %v7831_v11 = vpop.permute.xlu1 %4752  ;;  %v7833_v30 = vpop.permute.xlu0 %4737  ;;  %v3154_v60 = vsel %vm1371_vm4, %v3122_v61, %v4724_v37 }
 0x2c5   : > { %v4740_v15 = vunpack.i.h.bf16 %v7833_v30  ;;  %v4739_v4 = vunpack.i.l.bf16 %v7833_v30 }
 0x2c6   : > { %5032 = vrot.lane.b32.xlu1 %v5031_v25, %s5433_s12  ;;  %5027 = vrot.lane.b32.xlu0 %v5031_v25, %s5430_s9  ;;  %v2225_v25 = vsel %vm382_vm0, %v2223_v2, %v2224_v45  ;;  %v7917_v45 = vld [vmem:[#allocation2 + $0x138] sm:$0xff] }
 0x2c7   : > { %v7903_v16 = vpack.i.bf16 %v2227_v7, %v2225_v25  ;;  %v7921_v25 = vpack.i.bf16 %v2307_v19, %v2305_v35  ;;  %v2234_v7 = vrot.slane %v7907_v59, 1  ;;  %v2233_v41 = vrot.slane %v7917_v45, 1 }
 0x2c8   : > { %v7843_v36 = vpop.permute.xlu1 %4757  ;;  %v7845_v55 = vpop.permute.xlu0 %4742  ;;  %v3155_v35 = vsel %vm1371_vm4, %v3123_v6, %v4725_v47  ;;  %v7935_v19 = vpack.i.bf16 %v7704_v51, %v7709_v13  ;;  %v7939_v30 = vpack.i.bf16 %v7907_v59, %v7917_v45  ;;  %v3186_v47 = vsel %vm1404_vm5, %v3154_v60, %v4739_v4 }
 0x2c9   : > { %v2235_v61 = vsel %vm382_vm0, %v2233_v41, %v2234_v7  ;;  %v3187_v6 = vsel %vm1404_vm5, %v3155_v35, %v4740_v15  ;;  %v2313_v15 = vrot.slane %v7917_v45, 2 }
 0x2ca   : > { %5037 = vrot.lane.b32.xlu0 %v7847_v22, %s5428_s30  ;;  %5047 = vrot.lane.b32.xlu1 %v7849_v50, %s5428_s30 }
 0x2cb   : > { %v2315_v35 = vsel %vm463_vm1, %v2313_v15, %v2314_v40 }
 0x2cc   : > { %v7861_v31 = vpop.permute.xlu0 %4747  ;;  %v7863_v21 = vpop.permute.xlu1 %4772 }
 0x2ce   : > { %5042 = vrot.lane.b32.xlu0 %v7865_v43, %s5429_s8  ;;  %5052 = vrot.lane.b32.xlu1 %v7867_v10, %s5429_s8 }
 0x2d0   : > { %v7877_v12 = vpop.permute.xlu0 %4762  ;;  %v7879_v0 = vpop.permute.xlu1 %4777 }
 0x2d1   : > { %v4765_v42 = vunpack.i.h.bf16 %v7877_v12  ;;  %v4764_v4 = vunpack.i.l.bf16 %v7877_v12  ;;  %v4774_v12 = vunpack.i.l.bf16 %v7863_v21 }
 0x2d2   : > { %5057 = vrot.lane.b32.xlu1 %v7883_v63, %s5430_s9  ;;  %5062 = vrot.lane.b32.xlu0 %v7887_v8, %s5430_s9 }
 0x2d4   : > { %v7899_v5 = vpop.permute.xlu0 %4767  ;;  %v7901_v3 = vpop.permute.xlu1 %4792 }
 0x2d6   : > { %5067 = vrot.lane.b32.xlu0 %v7741_v52, %s5428_s30  ;;  %5077 = vrot.lane.b32.xlu1 %v7903_v16, %s5428_s30 }
 0x2d8   : > { %v4783_v9 = vpop.permute.xlu0 %4782  ;;  %v7919_v2 = vpop.permute.xlu1 %4807 }
 0x2d9   : > { %v4785_v14 = vunpack.i.h.bf16 %v4783_v9  ;;  %v4784_v28 = vunpack.i.l.bf16 %v4783_v9  ;;  %v2237_v9 = vsel %vm382_vm0, %v2234_v7, %v2236_v48 }
 0x2da   : > { %5072 = vrot.lane.b32.xlu0 %v7743_v27, %s5429_s8  ;;  %5082 = vrot.lane.b32.xlu1 %v7921_v25, %s5429_s8  ;;  %v7958_v48 = vpack.i.bf16 %v2237_v9, %v2235_v61  ;;  %v4775_v61 = vunpack.i.h.bf16 %v7863_v21  ;;  %v4779_v9 = vunpack.i.l.bf16 %v7879_v0 }
 0x2db   : > { %v3219_v53 = vsel %vm1437_vm6, %v3187_v6, %v4785_v14  ;;  %v3218_v29 = vsel %vm1437_vm6, %v3186_v47, %v4784_v28 }
 0x2dc   : > { %v4788_v37 = vpop.permute.xlu0 %4787  ;;  %v7941_v44 = vpop.permute.xlu1 %4822 }
 0x2dd   : > { %v4790_v51 = vunpack.i.h.bf16 %v4788_v37  ;;  %v4789_v13 = vunpack.i.l.bf16 %v4788_v37  ;;  %v2317_v37 = vsel %vm463_vm1, %v2314_v40, %v2316_v20 }
 0x2de   : > { %5087 = vrot.lane.b32.xlu1 %v7935_v19, %s5430_s9  ;;  %5092 = vrot.lane.b32.xlu0 %v7939_v30, %s5430_s9 }
 0x2df   : > { %v3250_v56 = vsel %vm1470_vm7, %v3218_v29, %v4789_v13  ;;  %v3251_v7 = vsel %vm1470_vm7, %v3219_v53, %v4790_v51  ;;  %v4770_v29 = vunpack.i.h.bf16 %v7899_v5  ;;  %v4769_v53 = vunpack.i.l.bf16 %v7899_v5  ;;  %v5400_v13 = vld [vmem:[#allocation2 + $0x20] sm:$0xff] }
 0x2e0   : > { %v7963_v60 = vpop.permute.xlu0 %4797  ;;  %v7965_v14 = vpop.permute.xlu1 %4827  ;;  %v3282_v28 = vsel %vm1503_vm8, %v3250_v56, %v4734_v23  ;;  %v3283_v41 = vsel %vm1503_vm8, %v3251_v7, %v4735_v32  ;;  %v4780_v5 = vunpack.i.h.bf16 %v7879_v0  ;;  %v7989_v51 = vpack.i.bf16 %v2317_v37, %v2315_v35  ;;  %v5401_v7 = vld [vmem:[#allocation2 + $0x18] sm:$0xff] }
 0x2e1   : > { %v3314_v23 = vsel %vm1536_vm9, %v3282_v28, %v4764_v4  ;;  %v3315_v32 = vsel %vm1536_vm9, %v3283_v41, %v4765_v42  ;;  %v3125_v56 = vsel %vm1338_vm3, %v5400_v13, %v4775_v61  ;;  %v3124_v15 = vsel %vm1338_vm3, %v5401_v7, %v4774_v12 }
 0x2e2   : > { %5097 = vrot.lane.b32.xlu0 %v7753_v49, %s5428_s30  ;;  %5107 = vrot.lane.b32.xlu1 %v7958_v48, %s5428_s30  ;;  %v3346_v20 = vsel %vm1569_vm10, %v3314_v23, %v4769_v53  ;;  %v3347_v40 = vsel %vm1569_vm10, %v3315_v32, %v4770_v29  ;;  %v3156_v0 = vsel %vm1371_vm4, %v3124_v15, %v4779_v9  ;;  %v4730_v4 = vunpack.i.h.bf16 %v7820_v57 }
 0x2e3   : > { %v3378_v47 = vpack.c.bf16 %v3347_v40, %v3346_v20  ;;  %v3157_v42 = vsel %vm1371_vm4, %v3125_v56, %v4780_v5  ;;  %v4729_v28 = vunpack.i.l.bf16 %v7820_v57  ;;  %v8008_v53 = vpack.i.bf16 %v7718_v34, %v7726_v1 }
 0x2e4   : > { %v7985_v6 = vpop.permute.xlu0 %4802  ;;  %v7987_v21 = vpop.permute.xlu1 %4842  ;;  %v3189_v37 = vsel %vm1404_vm5, %v3157_v42, %v4730_v4  ;;  %v4755_v61 = vunpack.i.h.bf16 %v7831_v11  ;;  %v4754_v12 = vunpack.i.l.bf16 %v7831_v11  ;;  %v4810_v32 = vunpack.i.h.bf16 %v7919_v2 }
 0x2e5   : > { %4024 = vmatprep.mubr.msk.bf16.mxu1 %vm1654_vm11, %v3378_v47  ;;  %v3188_v35 = vsel %vm1404_vm5, %v3156_v0, %v4729_v28  ;;  %v4809_v5 = vunpack.i.l.bf16 %v7919_v2  ;;  %v4760_v9 = vunpack.i.h.bf16 %v7843_v36  ;;  %v4759_v20 = vunpack.i.l.bf16 %v7843_v36 }
 0x2e6   : > { %5102 = vrot.lane.b32.xlu0 %v7755_v17, %s5429_s8  ;;  %5112 = vrot.lane.b32.xlu1 %v7989_v51, %s5429_s8  ;;  %v3220_v34 = vsel %vm1437_vm6, %v3188_v35, %v4754_v12  ;;  %v3221_v1 = vsel %vm1437_vm6, %v3189_v37, %v4755_v61  ;;  %v4745_v12 = vunpack.i.h.bf16 %v7845_v55 }
 0x2e7   : > { %v3252_v47 = vsel %vm1470_vm7, %v3220_v34, %v4759_v20  ;;  %v3253_v13 = vsel %vm1470_vm7, %v3221_v1, %v4760_v9  ;;  %v4749_v34 = vunpack.i.l.bf16 %v7861_v31  ;;  %v4804_v9 = vunpack.i.l.bf16 %v7985_v6 }
 0x2e8   : > { %v8002_v41 = vpop.permute.xlu0 %4812  ;;  %v8004_v29 = vpop.permute.xlu1 %4847  ;;  %v3285_v2 = vsel %vm1503_vm8, %v3253_v13, %v4810_v32  ;;  %v3284_v15 = vsel %vm1503_vm8, %v3252_v47, %v4809_v5  ;;  %v4805_v5 = vunpack.i.h.bf16 %v7985_v6 }
 0x2ea   : > { %5122 = vrot.lane.b32.xlu0 %v8008_v53, %s5430_s9  ;;  %5117 = vrot.lane.b32.xlu1 %v7765_v38, %s5430_s9 }
 0x2ec   : > { %v8018_v57 = vpop.permute.xlu0 %4817  ;;  %v4858_v23 = vpop.permute.xlu1 %4857 }
 0x2ed   : > { %v4860_v40 = vunpack.i.h.bf16 %v4858_v23  ;;  %v4859_v11 = vunpack.i.l.bf16 %v4858_v23  ;;  %v4750_v23 = vunpack.i.h.bf16 %v7861_v31 }
 0x2ee   : > { %5127 = vrot.lane.b32.xlu0 %v7699_v62, %s5434_s17  ;;  %5132 = vrot.lane.b32.xlu1 %v7849_v50, %s5434_s17 }
 0x2ef   : > { %v3317_v42 = vsel %vm1536_vm9, %v3285_v2, %v4860_v40  ;;  %v3316_v62 = vsel %vm1536_vm9, %v3284_v15, %v4859_v11  ;;  %v5403_v11 = vld [vmem:[#allocation2 + $0x30] sm:$0xff] }
 0x2f0   : > { %v8032_v56 = vpop.permute.xlu0 %4832  ;;  %v4863_v7 = vpop.permute.xlu1 %4862 }
 0x2f1   : > { %v4865_v36 = vunpack.i.h.bf16 %v4863_v7  ;;  %v4864_v0 = vunpack.i.l.bf16 %v4863_v7 }
 0x2f2   : > { %5137 = vrot.lane.b32.xlu0 %v7706_v58, %s5435_s26  ;;  %5142 = vrot.lane.b32.xlu1 %v7761_v39, %s5428_s30  ;;  %v4744_v58 = vunpack.i.l.bf16 %v7845_v55  ;;  %v5402_v55 = vld [vmem:[#allocation2 + $0x38] sm:$0xff] }
 0x2f3   : > { %v3348_v4 = vsel %vm1569_vm10, %v3316_v62, %v4864_v0  ;;  %v3349_v28 = vsel %vm1569_vm10, %v3317_v42, %v4865_v36  ;;  %v3127_v40 = vsel %vm1338_vm3, %v5402_v55, %v4745_v12  ;;  %v4800_v42 = vunpack.i.h.bf16 %v7963_v60 }
 0x2f4   : > { %v4838_v35 = vpop.permute.xlu0 %4837  ;;  %v8044_v37 = vpop.permute.xlu1 %4872  ;;  %v3379_v61 = vpack.c.bf16 %v3349_v28, %v3348_v4  ;;  %v3126_v47 = vsel %vm1338_vm3, %v5403_v11, %v4744_v58  ;;  %v3159_v13 = vsel %vm1371_vm4, %v3127_v40, %v4750_v23  ;;  %v4799_v62 = vunpack.i.l.bf16 %v7963_v60 }
 0x2f5   : > { %v3158_v31 = vsel %vm1371_vm4, %v3126_v47, %v4749_v34  ;;  %v3191_v2 = vsel %vm1404_vm5, %v3159_v13, %v4805_v5  ;;  %v4835_v12 = vunpack.i.h.bf16 %v8032_v56  ;;  %v4834_v58 = vunpack.i.l.bf16 %v8032_v56 }
 0x2f6   : > { %4025 = vmatmul.mubr.msk.bf16.vlgmr.msra.gmra.mrb[0].mxu1 %vm1654_vm11, %v3379_v61  ;;  %5157 = vrot.lane.b32.xlu0 %v7849_v50, %s5431_s10  ;;  %v3190_v15 = vsel %vm1404_vm5, %v3158_v31, %v4804_v9  ;;  %v4844_v5 = vunpack.i.l.bf16 %v7987_v21  ;;  %v4840_v9 = vunpack.i.h.bf16 %v4838_v35  ;;  %v4849_v55 = vunpack.i.l.bf16 %v8004_v29 }
 0x2f7   : > { %5147 = vrot.lane.b32.xlu1 %v7763_v33, %s5429_s8 }
 0x2f8   : > { %v4853_v1 = vpop.permute.xlu0 %4852  ;;  %v8055_v32 = vpop.permute.xlu1 %4887 }
 0x2f9   : > { %v4855_v20 = vunpack.i.h.bf16 %v4853_v1  ;;  %v4854_v50 = vunpack.i.l.bf16 %v4853_v1 }
 0x2fa   : > { %5167 = vrot.lane.b32.xlu0 %v7867_v10, %s5432_s11 }
 0x2fb   : > { %5152 = vrot.lane.b32.xlu1 %v7867_v10, %s5435_s26  ;;  %v3223_v4 = vsel %vm1437_vm6, %v3191_v2, %v4855_v20  ;;  %v3222_v10 = vsel %vm1437_vm6, %v3190_v15, %v4854_v50  ;;  %v4839_v20 = vunpack.i.l.bf16 %v4838_v35  ;;  %v4850_v50 = vunpack.i.h.bf16 %v8004_v29  ;;  %v5404_v29 = vld [vmem:[#allocation2 + $0x50] sm:$0xff] }
 0x2fc   : > { %v4868_v7 = vpop.permute.xlu0 %4867  ;;  %v8067_v6 = vpop.permute.xlu1 %4902 }
 0x2fd   : > { %v4870_v36 = vunpack.i.h.bf16 %v4868_v7  ;;  %v4869_v0 = vunpack.i.l.bf16 %v4868_v7 }
 0x2fe   : > { %5177 = vrot.lane.b32.xlu0 %v7824_v46, %s5433_s12  ;;  %v4845_v46 = vunpack.i.h.bf16 %v7987_v21 }
 0x2ff   : > { %v3254_v28 = vsel %vm1470_vm7, %v3222_v10, %v4869_v0  ;;  %v3255_v61 = vsel %vm1470_vm7, %v3223_v4, %v4870_v36  ;;  %5162 = vrot.lane.b32.xlu1 %v7847_v22, %s5431_s10  ;;  %v4795_v36 = vunpack.i.h.bf16 %v7901_v3  ;;  %v4794_v0 = vunpack.i.l.bf16 %v7901_v3 }
 0x300   : > { %v3286_v60 = vsel %vm1503_vm8, %v3254_v28, %v4799_v62  ;;  %v3287_v23 = vsel %vm1503_vm8, %v3255_v61, %v4800_v42  ;;  %v8085_v34 = vpop.permute.xlu0 %4877  ;;  %v8087_v1 = vpop.permute.xlu1 %4907  ;;  %v3129_v13 = vsel %vm1338_vm3, %v5404_v29, %v4845_v46  ;;  %v4825_v28 = vunpack.i.h.bf16 %v7941_v44 }
 0x301   : > { %v3318_v56 = vsel %vm1536_vm9, %v3286_v60, %v4834_v58  ;;  %v3319_v40 = vsel %vm1536_vm9, %v3287_v23, %v4835_v12  ;;  %v3161_v15 = vsel %vm1371_vm4, %v3129_v13, %v4850_v50  ;;  %v4824_v61 = vunpack.i.l.bf16 %v7941_v44 }
 0x302   : > { %5187 = vrot.lane.b32.xlu0 %v7847_v22, %s5434_s17  ;;  %v3350_v11 = vsel %vm1569_vm10, %v3318_v56, %v4839_v20  ;;  %v3351_v21 = vsel %vm1569_vm10, %v3319_v40, %v4840_v9  ;;  %v5405_v22 = vld [vmem:[#allocation2 + $0x48] sm:$0xff]  ;;  %v3193_v10 = vsel %vm1404_vm5, %v3161_v15, %v4795_v36  ;;  %v4829_v3 = vunpack.i.l.bf16 %v7965_v14 }
 0x303   : > { %5172 = vrot.lane.b32.xlu1 %v7865_v43, %s5432_s11  ;;  %v3380_v31 = vpack.c.bf16 %v3351_v21, %v3350_v11  ;;  %v3128_v7 = vsel %vm1338_vm3, %v5405_v22, %v4844_v5  ;;  %v3225_v60 = vsel %vm1437_vm6, %v3193_v10, %v4825_v28  ;;  %v4890_v44 = vunpack.i.h.bf16 %v8055_v32 }
 0x304   : > { %v8101_v47 = vpop.permute.xlu0 %4882  ;;  %v8103_v35 = vpop.permute.xlu1 %4922  ;;  %v3160_v2 = vsel %vm1371_vm4, %v3128_v7, %v4849_v55  ;;  %v4889_v5 = vunpack.i.l.bf16 %v8055_v32  ;;  %v4819_v10 = vunpack.i.l.bf16 %v8018_v57 }
 0x305   : > { %4028 = vmatprep.mubr.msk.bf16.mxu1 %vm1654_vm11, %v3380_v31  ;;  %v3192_v4 = vsel %vm1404_vm5, %v3160_v2, %v4794_v0 }
 0x306   : > { %5197 = vrot.lane.b32.xlu0 %v7865_v43, %s5435_s26  ;;  %v3224_v58 = vsel %vm1437_vm6, %v3192_v4, %v4824_v61  ;;  %v4814_v4 = vunpack.i.l.bf16 %v8002_v41 }
 0x307   : > { %5182 = vrot.lane.b32.xlu1 %v7887_v8, %s5433_s12  ;;  %v4830_v8 = vunpack.i.h.bf16 %v7965_v14  ;;  %v3256_v32 = vsel %vm1470_vm7, %v3224_v58, %v4829_v3  ;;  %v5407_v3 = vld [vmem:[#allocation2 + $0x60] sm:$0xff] }
 0x308   : > { %v4893_v42 = vpop.permute.xlu0 %4892  ;;  %v8116_v62 = vpop.permute.xlu1 %4927  ;;  %v3288_v31 = vsel %vm1503_vm8, %v3256_v32, %v4889_v5  ;;  %v4924_v5 = vunpack.i.l.bf16 %v8103_v35 }
 0x309   : > { %v4895_v12 = vunpack.i.h.bf16 %v4893_v42  ;;  %v4894_v43 = vunpack.i.l.bf16 %v4893_v42  ;;  %v4815_v42 = vunpack.i.h.bf16 %v8002_v41  ;;  %v5406_v41 = vld [vmem:[#allocation2 + $0x68] sm:$0xff] }
 0x30a   : > { %5207 = vrot.lane.b32.xlu0 %v7903_v16, %s5431_s10 }
 0x30b   : > { %5192 = vrot.lane.b32.xlu1 %v7903_v16, %s5434_s17  ;;  %v3135_v50 = vsel %vm1338_vm3, %v7640_v24, %v4895_v12  ;;  %v3134_v16 = vsel %vm1338_vm3, %v7645_v26, %v4894_v43  ;;  %v3257_v24 = vsel %vm1470_vm7, %v3225_v60, %v4830_v8  ;;  %v4885_v12 = vunpack.i.h.bf16 %v8101_v47 }
 0x30c   : > { %v4898_v23 = vpop.permute.xlu0 %4897  ;;  %v4933_v46 = vpop.permute.xlu1 %4932  ;;  %v3289_v21 = vsel %vm1503_vm8, %v3257_v24, %v4890_v44  ;;  %v4884_v43 = vunpack.i.l.bf16 %v8101_v47  ;;  %v3131_v8 = vsel %vm1338_vm3, %v5406_v41, %v4815_v42  ;;  %v4880_v47 = vunpack.i.h.bf16 %v8085_v34 }
 0x30d   : > { %v4900_v9 = vunpack.i.h.bf16 %v4898_v23  ;;  %v4899_v20 = vunpack.i.l.bf16 %v4898_v23  ;;  %v4935_v55 = vunpack.i.h.bf16 %v4933_v46  ;;  %v4934_v14 = vunpack.i.l.bf16 %v4933_v46 }
 0x30e   : > { %5217 = vrot.lane.b32.xlu0 %v7921_v25, %s5432_s11  ;;  %v4879_v46 = vunpack.i.l.bf16 %v8085_v34  ;;  %v4925_v44 = vunpack.i.h.bf16 %v8103_v35 }
 0x30f   : > { %v8139_v56 = vsel %vm1371_vm4, %v3134_v16, %v4899_v20  ;;  %v8142_v40 = vsel %vm1371_vm4, %v3135_v50, %v4900_v9  ;;  %5202 = vrot.lane.b32.xlu1 %v7921_v25, %s5435_s26  ;;  %v3321_v22 = vsel %vm1536_vm9, %v3289_v21, %v4935_v55  ;;  %v3320_v7 = vsel %vm1536_vm9, %v3288_v31, %v4934_v14 }
 0x310   : > { %v8148_v11 = vpop.permute.xlu0 %4912  ;;  %v4938_v26 = vpop.permute.xlu1 %4937  ;;  %v4930_v14 = vunpack.i.h.bf16 %v8116_v62 }
 0x311   : > { %v4940_v29 = vunpack.i.h.bf16 %v4938_v26  ;;  %v4939_v13 = vunpack.i.l.bf16 %v4938_v26  ;;  %v4915_v26 = vunpack.i.h.bf16 %v8148_v11  ;;  %v4914_v21 = vunpack.i.l.bf16 %v8148_v11 }
 0x312   : > { %5227 = vrot.lane.b32.xlu0 %v7883_v63, %s5433_s12  ;;  %v4820_v63 = vunpack.i.h.bf16 %v8018_v57 }
 0x313   : > { %v3352_v25 = vsel %vm1569_vm10, %v3320_v7, %v4939_v13  ;;  %v3353_v2 = vsel %vm1569_vm10, %v3321_v22, %v4940_v29  ;;  %5212 = vrot.lane.b32.xlu1 %v7741_v52, %s5431_s10  ;;  %v5408_v22 = vld [vmem:[#allocation2 + $0x80] sm:$0xff] }
 0x314   : > { %v3381_v15 = vpack.c.bf16 %v3353_v2, %v3352_v25  ;;  %v8160_v36 = vpop.permute.xlu0 %4917  ;;  %v8162_v0 = vpop.permute.xlu1 %4952  ;;  %v3163_v23 = vsel %vm1371_vm4, %v3131_v8, %v4820_v63  ;;  %v3133_v7 = vsel %vm1338_vm3, %v5408_v22, %v4925_v44  ;;  %v5409_v25 = vld [vmem:[#allocation2 + $0x78] sm:$0xff] }
 0x315   : > { %v3132_v2 = vsel %vm1338_vm3, %v5409_v25, %v4924_v5  ;;  %v3165_v42 = vsel %vm1371_vm4, %v3133_v7, %v4930_v14 }
 0x316   : > { %4029 = vmatmul.mubr.msk.bf16.gmra.mrb[4].mxu1 %vm1654_vm11, %v3381_v15  ;;  %5237 = vrot.lane.b32.xlu0 %v7741_v52, %s5434_s17  ;;  %v3130_v52 = vsel %vm1338_vm3, %v5407_v3, %v4814_v4  ;;  %v4919_v15 = vunpack.i.l.bf16 %v8160_v36 }
 0x317   : > { %5222 = vrot.lane.b32.xlu1 %v7743_v27, %s5432_s11  ;;  %v3162_v57 = vsel %vm1371_vm4, %v3130_v52, %v4819_v10  ;;  %v4875_v10 = vunpack.i.h.bf16 %v8044_v37 }
 0x318   : > { %v4943_v28 = vpop.permute.xlu0 %4942  ;;  %v8173_v61 = vpop.permute.xlu1 %4967  ;;  %v3194_v50 = vsel %vm1404_vm5, %v3162_v57, %v4884_v43 }
 0x319   : > { %v4945_v58 = vunpack.i.h.bf16 %v4943_v28  ;;  %v4944_v60 = vunpack.i.l.bf16 %v4943_v28  ;;  %v4874_v28 = vunpack.i.l.bf16 %v8044_v37  ;;  %v3197_v52 = vsel %vm1404_vm5, %v3165_v42, %v4875_v10 }
 0x31a   : > { %5247 = vrot.lane.b32.xlu0 %v7743_v27, %s5435_s26  ;;  %v3195_v27 = vsel %vm1404_vm5, %v3163_v23, %v4885_v12  ;;  %v4909_v23 = vunpack.i.l.bf16 %v8087_v1 }
 0x31b   : > { %5232 = vrot.lane.b32.xlu1 %v7939_v30, %s5433_s12  ;;  %v4929_v30 = vunpack.i.l.bf16 %v8116_v62  ;;  %v3227_v32 = vsel %vm1437_vm6, %v3195_v27, %v4945_v58  ;;  %v3226_v34 = vsel %vm1437_vm6, %v3194_v50, %v4944_v60  ;;  %v4905_v58 = vunpack.i.h.bf16 %v8067_v6 }
 0x31c   : > { %v4948_v9 = vpop.permute.xlu0 %4947  ;;  %v8189_v20 = vpop.permute.xlu1 %4982  ;;  %v4904_v60 = vunpack.i.l.bf16 %v8067_v6 }
 0x31d   : > { %v4950_v16 = vunpack.i.h.bf16 %v4948_v9  ;;  %v4949_v55 = vunpack.i.l.bf16 %v4948_v9  ;;  %v3164_v11 = vsel %vm1371_vm4, %v3132_v2, %v4929_v30  ;;  %v3229_v44 = vsel %vm1437_vm6, %v3197_v52, %v4905_v58 }
 0x31e   : > { %5257 = vrot.lane.b32.xlu0 %v7958_v48, %s5431_s10  ;;  %v3196_v3 = vsel %vm1404_vm5, %v3164_v11, %v4874_v28  ;;  %v4985_v30 = vunpack.i.h.bf16 %v8189_v20 }
 0x31f   : > { %v3258_v35 = vsel %vm1470_vm7, %v3226_v34, %v4949_v55  ;;  %v3259_v24 = vsel %vm1470_vm7, %v3227_v32, %v4950_v16  ;;  %5242 = vrot.lane.b32.xlu1 %v7958_v48, %s5434_s17  ;;  %v4920_v48 = vunpack.i.h.bf16 %v8160_v36  ;;  %v3228_v6 = vsel %vm1437_vm6, %v3196_v3, %v4904_v60 }
 0x320   : > { %v3290_v62 = vsel %vm1503_vm8, %v3258_v35, %v4879_v46  ;;  %v3291_v31 = vsel %vm1503_vm8, %v3259_v24, %v4880_v47  ;;  %v8207_v29 = vpop.permute.xlu0 %4957  ;;  %v8209_v13 = vpop.permute.xlu1 %4987  ;;  %v4955_v47 = vunpack.i.h.bf16 %v8162_v0  ;;  %v4954_v46 = vunpack.i.l.bf16 %v8162_v0 }
 0x321   : > { %v3322_v4 = vsel %vm1536_vm9, %v3290_v62, %v4914_v21  ;;  %v3323_v63 = vsel %vm1536_vm9, %v3291_v31, %v4915_v26  ;;  %v4970_v55 = vunpack.i.h.bf16 %v8173_v61  ;;  %v4984_v32 = vunpack.i.l.bf16 %v8189_v20  ;;  %v5410_v21 = vld [vmem:[#allocation2 + $0xc8] sm:$0xff]  ;;  %v5411_v62 = vld [vmem:[#allocation2 + $0xc0] sm:$0xff] }
 0x322   : > { %5267 = vrot.lane.b32.xlu0 %v7989_v51, %s5432_s11  ;;  %v3354_v36 = vsel %vm1569_vm10, %v3322_v4, %v4919_v15  ;;  %v3355_v12 = vsel %vm1569_vm10, %v3323_v63, %v4920_v48  ;;  %v3260_v15 = vsel %vm1470_vm7, %v3228_v6, %v4909_v23 }
 0x323   : > { %5252 = vrot.lane.b32.xlu1 %v7989_v51, %s5435_s26  ;;  %v3382_v8 = vpack.c.bf16 %v3355_v12, %v3354_v36  ;;  %v4910_v51 = vunpack.i.h.bf16 %v8087_v1  ;;  %v4969_v1 = vunpack.i.l.bf16 %v8173_v61  ;;  %v4990_v61 = vunpack.i.h.bf16 %v8209_v13 }
 0x324   : > { %v8227_v43 = vpop.permute.xlu0 %4962  ;;  %v4993_v41 = vpop.permute.xlu1 %4992 }
 0x325   : > { %v4995_v37 = vunpack.i.h.bf16 %v4993_v41  ;;  %v4994_v57 = vunpack.i.l.bf16 %v4993_v41  ;;  %4032 = vmatprep.mubr.msk.bf16.mxu1 %vm1654_vm11, %v3382_v8  ;;  %v3261_v11 = vsel %vm1470_vm7, %v3229_v44, %v4910_v51  ;;  %v4965_v41 = vunpack.i.h.bf16 %v8227_v43 }
 0x326   : > { %5277 = vrot.lane.b32.xlu0 %v7935_v19, %s5433_s12  ;;  %v3293_v63 = vsel %vm1503_vm8, %v3261_v11, %v4970_v55  ;;  %v4964_v8 = vunpack.i.l.bf16 %v8227_v43 }
 0x327   : > { %5262 = vrot.lane.b32.xlu1 %v7753_v49, %s5431_s10  ;;  %v3137_v14 = vsel %vm1338_vm3, %v7759_v18, %v4995_v37  ;;  %v3136_v0 = vsel %vm1338_vm3, %v7771_v54, %v4994_v57  ;;  %v4989_v18 = vunpack.i.l.bf16 %v8209_v13 }
 0x328   : > { %v4973_v5 = vpop.permute.xlu0 %4972  ;;  %v4998_v9 = vpop.permute.xlu1 %4997  ;;  %v3198_v6 = vsel %vm1404_vm5, %v8139_v56, %v4964_v8 }
 0x329   : > { %v4975_v27 = vunpack.i.h.bf16 %v4973_v5  ;;  %v4974_v50 = vunpack.i.l.bf16 %v4973_v5  ;;  %v5000_v19 = vunpack.i.h.bf16 %v4998_v9  ;;  %v4999_v16 = vunpack.i.l.bf16 %v4998_v9 }
 0x32a   : > { %5287 = vrot.lane.b32.xlu0 %v7753_v49, %s5434_s17  ;;  %v4960_v9 = vunpack.i.h.bf16 %v8207_v29 }
 0x32b   : > { %v3168_v34 = vsel %vm1371_vm4, %v3136_v0, %v4999_v16  ;;  %v3169_v35 = vsel %vm1371_vm4, %v3137_v14, %v5000_v19  ;;  %5272 = vrot.lane.b32.xlu1 %v7755_v17, %s5432_s11  ;;  %v3139_v20 = vsel %vm1338_vm3, %v5410_v21, %v4975_v27  ;;  %v3138_v31 = vsel %vm1338_vm3, %v5411_v62, %v4974_v50  ;;  %v2118_v14 = vld [vmem:[#allocation2 + $0x1a0] sm:$0xff]  ;;  %v2119_v0 = vld [vmem:[#allocation2 + $0x1a8] sm:$0x3] }
 0x32c   : > { %v3200_v54 = vsel %vm1404_vm5, %v3168_v34, %v4954_v46  ;;  %v3201_v24 = vsel %vm1404_vm5, %v3169_v35, %v4955_v47  ;;  %v4978_v49 = vpop.permute.xlu0 %4977  ;;  %v5003_v26 = vpop.permute.xlu1 %5002  ;;  %v3199_v46 = vsel %vm1404_vm5, %v8142_v40, %v4965_v41  ;;  %v4959_v27 = vunpack.i.l.bf16 %v8207_v29 }
 0x32d   : > { %v4980_v22 = vunpack.i.h.bf16 %v4978_v49  ;;  %v4979_v7 = vunpack.i.l.bf16 %v4978_v49  ;;  %v5005_v25 = vunpack.i.h.bf16 %v5003_v26  ;;  %v5004_v2 = vunpack.i.l.bf16 %v5003_v26 }
 0x32e   : > { %5297 = vrot.lane.b32.xlu0 %v7755_v17, %s5435_s26  ;;  %v3232_v13 = vsel %vm1437_vm6, %v3200_v54, %v4984_v32  ;;  %v3233_v48 = vsel %vm1437_vm6, %v3201_v24, %v4985_v30  ;;  %v3292_v17 = vsel %vm1503_vm8, %v3260_v15, %v4969_v1  ;;  %v2117_v1 = vld [vmem:[#allocation2 + $0x198] sm:$0xff]  ;;  %v2345_v34 = vrot.slane %v2118_v14, 1 }
 0x32f   : > { %v8271_v42 = vsel %vm1371_vm4, %v3138_v31, %v4979_v7  ;;  %v8274_v4 = vsel %vm1371_vm4, %v3139_v20, %v4980_v22  ;;  %5282 = vrot.lane.b32.xlu1 %v8008_v53, %s5433_s12  ;;  %v8281_v36 = vsel %vm1470_vm7, %v3232_v13, %v4989_v18  ;;  %v8284_v12 = vsel %vm1470_vm7, %v3233_v48, %v4990_v61  ;;  %v8925_v30 = vld [vmem:[#allocation12_spill] sm:$0xff]  ;;  %v8928_v48 = vld [vmem:[#allocation22_spill] sm:$0xff] }
 0x330   : > { %v5013_v10 = vpop.permute.xlu0 %5012  ;;  %v5008_v28 = vpop.permute.xlu1 %5007  ;;  %v3325_v53 = vsel %vm1536_vm9, %v3293_v63, %v5005_v25  ;;  %v3324_v58 = vsel %vm1536_vm9, %v3292_v17, %v5004_v2  ;;  %v2344_v35 = vrot.slane %v2117_v1, 1  ;;  %v2347_v61 = vrot.slane %v2119_v0, 1  ;;  %v8926_v24 = vld [vmem:[#allocation20_spill] sm:$0xff]  ;;  %v8927_v2 = vld [vmem:[#allocation21_spill] sm:$0xff] }
 0x331   : > { %v5010_v3 = vunpack.i.h.bf16 %v5008_v28  ;;  %v5009_v52 = vunpack.i.l.bf16 %v5008_v28  ;;  %v5015_v60 = vunpack.i.h.bf16 %v5013_v10  ;;  %v5014_v37 = vunpack.i.l.bf16 %v5013_v10 }
 0x332   : > { %5307 = vrot.lane.b32.xlu0 %v7761_v39, %s5431_s10  ;;  %v2350_v49 = vrot.slane %v2118_v14, 2  ;;  %v5331_v26 = vpack.i.bf16 %v2118_v14, %v2117_v1  ;;  %v2349_v20 = vrot.slane %v2117_v1, 2  ;;  %v2346_v62 = vsel %vm382_vm0, %v2344_v35, %v2345_v34  ;;  %v5413_v14 = vld [vmem:[#allocation2 + $0x120] sm:$0xff] }
 0x333   : > { %v3356_v57 = vsel %vm1569_vm10, %v3324_v58, %v5009_v52  ;;  %v3357_v51 = vsel %vm1569_vm10, %v3325_v53, %v5010_v3  ;;  %5292 = vrot.lane.b32.xlu1 %v7761_v39, %s5434_s17  ;;  %v3231_v50 = vsel %vm1437_vm6, %v3199_v46, %v5015_v60  ;;  %v3230_v39 = vsel %vm1437_vm6, %v3198_v6, %v5014_v37 }
 0x334   : > { %v3383_v23 = vpack.c.bf16 %v3357_v51, %v3356_v57  ;;  %v5018_v43 = vpop.permute.xlu0 %5017  ;;  %v8296_v47 = vpop.permute.xlu1 %5022  ;;  %v2348_v31 = vsel %vm382_vm0, %v2345_v34, %v2347_v61  ;;  %v2352_v22 = vrot.slane %v2119_v0, 2  ;;  %v2351_v41 = vsel %vm463_vm1, %v2349_v20, %v2350_v49  ;;  %v8930_v34 = vld [vmem:[#allocation25_spill] sm:$0xff] }
 0x335   : > { %v5020_v44 = vunpack.i.h.bf16 %v5018_v43  ;;  %v5019_v5 = vunpack.i.l.bf16 %v5018_v43  ;;  %v5341_v17 = vpack.i.bf16 %v2348_v31, %v2346_v62 }
 0x336   : > { %4033 = vmatmul.mubr.msk.bf16.gmra.mrb[8].mxu1 %vm1654_vm11, %v3383_v23  ;;  %5317 = vrot.lane.b32.xlu0 %v7763_v33, %s5432_s11  ;;  %v2353_v8 = vsel %vm463_vm1, %v2350_v49, %v2352_v22 }
 0x337   : > { %v3262_v40 = vsel %vm1470_vm7, %v3230_v39, %v5019_v5  ;;  %v3263_v19 = vsel %vm1470_vm7, %v3231_v50, %v5020_v44  ;;  %5302 = vrot.lane.b32.xlu1 %v7763_v33, %s5435_s26  ;;  %v5351_v60 = vpack.i.bf16 %v2353_v8, %v2351_v41 }
 0x338   : > { %v8313_v56 = vpop.permute.xlu1 %5032  ;;  %v8315_v16 = vpop.permute.xlu0 %5027  ;;  %v8318_v29 = vsel %vm1503_vm8, %v3262_v40, %v4959_v27  ;;  %v8321_v55 = vsel %vm1503_vm8, %v3263_v19, %v4960_v9  ;;  %v5412_v19 = vld [vmem:[#allocation2 + $0x128] sm:$0xff] }
 0x33a   : > { %5327 = vrot.lane.b32.xlu0 %v7765_v38, %s5433_s12 }
 0x33b   : > { %5312 = vrot.lane.b32.xlu1 %v8925_v30, %s5431_s10 }
 0x33c   : > { %v5038_v33 = vpop.permute.xlu0 %5037  ;;  %v8327_v32 = vpop.permute.xlu1 %5047 }
 0x33d   : > { %v5040_v18 = vunpack.i.h.bf16 %v5038_v33  ;;  %v5039_v54 = vunpack.i.l.bf16 %v5038_v33 }
 0x33e   : > { %5337 = vrot.lane.b32.xlu0 %v8925_v30, %s5434_s17  ;;  %v8929_v30 = vld [vmem:[#allocation23_spill] sm:$0xff] }
 0x33f   : > { %5322 = vrot.lane.b32.xlu1 %v8926_v24, %s5432_s11  ;;  %v3143_v13 = vsel %vm1338_vm3, %v8927_v2, %v5040_v18  ;;  %v3142_v15 = vsel %vm1338_vm3, %v8928_v48, %v5039_v54  ;;  %s3929_s11 = sshll.u32 %s8932_s25, 4 }
 0x340   : > { %v5043_v38 = vpop.permute.xlu0 %5042  ;;  %v8333_v21 = vpop.permute.xlu1 %5052 }
 0x341   : > { %v5045_v7 = vunpack.i.h.bf16 %v5043_v38  ;;  %v5044_v25 = vunpack.i.l.bf16 %v5043_v38 }
 0x342   : > { %5347 = vrot.lane.b32.xlu0 %v8926_v24, %s5435_s26 }
 0x343   : > { %v3174_v11 = vsel %vm1371_vm4, %v3142_v15, %v5044_v25  ;;  %v3175_v63 = vsel %vm1371_vm4, %v3143_v13, %v5045_v7  ;;  %5332 = vrot.lane.b32.xlu1 %v5331_v26, %s5433_s12 }
 0x344   : > { %v5058_v10 = vpop.permute.xlu1 %5057  ;;  %v5063_v28 = vpop.permute.xlu0 %5062 }
 0x345   : > { %v5065_v3 = vunpack.i.h.bf16 %v5063_v28  ;;  %v5064_v52 = vunpack.i.l.bf16 %v5063_v28  ;;  %v5060_v6 = vunpack.i.h.bf16 %v5058_v10  ;;  %v5059_v44 = vunpack.i.l.bf16 %v5058_v10 }
 0x347   : > { %v8349_v53 = vsel %vm1404_vm5, %v3175_v63, %v5065_v3  ;;  %v8352_v58 = vsel %vm1404_vm5, %v3174_v11, %v5064_v52  ;;  %5342 = vrot.lane.b32.xlu1 %v5341_v17, %s5434_s17  ;;  %v5414_v3 = vld [vmem:[#allocation2 + $0x158] sm:$0xff] }
 0x348   : > { %v5068_v37 = vpop.permute.xlu0 %5067  ;;  %v5078_v57 = vpop.permute.xlu1 %5077 }
 0x349   : > { %v5070_v51 = vunpack.i.h.bf16 %v5068_v37  ;;  %v5069_v23 = vunpack.i.l.bf16 %v5068_v37  ;;  %v5080_v43 = vunpack.i.h.bf16 %v5078_v57  ;;  %v5079_v46 = vunpack.i.l.bf16 %v5078_v57 }
 0x34b   : > { %5352 = vrot.lane.b32.xlu1 %v5351_v60, %s5435_s26  ;;  %v3147_v1 = vsel %vm1338_vm3, %v5412_v19, %v5070_v51  ;;  %v3146_v0 = vsel %vm1338_vm3, %v5413_v14, %v5069_v23  ;;  %v3145_v33 = vsel %vm1338_vm3, %v8929_v30, %v5080_v43  ;;  %v3144_v35 = vsel %vm1338_vm3, %v8930_v34, %v5079_v46  ;;  %v5415_v60 = vld [vmem:[#allocation2 + $0x150] sm:$0xff]  ;;  %s278_s26 = scalar_lea.vmem %s8634_s7, %s3929_s11 }
 0x34c   : > { %v5073_v5 = vpop.permute.xlu0 %5072  ;;  %v5083_v9 = vpop.permute.xlu1 %5082 }
 0x34d   : > { %v5075_v27 = vunpack.i.h.bf16 %v5073_v5  ;;  %v5074_v50 = vunpack.i.l.bf16 %v5073_v5  ;;  %v5085_v39 = vunpack.i.h.bf16 %v5083_v9  ;;  %v5084_v40 = vunpack.i.l.bf16 %v5083_v9 }
 0x34f   : > { %v3178_v61 = vsel %vm1371_vm4, %v3146_v0, %v5074_v50  ;;  %v3179_v18 = vsel %vm1371_vm4, %v3147_v1, %v5075_v27  ;;  %v3176_v54 = vsel %vm1371_vm4, %v3144_v35, %v5084_v40  ;;  %v3177_v24 = vsel %vm1371_vm4, %v3145_v33, %v5085_v39 }
 0x350   : > { %v5088_v49 = vpop.permute.xlu1 %5087  ;;  %v5093_v26 = vpop.permute.xlu0 %5092  ;;  %v8367_v38 = vsel %vm1404_vm5, %v3176_v54, %v5059_v44  ;;  %v8370_v20 = vsel %vm1404_vm5, %v3177_v24, %v5060_v6 }
 0x351   : > { %v5095_v62 = vunpack.i.h.bf16 %v5093_v26  ;;  %v5094_v31 = vunpack.i.l.bf16 %v5093_v26  ;;  %v5090_v17 = vunpack.i.h.bf16 %v5088_v49  ;;  %v5089_v10 = vunpack.i.l.bf16 %v5088_v49 }
 0x353   : > { %v8373_v22 = vsel %vm1404_vm5, %v3179_v18, %v5095_v62  ;;  %v8376_v7 = vsel %vm1404_vm5, %v3178_v61, %v5094_v31 }
 0x354   : > { %v5098_v25 = vpop.permute.xlu0 %5097  ;;  %v5108_v2 = vpop.permute.xlu1 %5107 }
 0x355   : > { %v5100_v13 = vunpack.i.h.bf16 %v5098_v25  ;;  %v5099_v48 = vunpack.i.l.bf16 %v5098_v25  ;;  %v5110_v15 = vunpack.i.h.bf16 %v5108_v2  ;;  %v5109_v11 = vunpack.i.l.bf16 %v5108_v2 }
 0x356   : > { %v5035_v2 = vunpack.i.h.bf16 %v8313_v56 }
 0x357   : > { %v3151_v52 = vsel %vm1338_vm3, %v5414_v3, %v5100_v13  ;;  %v3150_v37 = vsel %vm1338_vm3, %v5415_v60, %v5099_v48  ;;  %v3149_v23 = vsel %vm1338_vm3, %v7907_v59, %v5110_v15  ;;  %v3148_v43 = vsel %vm1338_vm3, %v7917_v45, %v5109_v11 }
 0x358   : > { %v5103_v63 = vpop.permute.xlu0 %5102  ;;  %v5113_v8 = vpop.permute.xlu1 %5112  ;;  %v5034_v13 = vunpack.i.l.bf16 %v8313_v56 }
 0x359   : > { %v5105_v28 = vunpack.i.h.bf16 %v5103_v63  ;;  %v5104_v41 = vunpack.i.l.bf16 %v5103_v63  ;;  %v5115_v57 = vunpack.i.h.bf16 %v5113_v8  ;;  %v5114_v51 = vunpack.i.l.bf16 %v5113_v8 }
 0x35b   : > { %v3182_v46 = vsel %vm1371_vm4, %v3150_v37, %v5104_v41  ;;  %v3183_v6 = vsel %vm1371_vm4, %v3151_v52, %v5105_v28  ;;  %v3180_v44 = vsel %vm1371_vm4, %v3148_v43, %v5114_v51  ;;  %v3181_v5 = vsel %vm1371_vm4, %v3149_v23, %v5115_v57  ;;  %v5417_v41 = vld [vmem:[#allocation2 + $0x168] sm:$0xff] }
 0x35c   : > { %v5123_v9 = vpop.permute.xlu0 %5122  ;;  %v5118_v27 = vpop.permute.xlu1 %5117  ;;  %v8389_v40 = vsel %vm1404_vm5, %v3180_v44, %v5089_v10  ;;  %v8392_v59 = vsel %vm1404_vm5, %v3181_v5, %v5090_v17  ;;  %v5416_v10 = vld [vmem:[#allocation2 + $0x170] sm:$0xff]  ;;  %v3297_v51 = vsel %vm1503_vm8, %v8284_v12, %v5035_v2  ;;  %v3296_v23 = vsel %vm1503_vm8, %v8281_v36, %v5034_v13 }
 0x35d   : > { %v5125_v50 = vunpack.i.h.bf16 %v5123_v9  ;;  %v5124_v39 = vunpack.i.l.bf16 %v5123_v9  ;;  %v5120_v15 = vunpack.i.h.bf16 %v5118_v27  ;;  %v5119_v11 = vunpack.i.l.bf16 %v5118_v27 }
 0x35e   : > { %v5029_v12 = vunpack.i.l.bf16 %v8315_v16 }
 0x35f   : > { %v8395_v45 = vsel %vm1404_vm5, %v3183_v6, %v5125_v50  ;;  %v8398_v19 = vsel %vm1404_vm5, %v3182_v46, %v5124_v39  ;;  %v5030_v50 = vunpack.i.h.bf16 %v8315_v16 }
 0x360   : > { %v5128_v1 = vpop.permute.xlu0 %5127  ;;  %v5133_v14 = vpop.permute.xlu1 %5132 }
 0x361   : > { %v5130_v0 = vunpack.i.h.bf16 %v5128_v1  ;;  %v5129_v30 = vunpack.i.l.bf16 %v5128_v1  ;;  %v5134_v17 = vunpack.i.l.bf16 %v5133_v14 }
 0x363   : > { %v3327_v18 = vsel %vm1536_vm9, %v8321_v55, %v5130_v0  ;;  %v3326_v54 = vsel %vm1536_vm9, %v8318_v29, %v5129_v30  ;;  %v5135_v29 = vunpack.i.h.bf16 %v5133_v14  ;;  %v3328_v44 = vsel %vm1536_vm9, %v3296_v23, %v5134_v17 }
 0x364   : > { %v5138_v33 = vpop.permute.xlu0 %5137  ;;  %v5143_v61 = vpop.permute.xlu1 %5142 }
 0x365   : > { %v5140_v34 = vunpack.i.h.bf16 %v5138_v33  ;;  %v5139_v35 = vunpack.i.l.bf16 %v5138_v33  ;;  %v5145_v26 = vunpack.i.h.bf16 %v5143_v61  ;;  %v5144_v62 = vunpack.i.l.bf16 %v5143_v61 }
 0x366   : > { %v3329_v6 = vsel %vm1536_vm9, %v3297_v51, %v5135_v29 }
 0x367   : > { %v3358_v24 = vsel %vm1569_vm10, %v3326_v54, %v5139_v35  ;;  %v3359_v49 = vsel %vm1569_vm10, %v3327_v18, %v5140_v34  ;;  %v3153_v28 = vsel %vm1338_vm3, %v5416_v10, %v5145_v26  ;;  %v3152_v8 = vsel %vm1338_vm3, %v5417_v41, %v5144_v62 }
 0x368   : > { %v3384_v31 = vpack.c.bf16 %v3359_v49, %v3358_v24  ;;  %v5158_v25 = vpop.permute.xlu0 %5157  ;;  %v3203_v34 = vsel %vm1404_vm5, %v8274_v4, %v5030_v50  ;;  %v3202_v54 = vsel %vm1404_vm5, %v8271_v42, %v5029_v12  ;;  %v5049_v24 = vunpack.i.l.bf16 %v8327_v32 }
 0x369   : > { %v5148_v48 = vpop.permute.xlu1 %5147  ;;  %v5160_v14 = vunpack.i.h.bf16 %v5158_v25  ;;  %v5159_v0 = vunpack.i.l.bf16 %v5158_v25  ;;  %v5050_v26 = vunpack.i.h.bf16 %v8327_v32  ;;  %v5054_v62 = vunpack.i.l.bf16 %v8333_v21 }
 0x36a   : > { %v5150_v63 = vunpack.i.h.bf16 %v5148_v48  ;;  %v5149_v55 = vunpack.i.l.bf16 %v5148_v48  ;;  %4036 = vmatprep.mubr.msk.bf16.mxu1 %vm1654_vm11, %v3384_v31  ;;  %v5055_v4 = vunpack.i.h.bf16 %v8333_v21  ;;  %v5419_v21 = vld [vmem:[#allocation2 + $0xe0] sm:$0xff] }
 0x36b   : > { %v3235_v31 = vsel %vm1437_vm6, %v3203_v34, %v5160_v14  ;;  %v3234_v25 = vsel %vm1437_vm6, %v3202_v54, %v5159_v0 }
 0x36c   : > { %v3184_v3 = vsel %vm1371_vm4, %v3152_v8, %v5149_v55  ;;  %v3185_v52 = vsel %vm1371_vm4, %v3153_v28, %v5150_v63  ;;  %v5168_v56 = vpop.permute.xlu0 %5167  ;;  %v5418_v55 = vld [vmem:[#allocation2 + $0xd8] sm:$0xff]  ;;  %v3141_v28 = vsel %vm1338_vm3, %v5419_v21, %v5050_v26 }
 0x36d   : > { %v5153_v60 = vpop.permute.xlu1 %5152  ;;  %v8414_v37 = vsel %vm1404_vm5, %v3184_v3, %v5119_v11  ;;  %v8417_v57 = vsel %vm1404_vm5, %v3185_v52, %v5120_v15  ;;  %v5170_v36 = vunpack.i.h.bf16 %v5168_v56  ;;  %v5169_v30 = vunpack.i.l.bf16 %v5168_v56 }
 0x36e   : > { %v5155_v43 = vunpack.i.h.bf16 %v5153_v60  ;;  %v5154_v46 = vunpack.i.l.bf16 %v5153_v60  ;;  %v3140_v29 = vsel %vm1338_vm3, %v5418_v55, %v5049_v24  ;;  %v3173_v52 = vsel %vm1371_vm4, %v3141_v28, %v5055_v4 }
 0x36f   : > { %v3266_v2 = vsel %vm1470_vm7, %v3234_v25, %v5169_v30  ;;  %v3267_v13 = vsel %vm1470_vm7, %v3235_v31, %v5170_v36  ;;  %v3172_v41 = vsel %vm1371_vm4, %v3140_v29, %v5054_v62 }
 0x370   : > { %v3361_v5 = vsel %vm1569_vm10, %v3329_v6, %v5155_v43  ;;  %v3360_v9 = vsel %vm1569_vm10, %v3328_v44, %v5154_v46  ;;  %v5178_v27 = vpop.permute.xlu0 %5177  ;;  %v5025_v43 = vunpack.i.h.bf16 %v8296_v47  ;;  %v5024_v46 = vunpack.i.l.bf16 %v8296_v47 }
 0x371   : > { %v3385_v39 = vpack.c.bf16 %v3361_v5, %v3360_v9  ;;  %v5163_v1 = vpop.permute.xlu1 %5162  ;;  %v5180_v35 = vunpack.i.h.bf16 %v5178_v27  ;;  %v5179_v61 = vunpack.i.l.bf16 %v5178_v27 }
 0x372   : > { %v5165_v56 = vunpack.i.h.bf16 %v5163_v1  ;;  %v5164_v60 = vunpack.i.l.bf16 %v5163_v1  ;;  %v3204_v50 = vsel %vm1404_vm5, %v3172_v41, %v5024_v46 }
 0x373   : > { %4037 = vmatmul.mubr.msk.bf16.gmra.mrb[12].mxu1 %vm1654_vm11, %v3385_v39  ;;  %v3298_v42 = vsel %vm1503_vm8, %v3266_v2, %v5179_v61  ;;  %v3299_v15 = vsel %vm1503_vm8, %v3267_v13, %v5180_v35  ;;  %v3205_v39 = vsel %vm1404_vm5, %v3173_v52, %v5025_v43 }
 0x374   : > { %v5188_v33 = vpop.permute.xlu0 %5187  ;;  %v3237_v1 = vsel %vm1437_vm6, %v3205_v39, %v5165_v56  ;;  %v3236_v0 = vsel %vm1437_vm6, %v3204_v50, %v5164_v60 }
 0x375   : > { %v5173_v18 = vpop.permute.xlu1 %5172  ;;  %v5190_v49 = vunpack.i.h.bf16 %v5188_v33  ;;  %v5189_v16 = vunpack.i.l.bf16 %v5188_v33 }
 0x376   : > { %v5175_v6 = vunpack.i.h.bf16 %v5173_v18  ;;  %v5174_v44 = vunpack.i.l.bf16 %v5173_v18 }
 0x377   : > { %v3330_v17 = vsel %vm1536_vm9, %v3298_v42, %v5189_v16  ;;  %v3331_v10 = vsel %vm1536_vm9, %v3299_v15, %v5190_v49 }
 0x378   : > { %v5198_v48 = vpop.permute.xlu0 %5197  ;;  %v3268_v47 = vsel %vm1470_vm7, %v3236_v0, %v5174_v44  ;;  %v3269_v30 = vsel %vm1470_vm7, %v3237_v1, %v5175_v6 }
 0x379   : > { %v5200_v11 = vunpack.i.h.bf16 %v5198_v48  ;;  %v5199_v63 = vunpack.i.l.bf16 %v5198_v48  ;;  %v5183_v32 = vpop.permute.xlu1 %5182 }
 0x37a   : > { %v5185_v9 = vunpack.i.h.bf16 %v5183_v32  ;;  %v5184_v27 = vunpack.i.l.bf16 %v5183_v32 }
 0x37b   : > { %v3362_v8 = vsel %vm1569_vm10, %v3330_v17, %v5199_v63  ;;  %v3363_v3 = vsel %vm1569_vm10, %v3331_v10, %v5200_v11 }
 0x37c   : > { %v3386_v51 = vpack.c.bf16 %v3363_v3, %v3362_v8  ;;  %v5208_v23 = vpop.permute.xlu0 %5207  ;;  %v3300_v34 = vsel %vm1503_vm8, %v3268_v47, %v5184_v27  ;;  %v3301_v35 = vsel %vm1503_vm8, %v3269_v30, %v5185_v9 }
 0x37d   : > { %v5193_v5 = vpop.permute.xlu1 %5192  ;;  %v5210_v25 = vunpack.i.h.bf16 %v5208_v23  ;;  %v5209_v4 = vunpack.i.l.bf16 %v5208_v23 }
 0x37e   : > { %4040 = vmatprep.mubr.msk.bf16.mxu1 %vm1654_vm11, %v3386_v51  ;;  %v5195_v12 = vunpack.i.h.bf16 %v5193_v5  ;;  %v5194_v14 = vunpack.i.l.bf16 %v5193_v5 }
 0x37f   : > { %v3239_v55 = vsel %vm1437_vm6, %v8349_v53, %v5210_v25  ;;  %v3238_v29 = vsel %vm1437_vm6, %v8352_v58, %v5209_v4 }
 0x380   : > { %v5218_v36 = vpop.permute.xlu0 %5217  ;;  %v3332_v54 = vsel %vm1536_vm9, %v3300_v34, %v5194_v14  ;;  %v3333_v24 = vsel %vm1536_vm9, %v3301_v35, %v5195_v12 }
 0x381   : > { %v5203_v33 = vpop.permute.xlu1 %5202  ;;  %v5220_v2 = vunpack.i.h.bf16 %v5218_v36  ;;  %v5219_v13 = vunpack.i.l.bf16 %v5218_v36 }
 0x382   : > { %v5205_v61 = vunpack.i.h.bf16 %v5203_v33  ;;  %v5204_v18 = vunpack.i.l.bf16 %v5203_v33 }
 0x383   : > { %v3270_v17 = vsel %vm1470_vm7, %v3238_v29, %v5219_v13  ;;  %v3271_v10 = vsel %vm1470_vm7, %v3239_v55, %v5220_v2 }
 0x384   : > { %v3364_v49 = vsel %vm1569_vm10, %v3332_v54, %v5204_v18  ;;  %v3365_v16 = vsel %vm1569_vm10, %v3333_v24, %v5205_v61  ;;  %v5228_v26 = vpop.permute.xlu0 %5227 }
 0x385   : > { %v3387_v62 = vpack.c.bf16 %v3365_v16, %v3364_v49  ;;  %v5213_v31 = vpop.permute.xlu1 %5212  ;;  %v5230_v42 = vunpack.i.h.bf16 %v5228_v26  ;;  %v5229_v15 = vunpack.i.l.bf16 %v5228_v26 }
 0x386   : > { %v5215_v51 = vunpack.i.h.bf16 %v5213_v31  ;;  %v5214_v23 = vunpack.i.l.bf16 %v5213_v31 }
 0x387   : > { %4041 = vmatmul.mubr.msk.bf16.gmra.mrb[16].mxu1 %vm1654_vm11, %v3387_v62  ;;  %v3302_v28 = vsel %vm1503_vm8, %v3270_v17, %v5229_v15  ;;  %v3303_v41 = vsel %vm1503_vm8, %v3271_v10, %v5230_v42 }
 0x388   : > { %v5238_v48 = vpop.permute.xlu0 %5237  ;;  %v3241_v12 = vsel %vm1437_vm6, %v8370_v20, %v5215_v51  ;;  %v3240_v14 = vsel %vm1437_vm6, %v8367_v38, %v5214_v23 }
 0x389   : > { %v5223_v11 = vpop.permute.xlu1 %5222  ;;  %v5240_v63 = vunpack.i.h.bf16 %v5238_v48  ;;  %v5239_v32 = vunpack.i.l.bf16 %v5238_v48 }
 0x38a   : > { %v5225_v6 = vunpack.i.h.bf16 %v5223_v11  ;;  %v5224_v44 = vunpack.i.l.bf16 %v5223_v11 }
 0x38b   : > { %v3334_v56 = vsel %vm1536_vm9, %v3302_v28, %v5239_v32  ;;  %v3335_v60 = vsel %vm1536_vm9, %v3303_v41, %v5240_v63 }
 0x38c   : > { %v5248_v21 = vpop.permute.xlu0 %5247  ;;  %v3272_v0 = vsel %vm1470_vm7, %v3240_v14, %v5224_v44  ;;  %v3273_v36 = vsel %vm1470_vm7, %v3241_v12, %v5225_v6 }
 0x38d   : > { %v5250_v8 = vunpack.i.h.bf16 %v5248_v21  ;;  %v5249_v3 = vunpack.i.l.bf16 %v5248_v21  ;;  %v5233_v52 = vpop.permute.xlu1 %5232 }
 0x38e   : > { %v5235_v9 = vunpack.i.h.bf16 %v5233_v52  ;;  %v5234_v27 = vunpack.i.l.bf16 %v5233_v52 }
 0x38f   : > { %v3366_v53 = vsel %vm1569_vm10, %v3334_v56, %v5249_v3  ;;  %v3367_v58 = vsel %vm1569_vm10, %v3335_v60, %v5250_v8 }
 0x390   : > { %v3388_v43 = vpack.c.bf16 %v3367_v58, %v3366_v53  ;;  %v5258_v46 = vpop.permute.xlu0 %5257  ;;  %v3304_v30 = vsel %vm1503_vm8, %v3272_v0, %v5234_v27  ;;  %v3305_v33 = vsel %vm1503_vm8, %v3273_v36, %v5235_v9 }
 0x391   : > { %v5243_v5 = vpop.permute.xlu1 %5242  ;;  %v5260_v16 = vunpack.i.h.bf16 %v5258_v46  ;;  %v5259_v26 = vunpack.i.l.bf16 %v5258_v46 }
 0x392   : > { %4044 = vmatprep.mubr.msk.bf16.mxu1 %vm1654_vm11, %v3388_v43  ;;  %v5245_v50 = vunpack.i.h.bf16 %v5243_v5  ;;  %v5244_v39 = vunpack.i.l.bf16 %v5243_v5 }
 0x393   : > { %v3243_v15 = vsel %vm1437_vm6, %v8373_v22, %v5260_v16  ;;  %v3242_v11 = vsel %vm1437_vm6, %v8376_v7, %v5259_v26 }
 0x394   : > { %v5268_v1 = vpop.permute.xlu0 %5267  ;;  %v3336_v61 = vsel %vm1536_vm9, %v3304_v30, %v5244_v39  ;;  %v3337_v18 = vsel %vm1536_vm9, %v3305_v33, %v5245_v50 }
 0x395   : > { %v5253_v47 = vpop.permute.xlu1 %5252  ;;  %v5270_v62 = vunpack.i.h.bf16 %v5268_v1  ;;  %v5269_v31 = vunpack.i.l.bf16 %v5268_v1 }
 0x396   : > { %v5255_v34 = vunpack.i.h.bf16 %v5253_v47  ;;  %v5254_v35 = vunpack.i.l.bf16 %v5253_v47 }
 0x397   : > { %v3274_v63 = vsel %vm1470_vm7, %v3242_v11, %v5269_v31  ;;  %v3275_v32 = vsel %vm1470_vm7, %v3243_v15, %v5270_v62 }
 0x398   : > { %v3368_v20 = vsel %vm1569_vm10, %v3336_v61, %v5254_v35  ;;  %v3369_v38 = vsel %vm1569_vm10, %v3337_v18, %v5255_v34  ;;  %v5278_v54 = vpop.permute.xlu0 %5277 }
 0x399   : > { %v3389_v24 = vpack.c.bf16 %v3369_v38, %v3368_v20  ;;  %v5263_v49 = vpop.permute.xlu1 %5262  ;;  %v5280_v4 = vunpack.i.h.bf16 %v5278_v54  ;;  %v5279_v2 = vunpack.i.l.bf16 %v5278_v54 }
 0x39a   : > { %v5265_v3 = vunpack.i.h.bf16 %v5263_v49  ;;  %v5264_v52 = vunpack.i.l.bf16 %v5263_v49 }
 0x39b   : > { %4045 = vmatmul.mubr.msk.bf16.gmra.mrb[20].mxu1 %vm1654_vm11, %v3389_v24  ;;  %v3306_v29 = vsel %vm1503_vm8, %v3274_v63, %v5279_v2  ;;  %v3307_v17 = vsel %vm1503_vm8, %v3275_v32, %v5280_v4 }
 0x39c   : > { %v5288_v25 = vpop.permute.xlu0 %5287  ;;  %v3245_v44 = vsel %vm1437_vm6, %v8392_v59, %v5265_v3  ;;  %v3244_v5 = vsel %vm1437_vm6, %v8389_v40, %v5264_v52 }
 0x39d   : > { %v5273_v13 = vpop.permute.xlu1 %5272  ;;  %v5290_v48 = vunpack.i.h.bf16 %v5288_v25  ;;  %v5289_v42 = vunpack.i.l.bf16 %v5288_v25 }
 0x39e   : > { %v5275_v53 = vunpack.i.h.bf16 %v5273_v13  ;;  %v5274_v58 = vunpack.i.l.bf16 %v5273_v13 }
 0x39f   : > { %v3338_v41 = vsel %vm1536_vm9, %v3306_v29, %v5289_v42  ;;  %v3339_v8 = vsel %vm1536_vm9, %v3307_v17, %v5290_v48 }
 0x3a0   : > { %v5298_v55 = vpop.permute.xlu0 %5297  ;;  %v3276_v27 = vsel %vm1470_vm7, %v3244_v5, %v5274_v58  ;;  %v3277_v50 = vsel %vm1470_vm7, %v3245_v44, %v5275_v53  ;;  %v8549_v5 = vld [vmem:[%s8632_s5] ss:$0 sm:$0xff] }
 0x3a1   : > { %v5300_v10 = vunpack.i.h.bf16 %v5298_v55  ;;  %v5299_v21 = vunpack.i.l.bf16 %v5298_v55  ;;  %v5283_v28 = vpop.permute.xlu1 %5282 }
 0x3a2   : > { %v5285_v23 = vunpack.i.h.bf16 %v5283_v28  ;;  %v5284_v43 = vunpack.i.l.bf16 %v5283_v28 }
 0x3a3   : > { %v3370_v22 = vsel %vm1569_vm10, %v3338_v41, %v5299_v21  ;;  %v3371_v7 = vsel %vm1569_vm10, %v3339_v8, %v5300_v10 }
 0x3a4   : > { %v3390_v56 = vpack.c.bf16 %v3371_v7, %v3370_v22  ;;  %v5308_v60 = vpop.permute.xlu0 %5307  ;;  %v3308_v12 = vsel %vm1503_vm8, %v3276_v27, %v5284_v43  ;;  %v3309_v14 = vsel %vm1503_vm8, %v3277_v50, %v5285_v23  ;;  %v8554_v27 = vld [vmem:[%s8633_s6] ss:$0 sm:$0xff] }
 0x3a5   : > { %v5293_v51 = vpop.permute.xlu1 %5292  ;;  %v5310_v35 = vunpack.i.h.bf16 %v5308_v60  ;;  %v5309_v61 = vunpack.i.l.bf16 %v5308_v60 }
 0x3a6   : > { %4048 = vmatprep.mubr.msk.bf16.mxu1 %vm1654_vm11, %v3390_v56  ;;  %v5295_v46 = vunpack.i.h.bf16 %v5293_v51  ;;  %v5294_v6 = vunpack.i.l.bf16 %v5293_v51 }
 0x3a7   : > { %v3247_v62 = vsel %vm1437_vm6, %v8395_v45, %v5310_v35  ;;  %v3246_v31 = vsel %vm1437_vm6, %v8398_v19, %v5309_v61 }
 0x3a8   : > { %v5318_v9 = vpop.permute.xlu0 %5317  ;;  %v3340_v36 = vsel %vm1536_vm9, %v3308_v12, %v5294_v6  ;;  %v3341_v47 = vsel %vm1536_vm9, %v3309_v14, %v5295_v46 }
 0x3a9   : > { %v5303_v39 = vpop.permute.xlu1 %5302  ;;  %v5320_v18 = vunpack.i.h.bf16 %v5318_v9  ;;  %v5319_v20 = vunpack.i.l.bf16 %v5318_v9 }
 0x3aa   : > { %v5305_v1 = vunpack.i.h.bf16 %v5303_v39  ;;  %v5304_v0 = vunpack.i.l.bf16 %v5303_v39 }
 0x3ab   : > { %v3278_v25 = vsel %vm1470_vm7, %v3246_v31, %v5319_v20  ;;  %v3279_v4 = vsel %vm1470_vm7, %v3247_v62, %v5320_v18 }
 0x3ac   : > { %v3372_v59 = vsel %vm1569_vm10, %v3340_v36, %v5304_v0  ;;  %v3373_v40 = vsel %vm1569_vm10, %v3341_v47, %v5305_v1  ;;  %v5328_v30 = vpop.permute.xlu0 %5327 }
 0x3ad   : > { %v3391_v33 = vpack.c.bf16 %v3373_v40, %v3372_v59  ;;  %v5313_v34 = vpop.permute.xlu1 %5312  ;;  %v5330_v54 = vunpack.i.h.bf16 %v5328_v30  ;;  %v5329_v24 = vunpack.i.l.bf16 %v5328_v30 }
 0x3ae   : > { %v5315_v55 = vunpack.i.h.bf16 %v5313_v34  ;;  %v5314_v29 = vunpack.i.l.bf16 %v5313_v34 }
 0x3af   : > { %4049 = vmatmul.mubr.msk.bf16.gmra.mrb[24].mxu1 %vm1654_vm11, %v3391_v33  ;;  %v3310_v13 = vsel %vm1503_vm8, %v3278_v25, %v5329_v24  ;;  %v3311_v48 = vsel %vm1503_vm8, %v3279_v4, %v5330_v54 }
 0x3b0   : > { %v5338_v38 = vpop.permute.xlu0 %5337  ;;  %v3248_v3 = vsel %vm1437_vm6, %v8414_v37, %v5314_v29  ;;  %v3249_v52 = vsel %vm1437_vm6, %v8417_v57, %v5315_v55 }
 0x3b1   : > { %v5323_v49 = vpop.permute.xlu1 %5322  ;;  %v5340_v16 = vunpack.i.h.bf16 %v5338_v38  ;;  %v5339_v26 = vunpack.i.l.bf16 %v5338_v38 }
 0x3b2   : > { %v5325_v10 = vunpack.i.h.bf16 %v5323_v49  ;;  %v5324_v21 = vunpack.i.l.bf16 %v5323_v49 }
 0x3b3   : > { %v3342_v63 = vsel %vm1536_vm9, %v3310_v13, %v5339_v26  ;;  %v3343_v32 = vsel %vm1536_vm9, %v3311_v48, %v5340_v16 }
 0x3b4   : > { %v5348_v2 = vpop.permute.xlu0 %5347  ;;  %v3280_v56 = vsel %vm1470_vm7, %v3248_v3, %v5324_v21  ;;  %v3281_v60 = vsel %vm1470_vm7, %v3249_v52, %v5325_v10 }
 0x3b5   : > { %v5350_v42 = vunpack.i.h.bf16 %v5348_v2  ;;  %v5349_v15 = vunpack.i.l.bf16 %v5348_v2  ;;  %v5333_v11 = vpop.permute.xlu1 %5332 }
 0x3b6   : > { %v5335_v41 = vunpack.i.h.bf16 %v5333_v11  ;;  %v5334_v8 = vunpack.i.l.bf16 %v5333_v11 }
 0x3b7   : > { %v3374_v45 = vsel %vm1569_vm10, %v3342_v63, %v5349_v15  ;;  %v3375_v19 = vsel %vm1569_vm10, %v3343_v32, %v5350_v42 }
 0x3b8   : > { %v3392_v17 = vpack.c.bf16 %v3375_v19, %v3374_v45  ;;  %v3312_v58 = vsel %vm1503_vm8, %v3280_v56, %v5334_v8  ;;  %v3313_v51 = vsel %vm1503_vm8, %v3281_v60, %v5335_v41 }
 0x3b9   : > { %v5343_v28 = vpop.permute.xlu1 %5342 }
 0x3ba   : > { %4052 = vmatprep.mubr.msk.bf16.mxu1 %vm1654_vm11, %v3392_v17  ;;  %v5345_v22 = vunpack.i.h.bf16 %v5343_v28  ;;  %v5344_v7 = vunpack.i.l.bf16 %v5343_v28 }
 0x3bc   : > { %v3344_v46 = vsel %vm1536_vm9, %v3312_v58, %v5344_v7  ;;  %v3345_v6 = vsel %vm1536_vm9, %v3313_v51, %v5345_v22 }
 0x3bd   : > { %v5353_v53 = vpop.permute.xlu1 %5352 }
 0x3be   : > { %v5355_v23 = vunpack.i.h.bf16 %v5353_v53  ;;  %v5354_v43 = vunpack.i.l.bf16 %v5353_v53 }
 0x3c0   : > { %v3376_v37 = vsel %vm1569_vm10, %v3344_v46, %v5354_v43  ;;  %v3377_v44 = vsel %vm1569_vm10, %v3345_v6, %v5355_v23 }
 0x3c1   : > { %v3393_v57 = vpack.c.bf16 %v3377_v44, %v3376_v37 }
 0x3c3   : > { %4053 = vmatmul.mubr.msk.bf16.gmra.mrb[28].mxu1 %vm1654_vm11, %v3393_v57 }
 0x3c9   : > { %v4026_v9 = vpop.f32.mrb[0].mxu1 }
 0x3ca   : > { %v3515_v50 = vpop.f32.mrb[1].mxu1  ;;  %v3651_v36 = vmul.f32 %v4026_v9, %v8549_v5 }
 0x3cb   : > { %v3649_v39 = vmul.f32 %v8549_v5, %v3515_v50  ;;  %v4027_v12 = vpop.f32.mrb[2].mxu1 }
 0x3cc   : > { %v3518_v14 = vpop.f32.mrb[3].mxu1  ;;  %v3690_v40 = vadd.f32 %v8554_v27, %v3651_v36  ;;  %v3652_v30 = vmul.f32 %v4027_v12, %v8549_v5 }
 0x3cd   : > { %v3688_v1 = vadd.f32 %v8554_v27, %v3649_v39  ;;  %v3650_v0 = vmul.f32 %v8549_v5, %v3518_v14 }
 0x3ce   : > { %v3722_v34 = vmax.f32 %v3690_v40, 0.0  ;;  %v3691_v35 = vadd.f32 %v8554_v27, %v3652_v30 }
 0x3cf   : > { %v3720_v47 = vmax.f32 %v3688_v1, 0.0  ;;  %v3689_v59 = vadd.f32 %v8554_v27, %v3650_v0 }
 0x3d0   : > { %v3723_v61 = vmax.f32 %v3691_v35, 0.0 }
 0x3d1   : > { %3752 = vxpose.xlu0.b32.start [1/16] (narrow) %v3720_v47, 8  ;;  %v3721_v33 = vmax.f32 %v3689_v59, 0.0 }
 0x3d5   : > { %3753 = vxpose.xlu0.b32.cont [2/16] (narrow) %v3721_v33, 8 }
 0x3d9   : > { %3754 = vxpose.xlu0.b32.cont [3/16] (narrow) %v3722_v34, 8 }
 0x3dd   : > { %3755 = vxpose.xlu0.b32.cont [4/16] (narrow) %v3723_v61, 8 }
 0x3e9   : > { %v4030_v18 = vpop.f32.mrb[4].mxu1 }
 0x3ea   : > { %v3531_v20 = vpop.f32.mrb[5].mxu1  ;;  %v3655_v26 = vmul.f32 %v4030_v18, %v8549_v5 }
 0x3eb   : > { %v3653_v38 = vmul.f32 %v8549_v5, %v3531_v20  ;;  %v4031_v54 = vpop.f32.mrb[6].mxu1 }
 0x3ec   : > { %v3534_v24 = vpop.f32.mrb[7].mxu1  ;;  %v3694_v25 = vadd.f32 %v8554_v27, %v3655_v26  ;;  %v3656_v4 = vmul.f32 %v4031_v54, %v8549_v5 }
 0x3ed   : > { %v3692_v49 = vadd.f32 %v8554_v27, %v3653_v38  ;;  %v3654_v16 = vmul.f32 %v8549_v5, %v3534_v24 }
 0x3ee   : > { %v3726_v13 = vmax.f32 %v3694_v25, 0.0  ;;  %v3695_v48 = vadd.f32 %v8554_v27, %v3656_v4 }
 0x3ef   : > { %v3724_v62 = vmax.f32 %v3692_v49, 0.0  ;;  %v3693_v31 = vadd.f32 %v8554_v27, %v3654_v16 }
 0x3f0   : > { %v3727_v42 = vmax.f32 %v3695_v48, 0.0 }
 0x3f1   : > { %3756 = vxpose.xlu0.b32.cont [5/16] (narrow) %v3724_v62, 8  ;;  %v3725_v2 = vmax.f32 %v3693_v31, 0.0 }
 0x3f5   : > { %3757 = vxpose.xlu0.b32.cont [6/16] (narrow) %v3725_v2, 8 }
 0x3f9   : > { %3758 = vxpose.xlu0.b32.cont [7/16] (narrow) %v3726_v13, 8 }
 0x3fd   : > { %3759 = vxpose.xlu0.b32.cont [8/16] (narrow) %v3727_v42, 8 }
 0x409   : > { %v4034_v15 = vpop.f32.mrb[8].mxu1 }
 0x40a   : > { %v3547_v11 = vpop.f32.mrb[9].mxu1  ;;  %v3659_v29 = vmul.f32 %v4034_v15, %v8549_v5 }
 0x40b   : > { %v3657_v63 = vmul.f32 %v8549_v5, %v3547_v11  ;;  %v4035_v32 = vpop.f32.mrb[10].mxu1 }
 0x40c   : > { %v3550_v45 = vpop.f32.mrb[11].mxu1  ;;  %v3698_v21 = vadd.f32 %v8554_v27, %v3659_v29  ;;  %v3660_v28 = vmul.f32 %v4035_v32, %v8549_v5 }
 0x40d   : > { %v3696_v19 = vadd.f32 %v8554_v27, %v3657_v63  ;;  %v3658_v55 = vmul.f32 %v8549_v5, %v3550_v45 }
 0x40e   : > { %v3730_v8 = vmax.f32 %v3698_v21, 0.0  ;;  %v3699_v22 = vadd.f32 %v8554_v27, %v3660_v28 }
 0x40f   : > { %v3728_v17 = vmax.f32 %v3696_v19, 0.0  ;;  %v3697_v10 = vadd.f32 %v8554_v27, %v3658_v55 }
 0x410   : > { %v3731_v7 = vmax.f32 %v3699_v22, 0.0 }
 0x411   : > { %3760 = vxpose.xlu0.b32.cont [9/16] (narrow) %v3728_v17, 8  ;;  %v3729_v41 = vmax.f32 %v3697_v10, 0.0 }
 0x415   : > { %3761 = vxpose.xlu0.b32.cont [10/16] (narrow) %v3729_v41, 8 }
 0x419   : > { %3762 = vxpose.xlu0.b32.cont [11/16] (narrow) %v3730_v8, 8 }
 0x41d   : > { %3763 = vxpose.xlu0.b32.cont [12/16] (narrow) %v3731_v7, 8 }
 0x446   : > { %v4038_v3 = vpop.f32.mrb[12].mxu1 }
 0x447   : > { %v3563_v52 = vpop.f32.mrb[13].mxu1  ;;  %v3663_v23 = vmul.f32 %v4038_v3, %v8549_v5 }
 0x448   : > { %v3661_v56 = vmul.f32 %v8549_v5, %v3563_v52  ;;  %v4039_v60 = vpop.f32.mrb[14].mxu1 }
 0x449   : > { %v3566_v53 = vpop.f32.mrb[15].mxu1  ;;  %v3702_v6 = vadd.f32 %v8554_v27, %v3663_v23  ;;  %v3664_v37 = vmul.f32 %v4039_v60, %v8549_v5 }
 0x44a   : > { %v3700_v58 = vadd.f32 %v8554_v27, %v3661_v56  ;;  %v3662_v51 = vmul.f32 %v8549_v5, %v3566_v53 }
 0x44b   : > { %v3734_v57 = vmax.f32 %v3702_v6, 0.0  ;;  %v3703_v9 = vadd.f32 %v8554_v27, %v3664_v37 }
 0x44c   : > { %v3732_v43 = vmax.f32 %v3700_v58, 0.0  ;;  %v3701_v46 = vadd.f32 %v8554_v27, %v3662_v51 }
 0x44d   : > { %v3735_v50 = vmax.f32 %v3703_v9, 0.0 }
 0x44e   : > { %3764 = vxpose.xlu0.b32.cont [13/16] (narrow) %v3732_v43, 8  ;;  %v3733_v44 = vmax.f32 %v3701_v46, 0.0 }
 0x452   : > { %3765 = vxpose.xlu0.b32.cont [14/16] (narrow) %v3733_v44, 8 }
 0x456   : > { %3766 = vxpose.xlu0.b32.cont [15/16] (narrow) %v3734_v57, 8 }
 0x45a   : > { %3767 = vxpose.xlu0.b32.end [16/16] (narrow) %v3735_v50, 8  ;;  %v4042_v39 = vpop.f32.mrb[16].mxu1 }
 0x45b   : > { %v3579_v12 = vpop.f32.mrb[17].mxu1  ;;  %v3667_v59 = vmul.f32 %v4042_v39, %v8549_v5 }
 0x45c   : > { %v3665_v14 = vmul.f32 %v8549_v5, %v3579_v12  ;;  %v4043_v1 = vpop.f32.mrb[18].mxu1 }
 0x45d   : > { %v3582_v0 = vpop.f32.mrb[19].mxu1  ;;  %v3706_v33 = vadd.f32 %v8554_v27, %v3667_v59  ;;  %v3668_v34 = vmul.f32 %v4043_v1, %v8549_v5 }
 0x45e   : > { %v3704_v36 = vadd.f32 %v8554_v27, %v3665_v14  ;;  %v3666_v47 = vmul.f32 %v8549_v5, %v3582_v0 }
 0x45f   : > { %v3738_v61 = vmax.f32 %v3706_v33, 0.0  ;;  %v3707_v18 = vadd.f32 %v8554_v27, %v3668_v34 }
 0x460   : > { %v3736_v40 = vmax.f32 %v3704_v36, 0.0  ;;  %v3705_v30 = vadd.f32 %v8554_v27, %v3666_v47 }
 0x461   : > { %v3739_v20 = vmax.f32 %v3707_v18, 0.0 }
 0x462   : > { %3784 = vxpose.xlu1.b32.start [1/16] (narrow) %v3736_v40, 8  ;;  %v3737_v35 = vmax.f32 %v3705_v30, 0.0 }
 0x466   : > { %3785 = vxpose.xlu1.b32.cont [2/16] (narrow) %v3737_v35, 8 }
 0x46a   : > { %3786 = vxpose.xlu1.b32.cont [3/16] (narrow) %v3738_v61, 8 }
 0x46e   : > { %3787 = vxpose.xlu1.b32.cont [4/16] (narrow) %v3739_v20, 8  ;;  %v4046_v38 = vpop.f32.mrb[20].mxu1 }
 0x46f   : > { %v3595_v54 = vpop.f32.mrb[21].mxu1  ;;  %v3671_v31 = vmul.f32 %v4046_v38, %v8549_v5 }
 0x470   : > { %v3669_v24 = vmul.f32 %v8549_v5, %v3595_v54  ;;  %v4047_v49 = vpop.f32.mrb[22].mxu1 }
 0x471   : > { %v3598_v16 = vpop.f32.mrb[23].mxu1  ;;  %v3710_v2 = vadd.f32 %v8554_v27, %v3671_v31  ;;  %v3672_v13 = vmul.f32 %v4047_v49, %v8549_v5 }
 0x472   : > { %v3708_v26 = vadd.f32 %v8554_v27, %v3669_v24  ;;  %v3670_v62 = vmul.f32 %v8549_v5, %v3598_v16 }
 0x473   : > { %v3742_v42 = vmax.f32 %v3710_v2, 0.0  ;;  %v3711_v15 = vadd.f32 %v8554_v27, %v3672_v13 }
 0x474   : > { %v3740_v25 = vmax.f32 %v3708_v26, 0.0  ;;  %v3709_v4 = vadd.f32 %v8554_v27, %v3670_v62 }
 0x475   : > { %v3743_v11 = vmax.f32 %v3711_v15, 0.0 }
 0x476   : > { %3788 = vxpose.xlu1.b32.cont [5/16] (narrow) %v3740_v25, 8  ;;  %v3741_v48 = vmax.f32 %v3709_v4, 0.0 }
 0x47a   : > { %3789 = vxpose.xlu1.b32.cont [6/16] (narrow) %v3741_v48, 8 }
 0x47e   : > { %3790 = vxpose.xlu1.b32.cont [7/16] (narrow) %v3742_v42, 8 }
 0x482   : > { %3791 = vxpose.xlu1.b32.cont [8/16] (narrow) %v3743_v11, 8  ;;  %v4050_v63 = vpop.f32.mrb[24].mxu1 }
 0x483   : > { %v3611_v32 = vpop.f32.mrb[25].mxu1  ;;  %v3675_v10 = vmul.f32 %v4050_v63, %v8549_v5 }
 0x484   : > { %v3673_v45 = vmul.f32 %v8549_v5, %v3611_v32  ;;  %v4051_v19 = vpop.f32.mrb[26].mxu1 }
 0x485   : > { %v3614_v55 = vpop.f32.mrb[27].mxu1  ;;  %v3714_v41 = vadd.f32 %v8554_v27, %v3675_v10  ;;  %v3676_v8 = vmul.f32 %v4051_v19, %v8549_v5 }
 0x486   : > { %v3712_v29 = vadd.f32 %v8554_v27, %v3673_v45  ;;  %v3674_v17 = vmul.f32 %v8549_v5, %v3614_v55 }
 0x487   : > { %v3746_v7 = vmax.f32 %v3714_v41, 0.0  ;;  %v3715_v3 = vadd.f32 %v8554_v27, %v3676_v8 }
 0x488   : > { %v3744_v21 = vmax.f32 %v3712_v29, 0.0  ;;  %v3713_v28 = vadd.f32 %v8554_v27, %v3674_v17 }
 0x489   : > { %v3747_v52 = vmax.f32 %v3715_v3, 0.0 }
 0x48a   : > { %3792 = vxpose.xlu1.b32.cont [9/16] (narrow) %v3744_v21, 8  ;;  %v3745_v22 = vmax.f32 %v3713_v28, 0.0 }
 0x48e   : > { %3793 = vxpose.xlu1.b32.cont [10/16] (narrow) %v3745_v22, 8 }
 0x492   : > { %3794 = vxpose.xlu1.b32.cont [11/16] (narrow) %v3746_v7, 8 }
 0x496   : > { %3795 = vxpose.xlu1.b32.cont [12/16] (narrow) %v3747_v52, 8  ;;  %v4054_v56 = vpop.f32.mrb[28].mxu1 }
 0x497   : > { %v3627_v60 = vpop.f32.mrb[29].mxu1  ;;  %v3679_v46 = vmul.f32 %v4054_v56, %v8549_v5 }
 0x498   : > { %v3677_v53 = vmul.f32 %v8549_v5, %v3627_v60  ;;  %v4055_v58 = vpop.f32.mrb[30].mxu1 }
 0x499   : > { %v3630_v51 = vpop.f32.mrb[31].mxu1  ;;  %v3718_v57 = vadd.f32 %v8554_v27, %v3679_v46  ;;  %v3680_v9 = vmul.f32 %v4055_v58, %v8549_v5 }
 0x49a   : > { %v3716_v23 = vadd.f32 %v8554_v27, %v3677_v53  ;;  %v3678_v43 = vmul.f32 %v8549_v5, %v3630_v51 }
 0x49b   : > { %v3750_v39 = vmax.f32 %v3718_v57, 0.0  ;;  %v3719_v12 = vadd.f32 %v8554_v27, %v3680_v9 }
 0x49c   : > { %v3748_v6 = vmax.f32 %v3716_v23, 0.0  ;;  %v3717_v37 = vadd.f32 %v8554_v27, %v3678_v43 }
 0x49d   : > { %v3751_v14 = vmax.f32 %v3719_v12, 0.0 }
 0x49e   : > { %3796 = vxpose.xlu1.b32.cont [13/16] (narrow) %v3748_v6, 8  ;;  %v3768_v44 = vpop.trf.xlu0  ;;  %v3749_v50 = vmax.f32 %v3717_v37, 0.0 }
 0x49f   : > { %3816 = vst [vmem:[%s278_s26] sm:$0xff] %v3768_v44 }
 0x4a2   : > { %3797 = vxpose.xlu1.b32.cont [14/16] (narrow) %v3749_v50, 8 }
 0x4a6   : > { %3798 = vxpose.xlu1.b32.cont [15/16] (narrow) %v3750_v39, 8 }
 0x4aa   : > { %3799 = vxpose.xlu1.b32.end [16/16] (narrow) %v3751_v14, 8 }
 0x4ee   : > { %v3800_v1 = vpop.trf.xlu1 }
 0x4ef   : > { %3817 = vst [vmem:[%s278_s26 + $0x8] sm:$0xff] %v3800_v1 }
 0x4f0 PF: > { %s17_s24 = sadd.s32 1, %s5426_s24  }
 0x4f1   : > { %p14_p4 = scmp.ge.s32.totalorder %s17_s24, 4  }
 0x4f3   :  { %16 = sbr.rel (!%p14_p4) target bundleno = 1 (0x1), region = 79 }

</bundles_post_ra>
